<compile_context>
chip_gen: v7x
topology: tpu7x:2x2x1
jax: 0.10.0
libtpu: 0.0.40
codegen_flags: <defaults>
</compile_context>

<pallas_src>
import functools

import jax
import jax.numpy as jnp
from jax import lax
from jax.experimental import pallas as pl
from jax.experimental.pallas import tpu as pltpu

# ---------------- config (small, consistent with a BERT forward) -------------
VOCAB = 100
HIDDEN = 32
N_LAYERS = 2
N_HEADS = 2
HEAD_DIM = HIDDEN // N_HEADS
INTERMEDIATE = 64
MAX_POS = 16
TYPE_VOCAB = 2
LN_EPS = 1e-12
NORM_EPS = 1e-12  # torch.nn.functional.normalize default eps

# Dtype fed to the MXU. Keep f32 here for max fidelity at these tiny dims;
# flip to jnp.bfloat16 on v6e/v7x when scaling to real BERT sizes
# (accumulation stays f32 via preferred_element_type).
MATMUL_DTYPE = jnp.float32


# ---------------- in-kernel helpers ------------------------------------------
def _mm(a, b):
    return jnp.dot(a.astype(MATMUL_DTYPE), b.astype(MATMUL_DTYPE),
                   preferred_element_type=jnp.float32)


def _layernorm(y, g, b, eps=LN_EPS):
    mu = jnp.mean(y, axis=-1, keepdims=True)
    var = jnp.mean((y - mu) * (y - mu), axis=-1, keepdims=True)
    return (y - mu) * lax.rsqrt(var + eps) * g + b


def _gelu(y):
    # TODO(synk): HF BERT uses exact erf-GELU; tanh approximation used here.
    c = 0.7978845608028654  # sqrt(2/pi)
    return 0.5 * y * (1.0 + jnp.tanh(c * (y + 0.044715 * y * y * y)))


# ---------------- the fused encoder + distance kernel -------------------------
def _fused_encoder_kernel(
    emb_ref, bias_ref, emb_g_ref, emb_b_ref,
    wqkv_ref, bqkv_ref, wo_ref, bo_ref, ln1_g_ref, ln1_b_ref,
    wi_ref, bi_ref, wo2_ref, bo2_ref, ln2_g_ref, ln2_b_ref,
    o_ref, *, batch, seq):
    """Whole (query+doc) BERT encoder + CLS cosine distance in one launch.

    emb_ref : [2B*S, H]  summed word+pos+type embeddings
    bias_ref: [2B, S]    additive attention mask bias (0 / -1e9)
    weights : stacked on a leading N_LAYERS axis, resident in VMEM
    o_ref   : [B, 1]     cosine distances
    """
    scale = 1.0 / (HEAD_DIM ** 0.5)
    n_seq = 2 * batch  # query and document sequences, concatenated on batch

    # --- embedding layernorm (no residual, no zeros add) ---------------------
    x = _layernorm(emb_ref[...], emb_g_ref[...], emb_b_ref[...])   # [2B*S, H]

    # --- transformer layers (static unrolled; weights indexed per layer) -----
    for l in range(N_LAYERS):
        # fused QKV projection: one [M, H] @ [H, 3H] MXU push
        qkv = _mm(x, wqkv_ref[l]) + bqkv_ref[l]                     # [M, 3H]
        q = qkv[:, 0 * HIDDEN:1 * HIDDEN]
        k = qkv[:, 1 * HIDDEN:2 * HIDDEN]
        v = qkv[:, 2 * HIDDEN:3 * HIDDEN]

        # attention: head split / merge done in-register, no grid, no HBM trip
        ctx_rows = []
        for bidx in range(n_seq):
            rows = slice(bidx * seq, (bidx + 1) * seq)
            bias_b = bias_ref[bidx:bidx + 1, :]        # [1, S], sublane bcast
            heads = []
            for h in range(N_HEADS):
                cols = slice(h * HEAD_DIM, (h + 1) * HEAD_DIM)
                qh = q[rows, cols] * scale             # scale hoisted into Q
                kh = k[rows, cols]
                vh = v[rows, cols]
                s = _mm(qh, kh.T) + bias_b             # [S, S]
                s = s - jnp.max(s, axis=-1, keepdims=True)
                p = jnp.exp(s)
                denom = jnp.sum(p, axis=-1, keepdims=True)
                p = p * pl.reciprocal(denom, approx=True)   # EUP, not VPU div
                heads.append(_mm(p, vh))               # [S, DH]
            ctx_rows.append(jnp.concatenate(heads, axis=-1))   # [S, H]
        ctx = jnp.concatenate(ctx_rows, axis=0)        # [M, H]

        attn_out = _mm(ctx, wo_ref[l]) + bo_ref[l]
        x = _layernorm(attn_out + x, ln1_g_ref[l], ln1_b_ref[l])

        hmid = _gelu(_mm(x, wi_ref[l]) + bi_ref[l])    # [M, I]
        ffn_out = _mm(hmid, wo2_ref[l]) + bo2_ref[l]
        x = _layernorm(ffn_out + x, ln2_g_ref[l], ln2_b_ref[l])

    # --- CLS pooling + L2-normalize + cosine distance epilogue ---------------
    for b_ in range(batch):
        q_cls = x[b_ * seq:b_ * seq + 1, :]                        # [1, H]
        d_cls = x[(batch + b_) * seq:(batch + b_) * seq + 1, :]    # [1, H]
        qn = q_cls / jnp.maximum(
            jnp.sqrt(jnp.sum(q_cls * q_cls, axis=-1, keepdims=True)), NORM_EPS)
        dn = d_cls / jnp.maximum(
            jnp.sqrt(jnp.sum(d_cls * d_cls, axis=-1, keepdims=True)), NORM_EPS)
        sim = jnp.sum(qn * dn, axis=-1, keepdims=True)             # [1, 1]
        o_ref[b_:b_ + 1, :] = 1.0 - sim


# ---------------- forward (embedding gathers in JAX, everything else fused) --
def bert_cls_forward(params, q_ids, q_mask, q_types, d_ids, d_mask, d_types):
    B, S = q_ids.shape
    # concatenate query + document along batch -> one encoder pass
    ids = jnp.concatenate([q_ids, d_ids], axis=0)        # [2B, S]
    mask = jnp.concatenate([q_mask, d_mask], axis=0)     # [2B, S]
    types = jnp.concatenate([q_types, d_types], axis=0)  # [2B, S]

    we = jnp.take(params["word_emb"], ids, axis=0)       # [2B, S, H]
    pe = params["pos_emb"][:S][None, :, :]               # [1,  S, H]
    te = jnp.take(params["type_emb"], types, axis=0)     # [2B, S, H]
    emb = (we + pe + te).reshape(2 * B * S, HIDDEN)      # [2B*S, H]

    bias = (1.0 - mask.astype(jnp.float32)) * -1e9       # [2B, S]

    out = pl.pallas_call(
        functools.partial(_fused_encoder_kernel, batch=B, seq=S),
        out_shape=jax.ShapeDtypeStruct((B, 1), jnp.float32),
    )(emb, bias,
      params["emb_ln_g"], params["emb_ln_b"],
      params["wqkv"], params["bqkv"], params["wo"], params["bo"],
      params["ln1_g"], params["ln1_b"],
      params["wi"], params["bi"], params["wo2"], params["bo2"],
      params["ln2_g"], params["ln2_b"])
    return out[:, 0]                                     # [B]


# ---------------- deterministic parameter init --------------------------------
def init_params(key):
    def nrm(k, shape, scale=0.02):
        return scale * jax.random.normal(k, shape, dtype=jnp.float32)

    keys = jax.random.split(key, 3 + N_LAYERS)
    params = {
        "word_emb": nrm(keys[0], (VOCAB, HIDDEN)),
        "pos_emb": nrm(keys[1], (MAX_POS, HIDDEN)),
        "type_emb": nrm(keys[2], (TYPE_VOCAB, HIDDEN)),
        "emb_ln_g": jnp.ones((1, HIDDEN), jnp.float32),
        "emb_ln_b": jnp.zeros((1, HIDDEN), jnp.float32),
    }
    names = ["wqkv", "bqkv", "wo", "bo", "ln1_g", "ln1_b",
             "wi", "bi", "wo2", "bo2", "ln2_g", "ln2_b"]
    per_layer = {n: [] for n in names}
    for i in range(N_LAYERS):
        lk = jax.random.split(keys[3 + i], 6)
        wq = nrm(lk[0], (HIDDEN, HIDDEN))
        wk = nrm(lk[1], (HIDDEN, HIDDEN))
        wv = nrm(lk[2], (HIDDEN, HIDDEN))
        per_layer["wqkv"].append(jnp.concatenate([wq, wk, wv], axis=1))
        per_layer["bqkv"].append(jnp.zeros((1, 3 * HIDDEN), jnp.float32))
        per_layer["wo"].append(nrm(lk[3], (HIDDEN, HIDDEN)))
        per_layer["bo"].append(jnp.zeros((1, HIDDEN), jnp.float32))
        per_layer["ln1_g"].append(jnp.ones((1, HIDDEN), jnp.float32))
        per_layer["ln1_b"].append(jnp.zeros((1, HIDDEN), jnp.float32))
        per_layer["wi"].append(nrm(lk[4], (HIDDEN, INTERMEDIATE)))
        per_layer["bi"].append(jnp.zeros((1, INTERMEDIATE), jnp.float32))
        per_layer["wo2"].append(nrm(lk[5], (INTERMEDIATE, HIDDEN)))
        per_layer["bo2"].append(jnp.zeros((1, HIDDEN), jnp.float32))
        per_layer["ln2_g"].append(jnp.ones((1, HIDDEN), jnp.float32))
        per_layer["ln2_b"].append(jnp.zeros((1, HIDDEN), jnp.float32))
    for n in names:
        params[n] = jnp.stack(per_layer[n], axis=0)      # [L, ...]
    return params


# ---------------- main --------------------------------------------------------
if __name__ == "__main__":
    B, S = 2, 8
    root = jax.random.PRNGKey(0)
    k_par, k_q, k_d = jax.random.split(root, 3)

    params = init_params(k_par)

    q_ids = jax.random.randint(k_q, (B, S), 0, VOCAB, dtype=jnp.int32)
    d_ids = jax.random.randint(k_d, (B, S), 0, VOCAB, dtype=jnp.int32)
    # simple padding pattern for the attention masks
    q_mask = jnp.ones((B, S), jnp.int32).at[:, -2:].set(0)
    d_mask = jnp.ones((B, S), jnp.int32)
    q_types = jnp.zeros((B, S), jnp.int32)
    d_types = jnp.zeros((B, S), jnp.int32)

    distances = bert_cls_forward(params, q_ids, q_mask, q_types,
                                 d_ids, d_mask, d_types)
    distances = jax.block_until_ready(distances)
    assert distances.shape == (B,) and distances.dtype == jnp.float32
    print("KERNEL_OK")
</pallas_src>

<mosaic_0001>
module attributes {stable_mosaic.version = 11 : i64} {
  func.func @_fused_encoder_kernel(%arg0: memref<32x32xf32, #tpu.memory_space<vmem>>, %arg1: memref<4x8xf32, #tpu.memory_space<vmem>>, %arg2: memref<1x32xf32, #tpu.memory_space<vmem>>, %arg3: memref<1x32xf32, #tpu.memory_space<vmem>>, %arg4: memref<2x32x96xf32, #tpu.memory_space<vmem>>, %arg5: memref<2x1x96xf32, #tpu.memory_space<vmem>>, %arg6: memref<2x32x32xf32, #tpu.memory_space<vmem>>, %arg7: memref<2x1x32xf32, #tpu.memory_space<vmem>>, %arg8: memref<2x1x32xf32, #tpu.memory_space<vmem>>, %arg9: memref<2x1x32xf32, #tpu.memory_space<vmem>>, %arg10: memref<2x32x64xf32, #tpu.memory_space<vmem>>, %arg11: memref<2x1x64xf32, #tpu.memory_space<vmem>>, %arg12: memref<2x64x32xf32, #tpu.memory_space<vmem>>, %arg13: memref<2x1x32xf32, #tpu.memory_space<vmem>>, %arg14: memref<2x1x32xf32, #tpu.memory_space<vmem>>, %arg15: memref<2x1x32xf32, #tpu.memory_space<vmem>>, %arg16: memref<2x1xf32, #tpu.memory_space<vmem>>) attributes {dimension_semantics = [], scalar_prefetch = 0 : i64, scratch_operands = 0 : i64, tpu.core_type = #tpu.core_type<tc>} {
    %c0 = arith.constant 0 : index
    %c0_0 = arith.constant 0 : index
    %0 = vector.load %arg0[%c0, %c0_0] : memref<32x32xf32, #tpu.memory_space<vmem>>, vector<32x32xf32>
    %c0_1 = arith.constant 0 : index
    %c0_2 = arith.constant 0 : index
    %1 = vector.load %arg2[%c0_1, %c0_2] : memref<1x32xf32, #tpu.memory_space<vmem>>, vector<1x32xf32>
    %c0_3 = arith.constant 0 : index
    %c0_4 = arith.constant 0 : index
    %2 = vector.load %arg3[%c0_3, %c0_4] : memref<1x32xf32, #tpu.memory_space<vmem>>, vector<1x32xf32>
    %cst = arith.constant dense<0.000000e+00> : vector<32xf32>
    %3 = vector.multi_reduction <add>, %0, %cst [1] : vector<32x32xf32> to vector<32xf32>
    %4 = vector.shape_cast %3 : vector<32xf32> to vector<32x1xf32>
    %cst_5 = arith.constant 3.200000e+01 : f32
    %5 = vector.broadcast %cst_5 : f32 to vector<32x1xf32>
    %6 = arith.divf %4, %5 : vector<32x1xf32>
    %7 = vector.broadcast %6 : vector<32x1xf32> to vector<32x32xf32>
    %8 = arith.subf %0, %7 : vector<32x32xf32>
    %9 = vector.broadcast %6 : vector<32x1xf32> to vector<32x32xf32>
    %10 = arith.subf %0, %9 : vector<32x32xf32>
    %11 = arith.mulf %8, %10 : vector<32x32xf32>
    %cst_6 = arith.constant dense<0.000000e+00> : vector<32xf32>
    %12 = vector.multi_reduction <add>, %11, %cst_6 [1] : vector<32x32xf32> to vector<32xf32>
    %13 = vector.shape_cast %12 : vector<32xf32> to vector<32x1xf32>
    %cst_7 = arith.constant 3.200000e+01 : f32
    %14 = vector.broadcast %cst_7 : f32 to vector<32x1xf32>
    %15 = arith.divf %13, %14 : vector<32x1xf32>
    %16 = vector.broadcast %6 : vector<32x1xf32> to vector<32x32xf32>
    %17 = arith.subf %0, %16 : vector<32x32xf32>
    %cst_8 = arith.constant 9.99999996E-13 : f32
    %18 = vector.broadcast %cst_8 : f32 to vector<32x1xf32>
    %19 = arith.addf %15, %18 : vector<32x1xf32>
    %20 = math.rsqrt %19 : vector<32x1xf32>
    %21 = vector.broadcast %20 : vector<32x1xf32> to vector<32x32xf32>
    %22 = arith.mulf %17, %21 : vector<32x32xf32>
    %23 = vector.broadcast %1 : vector<1x32xf32> to vector<32x32xf32>
    %24 = arith.mulf %22, %23 : vector<32x32xf32>
    %25 = vector.broadcast %2 : vector<1x32xf32> to vector<32x32xf32>
    %26 = arith.addf %24, %25 : vector<32x32xf32>
    %c0_9 = arith.constant 0 : index
    %c0_10 = arith.constant 0 : index
    %c0_11 = arith.constant 0 : index
    %27 = vector.load %arg4[%c0_9, %c0_10, %c0_11] : memref<2x32x96xf32, #tpu.memory_space<vmem>>, vector<1x32x96xf32>
    %28 = vector.shape_cast %27 : vector<1x32x96xf32> to vector<32x96xf32>
    %cst_12 = arith.constant dense<0.000000e+00> : vector<32x96xf32>
    %29 = tpu.matmul %26, %28, %cst_12 {dimension_numbers = #tpu.dot_dimension_numbers<[1], [0], [0], [1], [0, 0, 1, 1], [], []>} : vector<32x32xf32>, vector<32x96xf32>, vector<32x96xf32> -> vector<32x96xf32>
    %c0_13 = arith.constant 0 : index
    %c0_14 = arith.constant 0 : index
    %c0_15 = arith.constant 0 : index
    %30 = vector.load %arg5[%c0_13, %c0_14, %c0_15] : memref<2x1x96xf32, #tpu.memory_space<vmem>>, vector<1x1x96xf32>
    %31 = vector.shape_cast %30 : vector<1x1x96xf32> to vector<1x96xf32>
    %32 = vector.broadcast %31 : vector<1x96xf32> to vector<32x96xf32>
    %33 = arith.addf %29, %32 : vector<32x96xf32>
    %34 = vector.extract_strided_slice %33 {offsets = [0, 0], sizes = [32, 32], strides = [1, 1]} : vector<32x96xf32> to vector<32x32xf32>
    %35 = vector.extract_strided_slice %33 {offsets = [0, 32], sizes = [32, 32], strides = [1, 1]} : vector<32x96xf32> to vector<32x32xf32>
    %36 = vector.extract_strided_slice %33 {offsets = [0, 64], sizes = [32, 32], strides = [1, 1]} : vector<32x96xf32> to vector<32x32xf32>
    %c0_16 = arith.constant 0 : index
    %c0_17 = arith.constant 0 : index
    %37 = vector.load %arg1[%c0_16, %c0_17] : memref<4x8xf32, #tpu.memory_space<vmem>>, vector<1x8xf32>
    %38 = vector.extract_strided_slice %34 {offsets = [0, 0], sizes = [8, 16], strides = [1, 1]} : vector<32x32xf32> to vector<8x16xf32>
    %cst_18 = arith.constant 2.500000e-01 : f32
    %39 = vector.broadcast %cst_18 : f32 to vector<8x16xf32>
    %40 = arith.mulf %38, %39 : vector<8x16xf32>
    %41 = vector.extract_strided_slice %35 {offsets = [0, 0], sizes = [8, 16], strides = [1, 1]} : vector<32x32xf32> to vector<8x16xf32>
    %42 = vector.extract_strided_slice %36 {offsets = [0, 0], sizes = [8, 16], strides = [1, 1]} : vector<32x32xf32> to vector<8x16xf32>
    %43 = tpu.transpose %41, [1, 0] : vector<8x16xf32> -> vector<16x8xf32>
    %cst_19 = arith.constant dense<0.000000e+00> : vector<8x8xf32>
    %44 = tpu.matmul %40, %43, %cst_19 {dimension_numbers = #tpu.dot_dimension_numbers<[1], [0], [0], [1], [0, 0, 1, 1], [], []>} : vector<8x16xf32>, vector<16x8xf32>, vector<8x8xf32> -> vector<8x8xf32>
    %45 = vector.broadcast %37 : vector<1x8xf32> to vector<8x8xf32>
    %46 = arith.addf %44, %45 : vector<8x8xf32>
    %cst_20 = arith.constant dense<0xFF800000> : vector<8xf32>
    %47 = vector.multi_reduction <maximumf>, %46, %cst_20 [1] : vector<8x8xf32> to vector<8xf32>
    %48 = vector.shape_cast %47 : vector<8xf32> to vector<8x1xf32>
    %49 = vector.broadcast %48 : vector<8x1xf32> to vector<8x8xf32>
    %50 = arith.subf %46, %49 : vector<8x8xf32>
    %51 = math.exp %50 : vector<8x8xf32>
    %cst_21 = arith.constant dense<0.000000e+00> : vector<8xf32>
    %52 = vector.multi_reduction <add>, %51, %cst_21 [1] : vector<8x8xf32> to vector<8xf32>
    %53 = vector.shape_cast %52 : vector<8xf32> to vector<8x1xf32>
    %54 = tpu.reciprocal %53 {approx = true} : vector<8x1xf32> -> vector<8x1xf32>
    %55 = vector.broadcast %54 : vector<8x1xf32> to vector<8x8xf32>
    %56 = arith.mulf %51, %55 : vector<8x8xf32>
    %cst_22 = arith.constant dense<0.000000e+00> : vector<8x16xf32>
    %57 = tpu.matmul %56, %42, %cst_22 {dimension_numbers = #tpu.dot_dimension_numbers<[1], [0], [0], [1], [0, 0, 1, 1], [], []>} : vector<8x8xf32>, vector<8x16xf32>, vector<8x16xf32> -> vector<8x16xf32>
    %58 = vector.extract_strided_slice %34 {offsets = [0, 16], sizes = [8, 16], strides = [1, 1]} : vector<32x32xf32> to vector<8x16xf32>
    %cst_23 = arith.constant 2.500000e-01 : f32
    %59 = vector.broadcast %cst_23 : f32 to vector<8x16xf32>
    %60 = arith.mulf %58, %59 : vector<8x16xf32>
    %61 = vector.extract_strided_slice %35 {offsets = [0, 16], sizes = [8, 16], strides = [1, 1]} : vector<32x32xf32> to vector<8x16xf32>
    %62 = vector.extract_strided_slice %36 {offsets = [0, 16], sizes = [8, 16], strides = [1, 1]} : vector<32x32xf32> to vector<8x16xf32>
    %63 = tpu.transpose %61, [1, 0] : vector<8x16xf32> -> vector<16x8xf32>
    %cst_24 = arith.constant dense<0.000000e+00> : vector<8x8xf32>
    %64 = tpu.matmul %60, %63, %cst_24 {dimension_numbers = #tpu.dot_dimension_numbers<[1], [0], [0], [1], [0, 0, 1, 1], [], []>} : vector<8x16xf32>, vector<16x8xf32>, vector<8x8xf32> -> vector<8x8xf32>
    %65 = vector.broadcast %37 : vector<1x8xf32> to vector<8x8xf32>
    %66 = arith.addf %64, %65 : vector<8x8xf32>
    %cst_25 = arith.constant dense<0xFF800000> : vector<8xf32>
    %67 = vector.multi_reduction <maximumf>, %66, %cst_25 [1] : vector<8x8xf32> to vector<8xf32>
    %68 = vector.shape_cast %67 : vector<8xf32> to vector<8x1xf32>
    %69 = vector.broadcast %68 : vector<8x1xf32> to vector<8x8xf32>
    %70 = arith.subf %66, %69 : vector<8x8xf32>
    %71 = math.exp %70 : vector<8x8xf32>
    %cst_26 = arith.constant dense<0.000000e+00> : vector<8xf32>
    %72 = vector.multi_reduction <add>, %71, %cst_26 [1] : vector<8x8xf32> to vector<8xf32>
    %73 = vector.shape_cast %72 : vector<8xf32> to vector<8x1xf32>
    %74 = tpu.reciprocal %73 {approx = true} : vector<8x1xf32> -> vector<8x1xf32>
    %75 = vector.broadcast %74 : vector<8x1xf32> to vector<8x8xf32>
    %76 = arith.mulf %71, %75 : vector<8x8xf32>
    %cst_27 = arith.constant dense<0.000000e+00> : vector<8x16xf32>
    %77 = tpu.matmul %76, %62, %cst_27 {dimension_numbers = #tpu.dot_dimension_numbers<[1], [0], [0], [1], [0, 0, 1, 1], [], []>} : vector<8x8xf32>, vector<8x16xf32>, vector<8x16xf32> -> vector<8x16xf32>
    %78 = tpu.concatenate %57, %77 in 1 : vector<8x16xf32>, vector<8x16xf32> -> vector<8x32xf32>
    %c1 = arith.constant 1 : index
    %c0_28 = arith.constant 0 : index
    %79 = vector.load %arg1[%c1, %c0_28] : memref<4x8xf32, #tpu.memory_space<vmem>>, vector<1x8xf32>
    %80 = vector.extract_strided_slice %34 {offsets = [8, 0], sizes = [8, 16], strides = [1, 1]} : vector<32x32xf32> to vector<8x16xf32>
    %cst_29 = arith.constant 2.500000e-01 : f32
    %81 = vector.broadcast %cst_29 : f32 to vector<8x16xf32>
    %82 = arith.mulf %80, %81 : vector<8x16xf32>
    %83 = vector.extract_strided_slice %35 {offsets = [8, 0], sizes = [8, 16], strides = [1, 1]} : vector<32x32xf32> to vector<8x16xf32>
    %84 = vector.extract_strided_slice %36 {offsets = [8, 0], sizes = [8, 16], strides = [1, 1]} : vector<32x32xf32> to vector<8x16xf32>
    %85 = tpu.transpose %83, [1, 0] : vector<8x16xf32> -> vector<16x8xf32>
    %cst_30 = arith.constant dense<0.000000e+00> : vector<8x8xf32>
    %86 = tpu.matmul %82, %85, %cst_30 {dimension_numbers = #tpu.dot_dimension_numbers<[1], [0], [0], [1], [0, 0, 1, 1], [], []>} : vector<8x16xf32>, vector<16x8xf32>, vector<8x8xf32> -> vector<8x8xf32>
    %87 = vector.broadcast %79 : vector<1x8xf32> to vector<8x8xf32>
    %88 = arith.addf %86, %87 : vector<8x8xf32>
    %cst_31 = arith.constant dense<0xFF800000> : vector<8xf32>
    %89 = vector.multi_reduction <maximumf>, %88, %cst_31 [1] : vector<8x8xf32> to vector<8xf32>
    %90 = vector.shape_cast %89 : vector<8xf32> to vector<8x1xf32>
    %91 = vector.broadcast %90 : vector<8x1xf32> to vector<8x8xf32>
    %92 = arith.subf %88, %91 : vector<8x8xf32>
    %93 = math.exp %92 : vector<8x8xf32>
    %cst_32 = arith.constant dense<0.000000e+00> : vector<8xf32>
    %94 = vector.multi_reduction <add>, %93, %cst_32 [1] : vector<8x8xf32> to vector<8xf32>
    %95 = vector.shape_cast %94 : vector<8xf32> to vector<8x1xf32>
    %96 = tpu.reciprocal %95 {approx = true} : vector<8x1xf32> -> vector<8x1xf32>
    %97 = vector.broadcast %96 : vector<8x1xf32> to vector<8x8xf32>
    %98 = arith.mulf %93, %97 : vector<8x8xf32>
    %cst_33 = arith.constant dense<0.000000e+00> : vector<8x16xf32>
    %99 = tpu.matmul %98, %84, %cst_33 {dimension_numbers = #tpu.dot_dimension_numbers<[1], [0], [0], [1], [0, 0, 1, 1], [], []>} : vector<8x8xf32>, vector<8x16xf32>, vector<8x16xf32> -> vector<8x16xf32>
    %100 = vector.extract_strided_slice %34 {offsets = [8, 16], sizes = [8, 16], strides = [1, 1]} : vector<32x32xf32> to vector<8x16xf32>
    %cst_34 = arith.constant 2.500000e-01 : f32
    %101 = vector.broadcast %cst_34 : f32 to vector<8x16xf32>
    %102 = arith.mulf %100, %101 : vector<8x16xf32>
    %103 = vector.extract_strided_slice %35 {offsets = [8, 16], sizes = [8, 16], strides = [1, 1]} : vector<32x32xf32> to vector<8x16xf32>
    %104 = vector.extract_strided_slice %36 {offsets = [8, 16], sizes = [8, 16], strides = [1, 1]} : vector<32x32xf32> to vector<8x16xf32>
    %105 = tpu.transpose %103, [1, 0] : vector<8x16xf32> -> vector<16x8xf32>
    %cst_35 = arith.constant dense<0.000000e+00> : vector<8x8xf32>
    %106 = tpu.matmul %102, %105, %cst_35 {dimension_numbers = #tpu.dot_dimension_numbers<[1], [0], [0], [1], [0, 0, 1, 1], [], []>} : vector<8x16xf32>, vector<16x8xf32>, vector<8x8xf32> -> vector<8x8xf32>
    %107 = vector.broadcast %79 : vector<1x8xf32> to vector<8x8xf32>
    %108 = arith.addf %106, %107 : vector<8x8xf32>
    %cst_36 = arith.constant dense<0xFF800000> : vector<8xf32>
    %109 = vector.multi_reduction <maximumf>, %108, %cst_36 [1] : vector<8x8xf32> to vector<8xf32>
    %110 = vector.shape_cast %109 : vector<8xf32> to vector<8x1xf32>
    %111 = vector.broadcast %110 : vector<8x1xf32> to vector<8x8xf32>
    %112 = arith.subf %108, %111 : vector<8x8xf32>
    %113 = math.exp %112 : vector<8x8xf32>
    %cst_37 = arith.constant dense<0.000000e+00> : vector<8xf32>
    %114 = vector.multi_reduction <add>, %113, %cst_37 [1] : vector<8x8xf32> to vector<8xf32>
    %115 = vector.shape_cast %114 : vector<8xf32> to vector<8x1xf32>
    %116 = tpu.reciprocal %115 {approx = true} : vector<8x1xf32> -> vector<8x1xf32>
    %117 = vector.broadcast %116 : vector<8x1xf32> to vector<8x8xf32>
    %118 = arith.mulf %113, %117 : vector<8x8xf32>
    %cst_38 = arith.constant dense<0.000000e+00> : vector<8x16xf32>
    %119 = tpu.matmul %118, %104, %cst_38 {dimension_numbers = #tpu.dot_dimension_numbers<[1], [0], [0], [1], [0, 0, 1, 1], [], []>} : vector<8x8xf32>, vector<8x16xf32>, vector<8x16xf32> -> vector<8x16xf32>
    %120 = tpu.concatenate %99, %119 in 1 : vector<8x16xf32>, vector<8x16xf32> -> vector<8x32xf32>
    %c2 = arith.constant 2 : index
    %c0_39 = arith.constant 0 : index
    %121 = vector.load %arg1[%c2, %c0_39] : memref<4x8xf32, #tpu.memory_space<vmem>>, vector<1x8xf32>
    %122 = vector.extract_strided_slice %34 {offsets = [16, 0], sizes = [8, 16], strides = [1, 1]} : vector<32x32xf32> to vector<8x16xf32>
    %cst_40 = arith.constant 2.500000e-01 : f32
    %123 = vector.broadcast %cst_40 : f32 to vector<8x16xf32>
    %124 = arith.mulf %122, %123 : vector<8x16xf32>
    %125 = vector.extract_strided_slice %35 {offsets = [16, 0], sizes = [8, 16], strides = [1, 1]} : vector<32x32xf32> to vector<8x16xf32>
    %126 = vector.extract_strided_slice %36 {offsets = [16, 0], sizes = [8, 16], strides = [1, 1]} : vector<32x32xf32> to vector<8x16xf32>
    %127 = tpu.transpose %125, [1, 0] : vector<8x16xf32> -> vector<16x8xf32>
    %cst_41 = arith.constant dense<0.000000e+00> : vector<8x8xf32>
    %128 = tpu.matmul %124, %127, %cst_41 {dimension_numbers = #tpu.dot_dimension_numbers<[1], [0], [0], [1], [0, 0, 1, 1], [], []>} : vector<8x16xf32>, vector<16x8xf32>, vector<8x8xf32> -> vector<8x8xf32>
    %129 = vector.broadcast %121 : vector<1x8xf32> to vector<8x8xf32>
    %130 = arith.addf %128, %129 : vector<8x8xf32>
    %cst_42 = arith.constant dense<0xFF800000> : vector<8xf32>
    %131 = vector.multi_reduction <maximumf>, %130, %cst_42 [1] : vector<8x8xf32> to vector<8xf32>
    %132 = vector.shape_cast %131 : vector<8xf32> to vector<8x1xf32>
    %133 = vector.broadcast %132 : vector<8x1xf32> to vector<8x8xf32>
    %134 = arith.subf %130, %133 : vector<8x8xf32>
    %135 = math.exp %134 : vector<8x8xf32>
    %cst_43 = arith.constant dense<0.000000e+00> : vector<8xf32>
    %136 = vector.multi_reduction <add>, %135, %cst_43 [1] : vector<8x8xf32> to vector<8xf32>
    %137 = vector.shape_cast %136 : vector<8xf32> to vector<8x1xf32>
    %138 = tpu.reciprocal %137 {approx = true} : vector<8x1xf32> -> vector<8x1xf32>
    %139 = vector.broadcast %138 : vector<8x1xf32> to vector<8x8xf32>
    %140 = arith.mulf %135, %139 : vector<8x8xf32>
    %cst_44 = arith.constant dense<0.000000e+00> : vector<8x16xf32>
    %141 = tpu.matmul %140, %126, %cst_44 {dimension_numbers = #tpu.dot_dimension_numbers<[1], [0], [0], [1], [0, 0, 1, 1], [], []>} : vector<8x8xf32>, vector<8x16xf32>, vector<8x16xf32> -> vector<8x16xf32>
    %142 = vector.extract_strided_slice %34 {offsets = [16, 16], sizes = [8, 16], strides = [1, 1]} : vector<32x32xf32> to vector<8x16xf32>
    %cst_45 = arith.constant 2.500000e-01 : f32
    %143 = vector.broadcast %cst_45 : f32 to vector<8x16xf32>
    %144 = arith.mulf %142, %143 : vector<8x16xf32>
    %145 = vector.extract_strided_slice %35 {offsets = [16, 16], sizes = [8, 16], strides = [1, 1]} : vector<32x32xf32> to vector<8x16xf32>
    %146 = vector.extract_strided_slice %36 {offsets = [16, 16], sizes = [8, 16], strides = [1, 1]} : vector<32x32xf32> to vector<8x16xf32>
    %147 = tpu.transpose %145, [1, 0] : vector<8x16xf32> -> vector<16x8xf32>
    %cst_46 = arith.constant dense<0.000000e+00> : vector<8x8xf32>
    %148 = tpu.matmul %144, %147, %cst_46 {dimension_numbers = #tpu.dot_dimension_numbers<[1], [0], [0], [1], [0, 0, 1, 1], [], []>} : vector<8x16xf32>, vector<16x8xf32>, vector<8x8xf32> -> vector<8x8xf32>
    %149 = vector.broadcast %121 : vector<1x8xf32> to vector<8x8xf32>
    %150 = arith.addf %148, %149 : vector<8x8xf32>
    %cst_47 = arith.constant dense<0xFF800000> : vector<8xf32>
    %151 = vector.multi_reduction <maximumf>, %150, %cst_47 [1] : vector<8x8xf32> to vector<8xf32>
    %152 = vector.shape_cast %151 : vector<8xf32> to vector<8x1xf32>
    %153 = vector.broadcast %152 : vector<8x1xf32> to vector<8x8xf32>
    %154 = arith.subf %150, %153 : vector<8x8xf32>
    %155 = math.exp %154 : vector<8x8xf32>
    %cst_48 = arith.constant dense<0.000000e+00> : vector<8xf32>
    %156 = vector.multi_reduction <add>, %155, %cst_48 [1] : vector<8x8xf32> to vector<8xf32>
    %157 = vector.shape_cast %156 : vector<8xf32> to vector<8x1xf32>
    %158 = tpu.reciprocal %157 {approx = true} : vector<8x1xf32> -> vector<8x1xf32>
    %159 = vector.broadcast %158 : vector<8x1xf32> to vector<8x8xf32>
    %160 = arith.mulf %155, %159 : vector<8x8xf32>
    %cst_49 = arith.constant dense<0.000000e+00> : vector<8x16xf32>
    %161 = tpu.matmul %160, %146, %cst_49 {dimension_numbers = #tpu.dot_dimension_numbers<[1], [0], [0], [1], [0, 0, 1, 1], [], []>} : vector<8x8xf32>, vector<8x16xf32>, vector<8x16xf32> -> vector<8x16xf32>
    %162 = tpu.concatenate %141, %161 in 1 : vector<8x16xf32>, vector<8x16xf32> -> vector<8x32xf32>
    %c3 = arith.constant 3 : index
    %c0_50 = arith.constant 0 : index
    %163 = vector.load %arg1[%c3, %c0_50] : memref<4x8xf32, #tpu.memory_space<vmem>>, vector<1x8xf32>
    %164 = vector.extract_strided_slice %34 {offsets = [24, 0], sizes = [8, 16], strides = [1, 1]} : vector<32x32xf32> to vector<8x16xf32>
    %cst_51 = arith.constant 2.500000e-01 : f32
    %165 = vector.broadcast %cst_51 : f32 to vector<8x16xf32>
    %166 = arith.mulf %164, %165 : vector<8x16xf32>
    %167 = vector.extract_strided_slice %35 {offsets = [24, 0], sizes = [8, 16], strides = [1, 1]} : vector<32x32xf32> to vector<8x16xf32>
    %168 = vector.extract_strided_slice %36 {offsets = [24, 0], sizes = [8, 16], strides = [1, 1]} : vector<32x32xf32> to vector<8x16xf32>
    %169 = tpu.transpose %167, [1, 0] : vector<8x16xf32> -> vector<16x8xf32>
    %cst_52 = arith.constant dense<0.000000e+00> : vector<8x8xf32>
    %170 = tpu.matmul %166, %169, %cst_52 {dimension_numbers = #tpu.dot_dimension_numbers<[1], [0], [0], [1], [0, 0, 1, 1], [], []>} : vector<8x16xf32>, vector<16x8xf32>, vector<8x8xf32> -> vector<8x8xf32>
    %171 = vector.broadcast %163 : vector<1x8xf32> to vector<8x8xf32>
    %172 = arith.addf %170, %171 : vector<8x8xf32>
    %cst_53 = arith.constant dense<0xFF800000> : vector<8xf32>
    %173 = vector.multi_reduction <maximumf>, %172, %cst_53 [1] : vector<8x8xf32> to vector<8xf32>
    %174 = vector.shape_cast %173 : vector<8xf32> to vector<8x1xf32>
    %175 = vector.broadcast %174 : vector<8x1xf32> to vector<8x8xf32>
    %176 = arith.subf %172, %175 : vector<8x8xf32>
    %177 = math.exp %176 : vector<8x8xf32>
    %cst_54 = arith.constant dense<0.000000e+00> : vector<8xf32>
    %178 = vector.multi_reduction <add>, %177, %cst_54 [1] : vector<8x8xf32> to vector<8xf32>
    %179 = vector.shape_cast %178 : vector<8xf32> to vector<8x1xf32>
    %180 = tpu.reciprocal %179 {approx = true} : vector<8x1xf32> -> vector<8x1xf32>
    %181 = vector.broadcast %180 : vector<8x1xf32> to vector<8x8xf32>
    %182 = arith.mulf %177, %181 : vector<8x8xf32>
    %cst_55 = arith.constant dense<0.000000e+00> : vector<8x16xf32>
    %183 = tpu.matmul %182, %168, %cst_55 {dimension_numbers = #tpu.dot_dimension_numbers<[1], [0], [0], [1], [0, 0, 1, 1], [], []>} : vector<8x8xf32>, vector<8x16xf32>, vector<8x16xf32> -> vector<8x16xf32>
    %184 = vector.extract_strided_slice %34 {offsets = [24, 16], sizes = [8, 16], strides = [1, 1]} : vector<32x32xf32> to vector<8x16xf32>
    %cst_56 = arith.constant 2.500000e-01 : f32
    %185 = vector.broadcast %cst_56 : f32 to vector<8x16xf32>
    %186 = arith.mulf %184, %185 : vector<8x16xf32>
    %187 = vector.extract_strided_slice %35 {offsets = [24, 16], sizes = [8, 16], strides = [1, 1]} : vector<32x32xf32> to vector<8x16xf32>
    %188 = vector.extract_strided_slice %36 {offsets = [24, 16], sizes = [8, 16], strides = [1, 1]} : vector<32x32xf32> to vector<8x16xf32>
    %189 = tpu.transpose %187, [1, 0] : vector<8x16xf32> -> vector<16x8xf32>
    %cst_57 = arith.constant dense<0.000000e+00> : vector<8x8xf32>
    %190 = tpu.matmul %186, %189, %cst_57 {dimension_numbers = #tpu.dot_dimension_numbers<[1], [0], [0], [1], [0, 0, 1, 1], [], []>} : vector<8x16xf32>, vector<16x8xf32>, vector<8x8xf32> -> vector<8x8xf32>
    %191 = vector.broadcast %163 : vector<1x8xf32> to vector<8x8xf32>
    %192 = arith.addf %190, %191 : vector<8x8xf32>
    %cst_58 = arith.constant dense<0xFF800000> : vector<8xf32>
    %193 = vector.multi_reduction <maximumf>, %192, %cst_58 [1] : vector<8x8xf32> to vector<8xf32>
    %194 = vector.shape_cast %193 : vector<8xf32> to vector<8x1xf32>
    %195 = vector.broadcast %194 : vector<8x1xf32> to vector<8x8xf32>
    %196 = arith.subf %192, %195 : vector<8x8xf32>
    %197 = math.exp %196 : vector<8x8xf32>
    %cst_59 = arith.constant dense<0.000000e+00> : vector<8xf32>
    %198 = vector.multi_reduction <add>, %197, %cst_59 [1] : vector<8x8xf32> to vector<8xf32>
    %199 = vector.shape_cast %198 : vector<8xf32> to vector<8x1xf32>
    %200 = tpu.reciprocal %199 {approx = true} : vector<8x1xf32> -> vector<8x1xf32>
    %201 = vector.broadcast %200 : vector<8x1xf32> to vector<8x8xf32>
    %202 = arith.mulf %197, %201 : vector<8x8xf32>
    %cst_60 = arith.constant dense<0.000000e+00> : vector<8x16xf32>
    %203 = tpu.matmul %202, %188, %cst_60 {dimension_numbers = #tpu.dot_dimension_numbers<[1], [0], [0], [1], [0, 0, 1, 1], [], []>} : vector<8x8xf32>, vector<8x16xf32>, vector<8x16xf32> -> vector<8x16xf32>
    %204 = tpu.concatenate %183, %203 in 1 : vector<8x16xf32>, vector<8x16xf32> -> vector<8x32xf32>
    %205 = tpu.concatenate %78, %120, %162, %204 in 0 : vector<8x32xf32>, vector<8x32xf32>, vector<8x32xf32>, vector<8x32xf32> -> vector<32x32xf32>
    %c0_61 = arith.constant 0 : index
    %c0_62 = arith.constant 0 : index
    %c0_63 = arith.constant 0 : index
    %206 = vector.load %arg6[%c0_61, %c0_62, %c0_63] : memref<2x32x32xf32, #tpu.memory_space<vmem>>, vector<1x32x32xf32>
    %207 = vector.shape_cast %206 : vector<1x32x32xf32> to vector<32x32xf32>
    %cst_64 = arith.constant dense<0.000000e+00> : vector<32x32xf32>
    %208 = tpu.matmul %205, %207, %cst_64 {dimension_numbers = #tpu.dot_dimension_numbers<[1], [0], [0], [1], [0, 0, 1, 1], [], []>} : vector<32x32xf32>, vector<32x32xf32>, vector<32x32xf32> -> vector<32x32xf32>
    %c0_65 = arith.constant 0 : index
    %c0_66 = arith.constant 0 : index
    %c0_67 = arith.constant 0 : index
    %209 = vector.load %arg7[%c0_65, %c0_66, %c0_67] : memref<2x1x32xf32, #tpu.memory_space<vmem>>, vector<1x1x32xf32>
    %210 = vector.shape_cast %209 : vector<1x1x32xf32> to vector<1x32xf32>
    %211 = vector.broadcast %210 : vector<1x32xf32> to vector<32x32xf32>
    %212 = arith.addf %208, %211 : vector<32x32xf32>
    %213 = arith.addf %212, %26 : vector<32x32xf32>
    %c0_68 = arith.constant 0 : index
    %c0_69 = arith.constant 0 : index
    %c0_70 = arith.constant 0 : index
    %214 = vector.load %arg8[%c0_68, %c0_69, %c0_70] : memref<2x1x32xf32, #tpu.memory_space<vmem>>, vector<1x1x32xf32>
    %215 = vector.shape_cast %214 : vector<1x1x32xf32> to vector<1x32xf32>
    %c0_71 = arith.constant 0 : index
    %c0_72 = arith.constant 0 : index
    %c0_73 = arith.constant 0 : index
    %216 = vector.load %arg9[%c0_71, %c0_72, %c0_73] : memref<2x1x32xf32, #tpu.memory_space<vmem>>, vector<1x1x32xf32>
    %217 = vector.shape_cast %216 : vector<1x1x32xf32> to vector<1x32xf32>
    %cst_74 = arith.constant dense<0.000000e+00> : vector<32xf32>
    %218 = vector.multi_reduction <add>, %213, %cst_74 [1] : vector<32x32xf32> to vector<32xf32>
    %219 = vector.shape_cast %218 : vector<32xf32> to vector<32x1xf32>
    %cst_75 = arith.constant 3.200000e+01 : f32
    %220 = vector.broadcast %cst_75 : f32 to vector<32x1xf32>
    %221 = arith.divf %219, %220 : vector<32x1xf32>
    %222 = vector.broadcast %221 : vector<32x1xf32> to vector<32x32xf32>
    %223 = arith.subf %213, %222 : vector<32x32xf32>
    %224 = vector.broadcast %221 : vector<32x1xf32> to vector<32x32xf32>
    %225 = arith.subf %213, %224 : vector<32x32xf32>
    %226 = arith.mulf %223, %225 : vector<32x32xf32>
    %cst_76 = arith.constant dense<0.000000e+00> : vector<32xf32>
    %227 = vector.multi_reduction <add>, %226, %cst_76 [1] : vector<32x32xf32> to vector<32xf32>
    %228 = vector.shape_cast %227 : vector<32xf32> to vector<32x1xf32>
    %cst_77 = arith.constant 3.200000e+01 : f32
    %229 = vector.broadcast %cst_77 : f32 to vector<32x1xf32>
    %230 = arith.divf %228, %229 : vector<32x1xf32>
    %231 = vector.broadcast %221 : vector<32x1xf32> to vector<32x32xf32>
    %232 = arith.subf %213, %231 : vector<32x32xf32>
    %cst_78 = arith.constant 9.99999996E-13 : f32
    %233 = vector.broadcast %cst_78 : f32 to vector<32x1xf32>
    %234 = arith.addf %230, %233 : vector<32x1xf32>
    %235 = math.rsqrt %234 : vector<32x1xf32>
    %236 = vector.broadcast %235 : vector<32x1xf32> to vector<32x32xf32>
    %237 = arith.mulf %232, %236 : vector<32x32xf32>
    %238 = vector.broadcast %215 : vector<1x32xf32> to vector<32x32xf32>
    %239 = arith.mulf %237, %238 : vector<32x32xf32>
    %240 = vector.broadcast %217 : vector<1x32xf32> to vector<32x32xf32>
    %241 = arith.addf %239, %240 : vector<32x32xf32>
    %c0_79 = arith.constant 0 : index
    %c0_80 = arith.constant 0 : index
    %c0_81 = arith.constant 0 : index
    %242 = vector.load %arg10[%c0_79, %c0_80, %c0_81] : memref<2x32x64xf32, #tpu.memory_space<vmem>>, vector<1x32x64xf32>
    %243 = vector.shape_cast %242 : vector<1x32x64xf32> to vector<32x64xf32>
    %cst_82 = arith.constant dense<0.000000e+00> : vector<32x64xf32>
    %244 = tpu.matmul %241, %243, %cst_82 {dimension_numbers = #tpu.dot_dimension_numbers<[1], [0], [0], [1], [0, 0, 1, 1], [], []>} : vector<32x32xf32>, vector<32x64xf32>, vector<32x64xf32> -> vector<32x64xf32>
    %c0_83 = arith.constant 0 : index
    %c0_84 = arith.constant 0 : index
    %c0_85 = arith.constant 0 : index
    %245 = vector.load %arg11[%c0_83, %c0_84, %c0_85] : memref<2x1x64xf32, #tpu.memory_space<vmem>>, vector<1x1x64xf32>
    %246 = vector.shape_cast %245 : vector<1x1x64xf32> to vector<1x64xf32>
    %247 = vector.broadcast %246 : vector<1x64xf32> to vector<32x64xf32>
    %248 = arith.addf %244, %247 : vector<32x64xf32>
    %cst_86 = arith.constant 5.000000e-01 : f32
    %249 = vector.broadcast %cst_86 : f32 to vector<32x64xf32>
    %250 = arith.mulf %249, %248 : vector<32x64xf32>
    %cst_87 = arith.constant 4.471500e-02 : f32
    %251 = vector.broadcast %cst_87 : f32 to vector<32x64xf32>
    %252 = arith.mulf %251, %248 : vector<32x64xf32>
    %253 = arith.mulf %252, %248 : vector<32x64xf32>
    %254 = arith.mulf %253, %248 : vector<32x64xf32>
    %255 = arith.addf %248, %254 : vector<32x64xf32>
    %cst_88 = arith.constant 0.797884583 : f32
    %256 = vector.broadcast %cst_88 : f32 to vector<32x64xf32>
    %257 = arith.mulf %256, %255 : vector<32x64xf32>
    %258 = math.tanh %257 : vector<32x64xf32>
    %cst_89 = arith.constant 1.000000e+00 : f32
    %259 = vector.broadcast %cst_89 : f32 to vector<32x64xf32>
    %260 = arith.addf %259, %258 : vector<32x64xf32>
    %261 = arith.mulf %250, %260 : vector<32x64xf32>
    %c0_90 = arith.constant 0 : index
    %c0_91 = arith.constant 0 : index
    %c0_92 = arith.constant 0 : index
    %262 = vector.load %arg12[%c0_90, %c0_91, %c0_92] : memref<2x64x32xf32, #tpu.memory_space<vmem>>, vector<1x64x32xf32>
    %263 = vector.shape_cast %262 : vector<1x64x32xf32> to vector<64x32xf32>
    %cst_93 = arith.constant dense<0.000000e+00> : vector<32x32xf32>
    %264 = tpu.matmul %261, %263, %cst_93 {dimension_numbers = #tpu.dot_dimension_numbers<[1], [0], [0], [1], [0, 0, 1, 1], [], []>} : vector<32x64xf32>, vector<64x32xf32>, vector<32x32xf32> -> vector<32x32xf32>
    %c0_94 = arith.constant 0 : index
    %c0_95 = arith.constant 0 : index
    %c0_96 = arith.constant 0 : index
    %265 = vector.load %arg13[%c0_94, %c0_95, %c0_96] : memref<2x1x32xf32, #tpu.memory_space<vmem>>, vector<1x1x32xf32>
    %266 = vector.shape_cast %265 : vector<1x1x32xf32> to vector<1x32xf32>
    %267 = vector.broadcast %266 : vector<1x32xf32> to vector<32x32xf32>
    %268 = arith.addf %264, %267 : vector<32x32xf32>
    %269 = arith.addf %268, %241 : vector<32x32xf32>
    %c0_97 = arith.constant 0 : index
    %c0_98 = arith.constant 0 : index
    %c0_99 = arith.constant 0 : index
    %270 = vector.load %arg14[%c0_97, %c0_98, %c0_99] : memref<2x1x32xf32, #tpu.memory_space<vmem>>, vector<1x1x32xf32>
    %271 = vector.shape_cast %270 : vector<1x1x32xf32> to vector<1x32xf32>
    %c0_100 = arith.constant 0 : index
    %c0_101 = arith.constant 0 : index
    %c0_102 = arith.constant 0 : index
    %272 = vector.load %arg15[%c0_100, %c0_101, %c0_102] : memref<2x1x32xf32, #tpu.memory_space<vmem>>, vector<1x1x32xf32>
    %273 = vector.shape_cast %272 : vector<1x1x32xf32> to vector<1x32xf32>
    %cst_103 = arith.constant dense<0.000000e+00> : vector<32xf32>
    %274 = vector.multi_reduction <add>, %269, %cst_103 [1] : vector<32x32xf32> to vector<32xf32>
    %275 = vector.shape_cast %274 : vector<32xf32> to vector<32x1xf32>
    %cst_104 = arith.constant 3.200000e+01 : f32
    %276 = vector.broadcast %cst_104 : f32 to vector<32x1xf32>
    %277 = arith.divf %275, %276 : vector<32x1xf32>
    %278 = vector.broadcast %277 : vector<32x1xf32> to vector<32x32xf32>
    %279 = arith.subf %269, %278 : vector<32x32xf32>
    %280 = vector.broadcast %277 : vector<32x1xf32> to vector<32x32xf32>
    %281 = arith.subf %269, %280 : vector<32x32xf32>
    %282 = arith.mulf %279, %281 : vector<32x32xf32>
    %cst_105 = arith.constant dense<0.000000e+00> : vector<32xf32>
    %283 = vector.multi_reduction <add>, %282, %cst_105 [1] : vector<32x32xf32> to vector<32xf32>
    %284 = vector.shape_cast %283 : vector<32xf32> to vector<32x1xf32>
    %cst_106 = arith.constant 3.200000e+01 : f32
    %285 = vector.broadcast %cst_106 : f32 to vector<32x1xf32>
    %286 = arith.divf %284, %285 : vector<32x1xf32>
    %287 = vector.broadcast %277 : vector<32x1xf32> to vector<32x32xf32>
    %288 = arith.subf %269, %287 : vector<32x32xf32>
    %cst_107 = arith.constant 9.99999996E-13 : f32
    %289 = vector.broadcast %cst_107 : f32 to vector<32x1xf32>
    %290 = arith.addf %286, %289 : vector<32x1xf32>
    %291 = math.rsqrt %290 : vector<32x1xf32>
    %292 = vector.broadcast %291 : vector<32x1xf32> to vector<32x32xf32>
    %293 = arith.mulf %288, %292 : vector<32x32xf32>
    %294 = vector.broadcast %271 : vector<1x32xf32> to vector<32x32xf32>
    %295 = arith.mulf %293, %294 : vector<32x32xf32>
    %296 = vector.broadcast %273 : vector<1x32xf32> to vector<32x32xf32>
    %297 = arith.addf %295, %296 : vector<32x32xf32>
    %c1_108 = arith.constant 1 : index
    %c0_109 = arith.constant 0 : index
    %c0_110 = arith.constant 0 : index
    %298 = vector.load %arg4[%c1_108, %c0_109, %c0_110] : memref<2x32x96xf32, #tpu.memory_space<vmem>>, vector<1x32x96xf32>
    %299 = vector.shape_cast %298 : vector<1x32x96xf32> to vector<32x96xf32>
    %cst_111 = arith.constant dense<0.000000e+00> : vector<32x96xf32>
    %300 = tpu.matmul %297, %299, %cst_111 {dimension_numbers = #tpu.dot_dimension_numbers<[1], [0], [0], [1], [0, 0, 1, 1], [], []>} : vector<32x32xf32>, vector<32x96xf32>, vector<32x96xf32> -> vector<32x96xf32>
    %c1_112 = arith.constant 1 : index
    %c0_113 = arith.constant 0 : index
    %c0_114 = arith.constant 0 : index
    %301 = vector.load %arg5[%c1_112, %c0_113, %c0_114] : memref<2x1x96xf32, #tpu.memory_space<vmem>>, vector<1x1x96xf32>
    %302 = vector.shape_cast %301 : vector<1x1x96xf32> to vector<1x96xf32>
    %303 = vector.broadcast %302 : vector<1x96xf32> to vector<32x96xf32>
    %304 = arith.addf %300, %303 : vector<32x96xf32>
    %305 = vector.extract_strided_slice %304 {offsets = [0, 0], sizes = [32, 32], strides = [1, 1]} : vector<32x96xf32> to vector<32x32xf32>
    %306 = vector.extract_strided_slice %304 {offsets = [0, 32], sizes = [32, 32], strides = [1, 1]} : vector<32x96xf32> to vector<32x32xf32>
    %307 = vector.extract_strided_slice %304 {offsets = [0, 64], sizes = [32, 32], strides = [1, 1]} : vector<32x96xf32> to vector<32x32xf32>
    %c0_115 = arith.constant 0 : index
    %c0_116 = arith.constant 0 : index
    %308 = vector.load %arg1[%c0_115, %c0_116] : memref<4x8xf32, #tpu.memory_space<vmem>>, vector<1x8xf32>
    %309 = vector.extract_strided_slice %305 {offsets = [0, 0], sizes = [8, 16], strides = [1, 1]} : vector<32x32xf32> to vector<8x16xf32>
    %cst_117 = arith.constant 2.500000e-01 : f32
    %310 = vector.broadcast %cst_117 : f32 to vector<8x16xf32>
    %311 = arith.mulf %309, %310 : vector<8x16xf32>
    %312 = vector.extract_strided_slice %306 {offsets = [0, 0], sizes = [8, 16], strides = [1, 1]} : vector<32x32xf32> to vector<8x16xf32>
    %313 = vector.extract_strided_slice %307 {offsets = [0, 0], sizes = [8, 16], strides = [1, 1]} : vector<32x32xf32> to vector<8x16xf32>
    %314 = tpu.transpose %312, [1, 0] : vector<8x16xf32> -> vector<16x8xf32>
    %cst_118 = arith.constant dense<0.000000e+00> : vector<8x8xf32>
    %315 = tpu.matmul %311, %314, %cst_118 {dimension_numbers = #tpu.dot_dimension_numbers<[1], [0], [0], [1], [0, 0, 1, 1], [], []>} : vector<8x16xf32>, vector<16x8xf32>, vector<8x8xf32> -> vector<8x8xf32>
    %316 = vector.broadcast %308 : vector<1x8xf32> to vector<8x8xf32>
    %317 = arith.addf %315, %316 : vector<8x8xf32>
    %cst_119 = arith.constant dense<0xFF800000> : vector<8xf32>
    %318 = vector.multi_reduction <maximumf>, %317, %cst_119 [1] : vector<8x8xf32> to vector<8xf32>
    %319 = vector.shape_cast %318 : vector<8xf32> to vector<8x1xf32>
    %320 = vector.broadcast %319 : vector<8x1xf32> to vector<8x8xf32>
    %321 = arith.subf %317, %320 : vector<8x8xf32>
    %322 = math.exp %321 : vector<8x8xf32>
    %cst_120 = arith.constant dense<0.000000e+00> : vector<8xf32>
    %323 = vector.multi_reduction <add>, %322, %cst_120 [1] : vector<8x8xf32> to vector<8xf32>
    %324 = vector.shape_cast %323 : vector<8xf32> to vector<8x1xf32>
    %325 = tpu.reciprocal %324 {approx = true} : vector<8x1xf32> -> vector<8x1xf32>
    %326 = vector.broadcast %325 : vector<8x1xf32> to vector<8x8xf32>
    %327 = arith.mulf %322, %326 : vector<8x8xf32>
    %cst_121 = arith.constant dense<0.000000e+00> : vector<8x16xf32>
    %328 = tpu.matmul %327, %313, %cst_121 {dimension_numbers = #tpu.dot_dimension_numbers<[1], [0], [0], [1], [0, 0, 1, 1], [], []>} : vector<8x8xf32>, vector<8x16xf32>, vector<8x16xf32> -> vector<8x16xf32>
    %329 = vector.extract_strided_slice %305 {offsets = [0, 16], sizes = [8, 16], strides = [1, 1]} : vector<32x32xf32> to vector<8x16xf32>
    %cst_122 = arith.constant 2.500000e-01 : f32
    %330 = vector.broadcast %cst_122 : f32 to vector<8x16xf32>
    %331 = arith.mulf %329, %330 : vector<8x16xf32>
    %332 = vector.extract_strided_slice %306 {offsets = [0, 16], sizes = [8, 16], strides = [1, 1]} : vector<32x32xf32> to vector<8x16xf32>
    %333 = vector.extract_strided_slice %307 {offsets = [0, 16], sizes = [8, 16], strides = [1, 1]} : vector<32x32xf32> to vector<8x16xf32>
    %334 = tpu.transpose %332, [1, 0] : vector<8x16xf32> -> vector<16x8xf32>
    %cst_123 = arith.constant dense<0.000000e+00> : vector<8x8xf32>
    %335 = tpu.matmul %331, %334, %cst_123 {dimension_numbers = #tpu.dot_dimension_numbers<[1], [0], [0], [1], [0, 0, 1, 1], [], []>} : vector<8x16xf32>, vector<16x8xf32>, vector<8x8xf32> -> vector<8x8xf32>
    %336 = vector.broadcast %308 : vector<1x8xf32> to vector<8x8xf32>
    %337 = arith.addf %335, %336 : vector<8x8xf32>
    %cst_124 = arith.constant dense<0xFF800000> : vector<8xf32>
    %338 = vector.multi_reduction <maximumf>, %337, %cst_124 [1] : vector<8x8xf32> to vector<8xf32>
    %339 = vector.shape_cast %338 : vector<8xf32> to vector<8x1xf32>
    %340 = vector.broadcast %339 : vector<8x1xf32> to vector<8x8xf32>
    %341 = arith.subf %337, %340 : vector<8x8xf32>
    %342 = math.exp %341 : vector<8x8xf32>
    %cst_125 = arith.constant dense<0.000000e+00> : vector<8xf32>
    %343 = vector.multi_reduction <add>, %342, %cst_125 [1] : vector<8x8xf32> to vector<8xf32>
    %344 = vector.shape_cast %343 : vector<8xf32> to vector<8x1xf32>
    %345 = tpu.reciprocal %344 {approx = true} : vector<8x1xf32> -> vector<8x1xf32>
    %346 = vector.broadcast %345 : vector<8x1xf32> to vector<8x8xf32>
    %347 = arith.mulf %342, %346 : vector<8x8xf32>
    %cst_126 = arith.constant dense<0.000000e+00> : vector<8x16xf32>
    %348 = tpu.matmul %347, %333, %cst_126 {dimension_numbers = #tpu.dot_dimension_numbers<[1], [0], [0], [1], [0, 0, 1, 1], [], []>} : vector<8x8xf32>, vector<8x16xf32>, vector<8x16xf32> -> vector<8x16xf32>
    %349 = tpu.concatenate %328, %348 in 1 : vector<8x16xf32>, vector<8x16xf32> -> vector<8x32xf32>
    %c1_127 = arith.constant 1 : index
    %c0_128 = arith.constant 0 : index
    %350 = vector.load %arg1[%c1_127, %c0_128] : memref<4x8xf32, #tpu.memory_space<vmem>>, vector<1x8xf32>
    %351 = vector.extract_strided_slice %305 {offsets = [8, 0], sizes = [8, 16], strides = [1, 1]} : vector<32x32xf32> to vector<8x16xf32>
    %cst_129 = arith.constant 2.500000e-01 : f32
    %352 = vector.broadcast %cst_129 : f32 to vector<8x16xf32>
    %353 = arith.mulf %351, %352 : vector<8x16xf32>
    %354 = vector.extract_strided_slice %306 {offsets = [8, 0], sizes = [8, 16], strides = [1, 1]} : vector<32x32xf32> to vector<8x16xf32>
    %355 = vector.extract_strided_slice %307 {offsets = [8, 0], sizes = [8, 16], strides = [1, 1]} : vector<32x32xf32> to vector<8x16xf32>
    %356 = tpu.transpose %354, [1, 0] : vector<8x16xf32> -> vector<16x8xf32>
    %cst_130 = arith.constant dense<0.000000e+00> : vector<8x8xf32>
    %357 = tpu.matmul %353, %356, %cst_130 {dimension_numbers = #tpu.dot_dimension_numbers<[1], [0], [0], [1], [0, 0, 1, 1], [], []>} : vector<8x16xf32>, vector<16x8xf32>, vector<8x8xf32> -> vector<8x8xf32>
    %358 = vector.broadcast %350 : vector<1x8xf32> to vector<8x8xf32>
    %359 = arith.addf %357, %358 : vector<8x8xf32>
    %cst_131 = arith.constant dense<0xFF800000> : vector<8xf32>
    %360 = vector.multi_reduction <maximumf>, %359, %cst_131 [1] : vector<8x8xf32> to vector<8xf32>
    %361 = vector.shape_cast %360 : vector<8xf32> to vector<8x1xf32>
    %362 = vector.broadcast %361 : vector<8x1xf32> to vector<8x8xf32>
    %363 = arith.subf %359, %362 : vector<8x8xf32>
    %364 = math.exp %363 : vector<8x8xf32>
    %cst_132 = arith.constant dense<0.000000e+00> : vector<8xf32>
    %365 = vector.multi_reduction <add>, %364, %cst_132 [1] : vector<8x8xf32> to vector<8xf32>
    %366 = vector.shape_cast %365 : vector<8xf32> to vector<8x1xf32>
    %367 = tpu.reciprocal %366 {approx = true} : vector<8x1xf32> -> vector<8x1xf32>
    %368 = vector.broadcast %367 : vector<8x1xf32> to vector<8x8xf32>
    %369 = arith.mulf %364, %368 : vector<8x8xf32>
    %cst_133 = arith.constant dense<0.000000e+00> : vector<8x16xf32>
    %370 = tpu.matmul %369, %355, %cst_133 {dimension_numbers = #tpu.dot_dimension_numbers<[1], [0], [0], [1], [0, 0, 1, 1], [], []>} : vector<8x8xf32>, vector<8x16xf32>, vector<8x16xf32> -> vector<8x16xf32>
    %371 = vector.extract_strided_slice %305 {offsets = [8, 16], sizes = [8, 16], strides = [1, 1]} : vector<32x32xf32> to vector<8x16xf32>
    %cst_134 = arith.constant 2.500000e-01 : f32
    %372 = vector.broadcast %cst_134 : f32 to vector<8x16xf32>
    %373 = arith.mulf %371, %372 : vector<8x16xf32>
    %374 = vector.extract_strided_slice %306 {offsets = [8, 16], sizes = [8, 16], strides = [1, 1]} : vector<32x32xf32> to vector<8x16xf32>
    %375 = vector.extract_strided_slice %307 {offsets = [8, 16], sizes = [8, 16], strides = [1, 1]} : vector<32x32xf32> to vector<8x16xf32>
    %376 = tpu.transpose %374, [1, 0] : vector<8x16xf32> -> vector<16x8xf32>
    %cst_135 = arith.constant dense<0.000000e+00> : vector<8x8xf32>
    %377 = tpu.matmul %373, %376, %cst_135 {dimension_numbers = #tpu.dot_dimension_numbers<[1], [0], [0], [1], [0, 0, 1, 1], [], []>} : vector<8x16xf32>, vector<16x8xf32>, vector<8x8xf32> -> vector<8x8xf32>
    %378 = vector.broadcast %350 : vector<1x8xf32> to vector<8x8xf32>
    %379 = arith.addf %377, %378 : vector<8x8xf32>
    %cst_136 = arith.constant dense<0xFF800000> : vector<8xf32>
    %380 = vector.multi_reduction <maximumf>, %379, %cst_136 [1] : vector<8x8xf32> to vector<8xf32>
    %381 = vector.shape_cast %380 : vector<8xf32> to vector<8x1xf32>
    %382 = vector.broadcast %381 : vector<8x1xf32> to vector<8x8xf32>
    %383 = arith.subf %379, %382 : vector<8x8xf32>
    %384 = math.exp %383 : vector<8x8xf32>
    %cst_137 = arith.constant dense<0.000000e+00> : vector<8xf32>
    %385 = vector.multi_reduction <add>, %384, %cst_137 [1] : vector<8x8xf32> to vector<8xf32>
    %386 = vector.shape_cast %385 : vector<8xf32> to vector<8x1xf32>
    %387 = tpu.reciprocal %386 {approx = true} : vector<8x1xf32> -> vector<8x1xf32>
    %388 = vector.broadcast %387 : vector<8x1xf32> to vector<8x8xf32>
    %389 = arith.mulf %384, %388 : vector<8x8xf32>
    %cst_138 = arith.constant dense<0.000000e+00> : vector<8x16xf32>
    %390 = tpu.matmul %389, %375, %cst_138 {dimension_numbers = #tpu.dot_dimension_numbers<[1], [0], [0], [1], [0, 0, 1, 1], [], []>} : vector<8x8xf32>, vector<8x16xf32>, vector<8x16xf32> -> vector<8x16xf32>
    %391 = tpu.concatenate %370, %390 in 1 : vector<8x16xf32>, vector<8x16xf32> -> vector<8x32xf32>
    %c2_139 = arith.constant 2 : index
    %c0_140 = arith.constant 0 : index
    %392 = vector.load %arg1[%c2_139, %c0_140] : memref<4x8xf32, #tpu.memory_space<vmem>>, vector<1x8xf32>
    %393 = vector.extract_strided_slice %305 {offsets = [16, 0], sizes = [8, 16], strides = [1, 1]} : vector<32x32xf32> to vector<8x16xf32>
    %cst_141 = arith.constant 2.500000e-01 : f32
    %394 = vector.broadcast %cst_141 : f32 to vector<8x16xf32>
    %395 = arith.mulf %393, %394 : vector<8x16xf32>
    %396 = vector.extract_strided_slice %306 {offsets = [16, 0], sizes = [8, 16], strides = [1, 1]} : vector<32x32xf32> to vector<8x16xf32>
    %397 = vector.extract_strided_slice %307 {offsets = [16, 0], sizes = [8, 16], strides = [1, 1]} : vector<32x32xf32> to vector<8x16xf32>
    %398 = tpu.transpose %396, [1, 0] : vector<8x16xf32> -> vector<16x8xf32>
    %cst_142 = arith.constant dense<0.000000e+00> : vector<8x8xf32>
    %399 = tpu.matmul %395, %398, %cst_142 {dimension_numbers = #tpu.dot_dimension_numbers<[1], [0], [0], [1], [0, 0, 1, 1], [], []>} : vector<8x16xf32>, vector<16x8xf32>, vector<8x8xf32> -> vector<8x8xf32>
    %400 = vector.broadcast %392 : vector<1x8xf32> to vector<8x8xf32>
    %401 = arith.addf %399, %400 : vector<8x8xf32>
    %cst_143 = arith.constant dense<0xFF800000> : vector<8xf32>
    %402 = vector.multi_reduction <maximumf>, %401, %cst_143 [1] : vector<8x8xf32> to vector<8xf32>
    %403 = vector.shape_cast %402 : vector<8xf32> to vector<8x1xf32>
    %404 = vector.broadcast %403 : vector<8x1xf32> to vector<8x8xf32>
    %405 = arith.subf %401, %404 : vector<8x8xf32>
    %406 = math.exp %405 : vector<8x8xf32>
    %cst_144 = arith.constant dense<0.000000e+00> : vector<8xf32>
    %407 = vector.multi_reduction <add>, %406, %cst_144 [1] : vector<8x8xf32> to vector<8xf32>
    %408 = vector.shape_cast %407 : vector<8xf32> to vector<8x1xf32>
    %409 = tpu.reciprocal %408 {approx = true} : vector<8x1xf32> -> vector<8x1xf32>
    %410 = vector.broadcast %409 : vector<8x1xf32> to vector<8x8xf32>
    %411 = arith.mulf %406, %410 : vector<8x8xf32>
    %cst_145 = arith.constant dense<0.000000e+00> : vector<8x16xf32>
    %412 = tpu.matmul %411, %397, %cst_145 {dimension_numbers = #tpu.dot_dimension_numbers<[1], [0], [0], [1], [0, 0, 1, 1], [], []>} : vector<8x8xf32>, vector<8x16xf32>, vector<8x16xf32> -> vector<8x16xf32>
    %413 = vector.extract_strided_slice %305 {offsets = [16, 16], sizes = [8, 16], strides = [1, 1]} : vector<32x32xf32> to vector<8x16xf32>
    %cst_146 = arith.constant 2.500000e-01 : f32
    %414 = vector.broadcast %cst_146 : f32 to vector<8x16xf32>
    %415 = arith.mulf %413, %414 : vector<8x16xf32>
    %416 = vector.extract_strided_slice %306 {offsets = [16, 16], sizes = [8, 16], strides = [1, 1]} : vector<32x32xf32> to vector<8x16xf32>
    %417 = vector.extract_strided_slice %307 {offsets = [16, 16], sizes = [8, 16], strides = [1, 1]} : vector<32x32xf32> to vector<8x16xf32>
    %418 = tpu.transpose %416, [1, 0] : vector<8x16xf32> -> vector<16x8xf32>
    %cst_147 = arith.constant dense<0.000000e+00> : vector<8x8xf32>
    %419 = tpu.matmul %415, %418, %cst_147 {dimension_numbers = #tpu.dot_dimension_numbers<[1], [0], [0], [1], [0, 0, 1, 1], [], []>} : vector<8x16xf32>, vector<16x8xf32>, vector<8x8xf32> -> vector<8x8xf32>
    %420 = vector.broadcast %392 : vector<1x8xf32> to vector<8x8xf32>
    %421 = arith.addf %419, %420 : vector<8x8xf32>
    %cst_148 = arith.constant dense<0xFF800000> : vector<8xf32>
    %422 = vector.multi_reduction <maximumf>, %421, %cst_148 [1] : vector<8x8xf32> to vector<8xf32>
    %423 = vector.shape_cast %422 : vector<8xf32> to vector<8x1xf32>
    %424 = vector.broadcast %423 : vector<8x1xf32> to vector<8x8xf32>
    %425 = arith.subf %421, %424 : vector<8x8xf32>
    %426 = math.exp %425 : vector<8x8xf32>
    %cst_149 = arith.constant dense<0.000000e+00> : vector<8xf32>
    %427 = vector.multi_reduction <add>, %426, %cst_149 [1] : vector<8x8xf32> to vector<8xf32>
    %428 = vector.shape_cast %427 : vector<8xf32> to vector<8x1xf32>
    %429 = tpu.reciprocal %428 {approx = true} : vector<8x1xf32> -> vector<8x1xf32>
    %430 = vector.broadcast %429 : vector<8x1xf32> to vector<8x8xf32>
    %431 = arith.mulf %426, %430 : vector<8x8xf32>
    %cst_150 = arith.constant dense<0.000000e+00> : vector<8x16xf32>
    %432 = tpu.matmul %431, %417, %cst_150 {dimension_numbers = #tpu.dot_dimension_numbers<[1], [0], [0], [1], [0, 0, 1, 1], [], []>} : vector<8x8xf32>, vector<8x16xf32>, vector<8x16xf32> -> vector<8x16xf32>
    %433 = tpu.concatenate %412, %432 in 1 : vector<8x16xf32>, vector<8x16xf32> -> vector<8x32xf32>
    %c3_151 = arith.constant 3 : index
    %c0_152 = arith.constant 0 : index
    %434 = vector.load %arg1[%c3_151, %c0_152] : memref<4x8xf32, #tpu.memory_space<vmem>>, vector<1x8xf32>
    %435 = vector.extract_strided_slice %305 {offsets = [24, 0], sizes = [8, 16], strides = [1, 1]} : vector<32x32xf32> to vector<8x16xf32>
    %cst_153 = arith.constant 2.500000e-01 : f32
    %436 = vector.broadcast %cst_153 : f32 to vector<8x16xf32>
    %437 = arith.mulf %435, %436 : vector<8x16xf32>
    %438 = vector.extract_strided_slice %306 {offsets = [24, 0], sizes = [8, 16], strides = [1, 1]} : vector<32x32xf32> to vector<8x16xf32>
    %439 = vector.extract_strided_slice %307 {offsets = [24, 0], sizes = [8, 16], strides = [1, 1]} : vector<32x32xf32> to vector<8x16xf32>
    %440 = tpu.transpose %438, [1, 0] : vector<8x16xf32> -> vector<16x8xf32>
    %cst_154 = arith.constant dense<0.000000e+00> : vector<8x8xf32>
    %441 = tpu.matmul %437, %440, %cst_154 {dimension_numbers = #tpu.dot_dimension_numbers<[1], [0], [0], [1], [0, 0, 1, 1], [], []>} : vector<8x16xf32>, vector<16x8xf32>, vector<8x8xf32> -> vector<8x8xf32>
    %442 = vector.broadcast %434 : vector<1x8xf32> to vector<8x8xf32>
    %443 = arith.addf %441, %442 : vector<8x8xf32>
    %cst_155 = arith.constant dense<0xFF800000> : vector<8xf32>
    %444 = vector.multi_reduction <maximumf>, %443, %cst_155 [1] : vector<8x8xf32> to vector<8xf32>
    %445 = vector.shape_cast %444 : vector<8xf32> to vector<8x1xf32>
    %446 = vector.broadcast %445 : vector<8x1xf32> to vector<8x8xf32>
    %447 = arith.subf %443, %446 : vector<8x8xf32>
    %448 = math.exp %447 : vector<8x8xf32>
    %cst_156 = arith.constant dense<0.000000e+00> : vector<8xf32>
    %449 = vector.multi_reduction <add>, %448, %cst_156 [1] : vector<8x8xf32> to vector<8xf32>
    %450 = vector.shape_cast %449 : vector<8xf32> to vector<8x1xf32>
    %451 = tpu.reciprocal %450 {approx = true} : vector<8x1xf32> -> vector<8x1xf32>
    %452 = vector.broadcast %451 : vector<8x1xf32> to vector<8x8xf32>
    %453 = arith.mulf %448, %452 : vector<8x8xf32>
    %cst_157 = arith.constant dense<0.000000e+00> : vector<8x16xf32>
    %454 = tpu.matmul %453, %439, %cst_157 {dimension_numbers = #tpu.dot_dimension_numbers<[1], [0], [0], [1], [0, 0, 1, 1], [], []>} : vector<8x8xf32>, vector<8x16xf32>, vector<8x16xf32> -> vector<8x16xf32>
    %455 = vector.extract_strided_slice %305 {offsets = [24, 16], sizes = [8, 16], strides = [1, 1]} : vector<32x32xf32> to vector<8x16xf32>
    %cst_158 = arith.constant 2.500000e-01 : f32
    %456 = vector.broadcast %cst_158 : f32 to vector<8x16xf32>
    %457 = arith.mulf %455, %456 : vector<8x16xf32>
    %458 = vector.extract_strided_slice %306 {offsets = [24, 16], sizes = [8, 16], strides = [1, 1]} : vector<32x32xf32> to vector<8x16xf32>
    %459 = vector.extract_strided_slice %307 {offsets = [24, 16], sizes = [8, 16], strides = [1, 1]} : vector<32x32xf32> to vector<8x16xf32>
    %460 = tpu.transpose %458, [1, 0] : vector<8x16xf32> -> vector<16x8xf32>
    %cst_159 = arith.constant dense<0.000000e+00> : vector<8x8xf32>
    %461 = tpu.matmul %457, %460, %cst_159 {dimension_numbers = #tpu.dot_dimension_numbers<[1], [0], [0], [1], [0, 0, 1, 1], [], []>} : vector<8x16xf32>, vector<16x8xf32>, vector<8x8xf32> -> vector<8x8xf32>
    %462 = vector.broadcast %434 : vector<1x8xf32> to vector<8x8xf32>
    %463 = arith.addf %461, %462 : vector<8x8xf32>
    %cst_160 = arith.constant dense<0xFF800000> : vector<8xf32>
    %464 = vector.multi_reduction <maximumf>, %463, %cst_160 [1] : vector<8x8xf32> to vector<8xf32>
    %465 = vector.shape_cast %464 : vector<8xf32> to vector<8x1xf32>
    %466 = vector.broadcast %465 : vector<8x1xf32> to vector<8x8xf32>
    %467 = arith.subf %463, %466 : vector<8x8xf32>
    %468 = math.exp %467 : vector<8x8xf32>
    %cst_161 = arith.constant dense<0.000000e+00> : vector<8xf32>
    %469 = vector.multi_reduction <add>, %468, %cst_161 [1] : vector<8x8xf32> to vector<8xf32>
    %470 = vector.shape_cast %469 : vector<8xf32> to vector<8x1xf32>
    %471 = tpu.reciprocal %470 {approx = true} : vector<8x1xf32> -> vector<8x1xf32>
    %472 = vector.broadcast %471 : vector<8x1xf32> to vector<8x8xf32>
    %473 = arith.mulf %468, %472 : vector<8x8xf32>
    %cst_162 = arith.constant dense<0.000000e+00> : vector<8x16xf32>
    %474 = tpu.matmul %473, %459, %cst_162 {dimension_numbers = #tpu.dot_dimension_numbers<[1], [0], [0], [1], [0, 0, 1, 1], [], []>} : vector<8x8xf32>, vector<8x16xf32>, vector<8x16xf32> -> vector<8x16xf32>
    %475 = tpu.concatenate %454, %474 in 1 : vector<8x16xf32>, vector<8x16xf32> -> vector<8x32xf32>
    %476 = tpu.concatenate %349, %391, %433, %475 in 0 : vector<8x32xf32>, vector<8x32xf32>, vector<8x32xf32>, vector<8x32xf32> -> vector<32x32xf32>
    %c1_163 = arith.constant 1 : index
    %c0_164 = arith.constant 0 : index
    %c0_165 = arith.constant 0 : index
    %477 = vector.load %arg6[%c1_163, %c0_164, %c0_165] : memref<2x32x32xf32, #tpu.memory_space<vmem>>, vector<1x32x32xf32>
    %478 = vector.shape_cast %477 : vector<1x32x32xf32> to vector<32x32xf32>
    %cst_166 = arith.constant dense<0.000000e+00> : vector<32x32xf32>
    %479 = tpu.matmul %476, %478, %cst_166 {dimension_numbers = #tpu.dot_dimension_numbers<[1], [0], [0], [1], [0, 0, 1, 1], [], []>} : vector<32x32xf32>, vector<32x32xf32>, vector<32x32xf32> -> vector<32x32xf32>
    %c1_167 = arith.constant 1 : index
    %c0_168 = arith.constant 0 : index
    %c0_169 = arith.constant 0 : index
    %480 = vector.load %arg7[%c1_167, %c0_168, %c0_169] : memref<2x1x32xf32, #tpu.memory_space<vmem>>, vector<1x1x32xf32>
    %481 = vector.shape_cast %480 : vector<1x1x32xf32> to vector<1x32xf32>
    %482 = vector.broadcast %481 : vector<1x32xf32> to vector<32x32xf32>
    %483 = arith.addf %479, %482 : vector<32x32xf32>
    %484 = arith.addf %483, %297 : vector<32x32xf32>
    %c1_170 = arith.constant 1 : index
    %c0_171 = arith.constant 0 : index
    %c0_172 = arith.constant 0 : index
    %485 = vector.load %arg8[%c1_170, %c0_171, %c0_172] : memref<2x1x32xf32, #tpu.memory_space<vmem>>, vector<1x1x32xf32>
    %486 = vector.shape_cast %485 : vector<1x1x32xf32> to vector<1x32xf32>
    %c1_173 = arith.constant 1 : index
    %c0_174 = arith.constant 0 : index
    %c0_175 = arith.constant 0 : index
    %487 = vector.load %arg9[%c1_173, %c0_174, %c0_175] : memref<2x1x32xf32, #tpu.memory_space<vmem>>, vector<1x1x32xf32>
    %488 = vector.shape_cast %487 : vector<1x1x32xf32> to vector<1x32xf32>
    %cst_176 = arith.constant dense<0.000000e+00> : vector<32xf32>
    %489 = vector.multi_reduction <add>, %484, %cst_176 [1] : vector<32x32xf32> to vector<32xf32>
    %490 = vector.shape_cast %489 : vector<32xf32> to vector<32x1xf32>
    %cst_177 = arith.constant 3.200000e+01 : f32
    %491 = vector.broadcast %cst_177 : f32 to vector<32x1xf32>
    %492 = arith.divf %490, %491 : vector<32x1xf32>
    %493 = vector.broadcast %492 : vector<32x1xf32> to vector<32x32xf32>
    %494 = arith.subf %484, %493 : vector<32x32xf32>
    %495 = vector.broadcast %492 : vector<32x1xf32> to vector<32x32xf32>
    %496 = arith.subf %484, %495 : vector<32x32xf32>
    %497 = arith.mulf %494, %496 : vector<32x32xf32>
    %cst_178 = arith.constant dense<0.000000e+00> : vector<32xf32>
    %498 = vector.multi_reduction <add>, %497, %cst_178 [1] : vector<32x32xf32> to vector<32xf32>
    %499 = vector.shape_cast %498 : vector<32xf32> to vector<32x1xf32>
    %cst_179 = arith.constant 3.200000e+01 : f32
    %500 = vector.broadcast %cst_179 : f32 to vector<32x1xf32>
    %501 = arith.divf %499, %500 : vector<32x1xf32>
    %502 = vector.broadcast %492 : vector<32x1xf32> to vector<32x32xf32>
    %503 = arith.subf %484, %502 : vector<32x32xf32>
    %cst_180 = arith.constant 9.99999996E-13 : f32
    %504 = vector.broadcast %cst_180 : f32 to vector<32x1xf32>
    %505 = arith.addf %501, %504 : vector<32x1xf32>
    %506 = math.rsqrt %505 : vector<32x1xf32>
    %507 = vector.broadcast %506 : vector<32x1xf32> to vector<32x32xf32>
    %508 = arith.mulf %503, %507 : vector<32x32xf32>
    %509 = vector.broadcast %486 : vector<1x32xf32> to vector<32x32xf32>
    %510 = arith.mulf %508, %509 : vector<32x32xf32>
    %511 = vector.broadcast %488 : vector<1x32xf32> to vector<32x32xf32>
    %512 = arith.addf %510, %511 : vector<32x32xf32>
    %c1_181 = arith.constant 1 : index
    %c0_182 = arith.constant 0 : index
    %c0_183 = arith.constant 0 : index
    %513 = vector.load %arg10[%c1_181, %c0_182, %c0_183] : memref<2x32x64xf32, #tpu.memory_space<vmem>>, vector<1x32x64xf32>
    %514 = vector.shape_cast %513 : vector<1x32x64xf32> to vector<32x64xf32>
    %cst_184 = arith.constant dense<0.000000e+00> : vector<32x64xf32>
    %515 = tpu.matmul %512, %514, %cst_184 {dimension_numbers = #tpu.dot_dimension_numbers<[1], [0], [0], [1], [0, 0, 1, 1], [], []>} : vector<32x32xf32>, vector<32x64xf32>, vector<32x64xf32> -> vector<32x64xf32>
    %c1_185 = arith.constant 1 : index
    %c0_186 = arith.constant 0 : index
    %c0_187 = arith.constant 0 : index
    %516 = vector.load %arg11[%c1_185, %c0_186, %c0_187] : memref<2x1x64xf32, #tpu.memory_space<vmem>>, vector<1x1x64xf32>
    %517 = vector.shape_cast %516 : vector<1x1x64xf32> to vector<1x64xf32>
    %518 = vector.broadcast %517 : vector<1x64xf32> to vector<32x64xf32>
    %519 = arith.addf %515, %518 : vector<32x64xf32>
    %cst_188 = arith.constant 5.000000e-01 : f32
    %520 = vector.broadcast %cst_188 : f32 to vector<32x64xf32>
    %521 = arith.mulf %520, %519 : vector<32x64xf32>
    %cst_189 = arith.constant 4.471500e-02 : f32
    %522 = vector.broadcast %cst_189 : f32 to vector<32x64xf32>
    %523 = arith.mulf %522, %519 : vector<32x64xf32>
    %524 = arith.mulf %523, %519 : vector<32x64xf32>
    %525 = arith.mulf %524, %519 : vector<32x64xf32>
    %526 = arith.addf %519, %525 : vector<32x64xf32>
    %cst_190 = arith.constant 0.797884583 : f32
    %527 = vector.broadcast %cst_190 : f32 to vector<32x64xf32>
    %528 = arith.mulf %527, %526 : vector<32x64xf32>
    %529 = math.tanh %528 : vector<32x64xf32>
    %cst_191 = arith.constant 1.000000e+00 : f32
    %530 = vector.broadcast %cst_191 : f32 to vector<32x64xf32>
    %531 = arith.addf %530, %529 : vector<32x64xf32>
    %532 = arith.mulf %521, %531 : vector<32x64xf32>
    %c1_192 = arith.constant 1 : index
    %c0_193 = arith.constant 0 : index
    %c0_194 = arith.constant 0 : index
    %533 = vector.load %arg12[%c1_192, %c0_193, %c0_194] : memref<2x64x32xf32, #tpu.memory_space<vmem>>, vector<1x64x32xf32>
    %534 = vector.shape_cast %533 : vector<1x64x32xf32> to vector<64x32xf32>
    %cst_195 = arith.constant dense<0.000000e+00> : vector<32x32xf32>
    %535 = tpu.matmul %532, %534, %cst_195 {dimension_numbers = #tpu.dot_dimension_numbers<[1], [0], [0], [1], [0, 0, 1, 1], [], []>} : vector<32x64xf32>, vector<64x32xf32>, vector<32x32xf32> -> vector<32x32xf32>
    %c1_196 = arith.constant 1 : index
    %c0_197 = arith.constant 0 : index
    %c0_198 = arith.constant 0 : index
    %536 = vector.load %arg13[%c1_196, %c0_197, %c0_198] : memref<2x1x32xf32, #tpu.memory_space<vmem>>, vector<1x1x32xf32>
    %537 = vector.shape_cast %536 : vector<1x1x32xf32> to vector<1x32xf32>
    %538 = vector.broadcast %537 : vector<1x32xf32> to vector<32x32xf32>
    %539 = arith.addf %535, %538 : vector<32x32xf32>
    %540 = arith.addf %539, %512 : vector<32x32xf32>
    %c1_199 = arith.constant 1 : index
    %c0_200 = arith.constant 0 : index
    %c0_201 = arith.constant 0 : index
    %541 = vector.load %arg14[%c1_199, %c0_200, %c0_201] : memref<2x1x32xf32, #tpu.memory_space<vmem>>, vector<1x1x32xf32>
    %542 = vector.shape_cast %541 : vector<1x1x32xf32> to vector<1x32xf32>
    %c1_202 = arith.constant 1 : index
    %c0_203 = arith.constant 0 : index
    %c0_204 = arith.constant 0 : index
    %543 = vector.load %arg15[%c1_202, %c0_203, %c0_204] : memref<2x1x32xf32, #tpu.memory_space<vmem>>, vector<1x1x32xf32>
    %544 = vector.shape_cast %543 : vector<1x1x32xf32> to vector<1x32xf32>
    %cst_205 = arith.constant dense<0.000000e+00> : vector<32xf32>
    %545 = vector.multi_reduction <add>, %540, %cst_205 [1] : vector<32x32xf32> to vector<32xf32>
    %546 = vector.shape_cast %545 : vector<32xf32> to vector<32x1xf32>
    %cst_206 = arith.constant 3.200000e+01 : f32
    %547 = vector.broadcast %cst_206 : f32 to vector<32x1xf32>
    %548 = arith.divf %546, %547 : vector<32x1xf32>
    %549 = vector.broadcast %548 : vector<32x1xf32> to vector<32x32xf32>
    %550 = arith.subf %540, %549 : vector<32x32xf32>
    %551 = vector.broadcast %548 : vector<32x1xf32> to vector<32x32xf32>
    %552 = arith.subf %540, %551 : vector<32x32xf32>
    %553 = arith.mulf %550, %552 : vector<32x32xf32>
    %cst_207 = arith.constant dense<0.000000e+00> : vector<32xf32>
    %554 = vector.multi_reduction <add>, %553, %cst_207 [1] : vector<32x32xf32> to vector<32xf32>
    %555 = vector.shape_cast %554 : vector<32xf32> to vector<32x1xf32>
    %cst_208 = arith.constant 3.200000e+01 : f32
    %556 = vector.broadcast %cst_208 : f32 to vector<32x1xf32>
    %557 = arith.divf %555, %556 : vector<32x1xf32>
    %558 = vector.broadcast %548 : vector<32x1xf32> to vector<32x32xf32>
    %559 = arith.subf %540, %558 : vector<32x32xf32>
    %cst_209 = arith.constant 9.99999996E-13 : f32
    %560 = vector.broadcast %cst_209 : f32 to vector<32x1xf32>
    %561 = arith.addf %557, %560 : vector<32x1xf32>
    %562 = math.rsqrt %561 : vector<32x1xf32>
    %563 = vector.broadcast %562 : vector<32x1xf32> to vector<32x32xf32>
    %564 = arith.mulf %559, %563 : vector<32x32xf32>
    %565 = vector.broadcast %542 : vector<1x32xf32> to vector<32x32xf32>
    %566 = arith.mulf %564, %565 : vector<32x32xf32>
    %567 = vector.broadcast %544 : vector<1x32xf32> to vector<32x32xf32>
    %568 = arith.addf %566, %567 : vector<32x32xf32>
    %569 = vector.extract_strided_slice %568 {offsets = [0, 0], sizes = [1, 32], strides = [1, 1]} : vector<32x32xf32> to vector<1x32xf32>
    %570 = vector.extract_strided_slice %568 {offsets = [16, 0], sizes = [1, 32], strides = [1, 1]} : vector<32x32xf32> to vector<1x32xf32>
    %571 = arith.mulf %569, %569 : vector<1x32xf32>
    %cst_210 = arith.constant dense<0.000000e+00> : vector<1xf32>
    %572 = vector.multi_reduction <add>, %571, %cst_210 [1] : vector<1x32xf32> to vector<1xf32>
    %573 = vector.shape_cast %572 : vector<1xf32> to vector<1x1xf32>
    %574 = math.sqrt %573 : vector<1x1xf32>
    %cst_211 = arith.constant 9.99999996E-13 : f32
    %575 = vector.broadcast %cst_211 : f32 to vector<1x1xf32>
    %576 = arith.maximumf %574, %575 : vector<1x1xf32>
    %577 = vector.broadcast %576 : vector<1x1xf32> to vector<1x32xf32>
    %578 = arith.divf %569, %577 : vector<1x32xf32>
    %579 = arith.mulf %570, %570 : vector<1x32xf32>
    %cst_212 = arith.constant dense<0.000000e+00> : vector<1xf32>
    %580 = vector.multi_reduction <add>, %579, %cst_212 [1] : vector<1x32xf32> to vector<1xf32>
    %581 = vector.shape_cast %580 : vector<1xf32> to vector<1x1xf32>
    %582 = math.sqrt %581 : vector<1x1xf32>
    %cst_213 = arith.constant 9.99999996E-13 : f32
    %583 = vector.broadcast %cst_213 : f32 to vector<1x1xf32>
    %584 = arith.maximumf %582, %583 : vector<1x1xf32>
    %585 = vector.broadcast %584 : vector<1x1xf32> to vector<1x32xf32>
    %586 = arith.divf %570, %585 : vector<1x32xf32>
    %587 = arith.mulf %578, %586 : vector<1x32xf32>
    %cst_214 = arith.constant dense<0.000000e+00> : vector<1xf32>
    %588 = vector.multi_reduction <add>, %587, %cst_214 [1] : vector<1x32xf32> to vector<1xf32>
    %589 = vector.shape_cast %588 : vector<1xf32> to vector<1x1xf32>
    %cst_215 = arith.constant 1.000000e+00 : f32
    %590 = vector.broadcast %cst_215 : f32 to vector<1x1xf32>
    %591 = arith.subf %590, %589 : vector<1x1xf32>
    %c0_216 = arith.constant 0 : index
    %c0_217 = arith.constant 0 : index
    %592 = vector.load %arg16[%c0_216, %c0_217] : memref<2x1xf32, #tpu.memory_space<vmem>>, vector<1x1xf32>
    tpu.vector_store %arg16[%c0_216, %c0_217], %591 {strides = array<i32>} : memref<2x1xf32, #tpu.memory_space<vmem>>, vector<1x1xf32>,
    %593 = vector.extract_strided_slice %568 {offsets = [8, 0], sizes = [1, 32], strides = [1, 1]} : vector<32x32xf32> to vector<1x32xf32>
    %594 = vector.extract_strided_slice %568 {offsets = [24, 0], sizes = [1, 32], strides = [1, 1]} : vector<32x32xf32> to vector<1x32xf32>
    %595 = arith.mulf %593, %593 : vector<1x32xf32>
    %cst_218 = arith.constant dense<0.000000e+00> : vector<1xf32>
    %596 = vector.multi_reduction <add>, %595, %cst_218 [1] : vector<1x32xf32> to vector<1xf32>
    %597 = vector.shape_cast %596 : vector<1xf32> to vector<1x1xf32>
    %598 = math.sqrt %597 : vector<1x1xf32>
    %cst_219 = arith.constant 9.99999996E-13 : f32
    %599 = vector.broadcast %cst_219 : f32 to vector<1x1xf32>
    %600 = arith.maximumf %598, %599 : vector<1x1xf32>
    %601 = vector.broadcast %600 : vector<1x1xf32> to vector<1x32xf32>
    %602 = arith.divf %593, %601 : vector<1x32xf32>
    %603 = arith.mulf %594, %594 : vector<1x32xf32>
    %cst_220 = arith.constant dense<0.000000e+00> : vector<1xf32>
    %604 = vector.multi_reduction <add>, %603, %cst_220 [1] : vector<1x32xf32> to vector<1xf32>
    %605 = vector.shape_cast %604 : vector<1xf32> to vector<1x1xf32>
    %606 = math.sqrt %605 : vector<1x1xf32>
    %cst_221 = arith.constant 9.99999996E-13 : f32
    %607 = vector.broadcast %cst_221 : f32 to vector<1x1xf32>
    %608 = arith.maximumf %606, %607 : vector<1x1xf32>
    %609 = vector.broadcast %608 : vector<1x1xf32> to vector<1x32xf32>
    %610 = arith.divf %594, %609 : vector<1x32xf32>
    %611 = arith.mulf %602, %610 : vector<1x32xf32>
    %cst_222 = arith.constant dense<0.000000e+00> : vector<1xf32>
    %612 = vector.multi_reduction <add>, %611, %cst_222 [1] : vector<1x32xf32> to vector<1xf32>
    %613 = vector.shape_cast %612 : vector<1xf32> to vector<1x1xf32>
    %cst_223 = arith.constant 1.000000e+00 : f32
    %614 = vector.broadcast %cst_223 : f32 to vector<1x1xf32>
    %615 = arith.subf %614, %613 : vector<1x1xf32>
    %c1_224 = arith.constant 1 : index
    %c0_225 = arith.constant 0 : index
    %616 = vector.load %arg16[%c1_224, %c0_225] : memref<2x1xf32, #tpu.memory_space<vmem>>, vector<1x1xf32>
    tpu.vector_store %arg16[%c1_224, %c0_225], %615 {strides = array<i32>} : memref<2x1xf32, #tpu.memory_space<vmem>>, vector<1x1xf32>,
    return
  }
}

</mosaic_0001>

<bundles_post_ra>
// kernel: tpu_custom_call.1
= control target key start
LH: loop header
LB: loop body
LE: loop exit
PB: predicated region body
PF: predicated region fallthrough
CT: control target
= control target key end

     0   :  { %s5873_s0 = inlined_call_operand.hbm [shape: f32[32,32], index: 0, kind: input, shape index: {}]   ;;  %s5874_s1 = inlined_call_operand.hbm [shape: f32[4,8], index: 1, kind: input, shape index: {}]   ;;  %s5875_s2 = inlined_call_operand.vmem [shape: f32[1,32], index: 2, kind: input, shape index: {}]   ;;  %s5876_s3 = inlined_call_operand.hbm [shape: f32[1,32], index: 3, kind: input, shape index: {}]   ;;  %s5877_s4 = inlined_call_operand.vmem [shape: f32[2,32,96], index: 4, kind: input, shape index: {}]   ;;  %s5878_s5 = inlined_call_operand.vmem [shape: f32[2,1,96], index: 5, kind: input, shape index: {}]   ;;  %s5879_s6 = inlined_call_operand.vmem [shape: f32[2,32,32], index: 6, kind: input, shape index: {}]   ;;  %s5880_s7 = inlined_call_operand.vmem [shape: f32[2,1,32], index: 7, kind: input, shape index: {}]   ;;  %s5881_s8 = inlined_call_operand.vmem [shape: f32[2,1,32], index: 8, kind: input, shape index: {}]   ;;  %s5882_s9 = inlined_call_operand.vmem [shape: f32[2,1,32], index: 9, kind: input, shape index: {}]   ;;  %s5883_s10 = inlined_call_operand.vmem [shape: f32[2,32,64], index: 10, kind: input, shape index: {}]   ;;  %s5884_s11 = inlined_call_operand.vmem [shape: f32[2,1,64], index: 11, kind: input, shape index: {}]   ;;  %s5885_s12 = inlined_call_operand.vmem [shape: f32[2,64,32], index: 12, kind: input, shape index: {}]   ;;  %s5886_s13 = inlined_call_operand.vmem [shape: f32[2,1,32], index: 13, kind: input, shape index: {}]   ;;  %s5887_s14 = inlined_call_operand.vmem [shape: f32[2,1,32], index: 14, kind: input, shape index: {}]   ;;  %s5888_s15 = inlined_call_operand.vmem [shape: f32[2,1,32], index: 15, kind: input, shape index: {}]   ;;  %s5889_s16 = inlined_call_operand.vmem [shape: f32[2,1], index: 16, kind: output, shape index: {}]  }
   0x1   :  { %5891 = sst [smem:[#allocation9_spill]] %s5873_s0 }
   0x2   :  { %21 = vsyncpa [#allocation3], 0 }
   0x3   :  { %22 = vsyncpa [#allocation5], 0  ;;  %s5082_s21 = smov [#allocation4]   ;;  %s5083_s23 = smov [#allocation2]  }
   0x4   :  { %s41_s22 = sshll.u32 %s5082_s21, 4  ;;  %s28_s24 = sshll.u32 %s5083_s23, 4  ;;  %s42_s22 = int_to_ptr.vmem [resolvable:$true] %s41_s22  ;;  %s5180_s24 = int_to_ptr.vmem [resolvable:$true] %s28_s24 }
   0x5   :  { %s5012_s27 = scalar_lea.hbm %s5874_s1, 64 }
   0x6   :  { %p5013_p0 = scmp.ne.s32.totalorder %s5874_s1, %s5012_s27  ;;  %p5016_p1 = scmp.lt.u32.totalorder %s5012_s27, %s5874_s1 }
   0x8   :  { %p5018_p2 = pnand %p5016_p1, %p5013_p0 }
   0xa   :  { %5021 = shalt.err (!%p5018_p2)
}
   0xb   :  { %s5022_s17 = scalar_lea.vmem %s42_s22, 64  ;;  %p5027_p4 = scmp.lt.s32.totalorder %s42_s22, %s42_s22 }
   0xc   :  { %p5023_p3 = scmp.ne.s32.totalorder %s42_s22, %s5022_s17  ;;  %p5028_p5 = scmp.lt.s32.totalorder %s5022_s17, %s5022_s17 }
   0xe   :  { %p5029_p6 = por %p5028_p5, %p5027_p4 }
  0x10   :  { %p5030_p7 = pnand %p5029_p6, %p5023_p3 }
  0x12   :  { %5033 = shalt.err (!%p5030_p7)
}
  0x13   :  { %44 = dma.hbm_to_vmem [thread:$0]  %s5874_s1, 64, %s42_s22, [#allocation5]  }
  0x14   :  { %s5892_s23 = sld [smem:[#allocation9_spill]] }
  0x1a   :  { %s5034_s25 = scalar_lea.hbm %s5892_s23, 512 }
  0x1b   :  { %p5035_p8 = scmp.ne.s32.totalorder %s5892_s23, %s5034_s25  ;;  %p5038_p9 = scmp.lt.u32.totalorder %s5034_s25, %s5892_s23 }
  0x1d   :  { %p5040_p10 = pnand %p5038_p9, %p5035_p8 }
  0x1f   :  { %5043 = shalt.err (!%p5040_p10)
}
  0x20   :  { %s5044_s30 = scalar_lea.vmem %s5180_s24, 512  ;;  %p5049_p12 = scmp.lt.s32.totalorder %s5180_s24, %s5180_s24 }
  0x21   :  { %p5045_p11 = scmp.ne.s32.totalorder %s5180_s24, %s5044_s30  ;;  %p5050_p13 = scmp.lt.s32.totalorder %s5044_s30, %s5044_s30 }
  0x23   :  { %p5051_p0 = por %p5050_p13, %p5049_p12 }
  0x25   :  { %p5052_p1 = pnand %p5051_p0, %p5045_p11 }
  0x27   :  { %5055 = shalt.err (!%p5052_p1)
}
  0x28   :  { %s5084_s1 = smov 128   ;;  %s5085_s22 = smov 8  }
  0x29   :  { %34 = dma.hbm_to_vmem [thread:$0]  %s5892_s23, 512, %s5180_s24, [#allocation3], %s5084_s1, %s5084_s1, %s5085_s22  }
  0x2a   :  { %s5086_s18 = smov [#allocation6]   ;;  %s5056_s25 = scalar_lea.hbm %s5876_s3, 16 }
  0x2b   :  { %s53_s19 = sshll.u32 %s5086_s18, 4  ;;  %p5057_p2 = scmp.ne.s32.totalorder %s5876_s3, %s5056_s25  ;;  %s54_s19 = int_to_ptr.vmem [resolvable:$true] %s53_s19 }
  0x2c   :  { %p5060_p3 = scmp.lt.u32.totalorder %s5056_s25, %s5876_s3 }
  0x2e   :  { %p5062_p4 = pnand %p5060_p3, %p5057_p2 }
  0x30   :  { %5065 = shalt.err (!%p5062_p4)
}
  0x31   :  { %s5066_s30 = scalar_lea.vmem %s54_s19, 16  ;;  %s5070_s24 = scalar_lea.vmem %s54_s19, 32 }
  0x32   :  { %p5067_p5 = scmp.ne.s32.totalorder %s54_s19, %s5066_s30  ;;  %p5071_p6 = scmp.lt.s32.totalorder %s54_s19, %s54_s19 }
  0x33   :  { %p5072_p7 = scmp.lt.s32.totalorder %s5070_s24, %s5066_s30 }
  0x35   :  { %p5073_p8 = por %p5072_p7, %p5071_p6 }
  0x37   :  { %p5074_p9 = pnand %p5073_p8, %p5067_p5 }
  0x39   :  { %5077 = shalt.err (!%p5074_p9)
}
  0x3a   :  { %56 = dma.hbm_to_vmem [thread:$0]  %s5876_s3, 16, %s54_s19, [#allocation5]  }
  0x3b   :  { %5078 = dma.done.wait [#allocation3], 512  }
  0x3c   :  { %5079 = vsyncadd [#allocation3], 4294966784 }
  0x3d   :  { %5080 = dma.done.wait [#allocation5], 80  }
  0x3e   :  { %5081 = vsyncadd [#allocation5], 4294967216  ;;  %vm96_vm0 = vcmask 261120   ;;  %v90_v0 = vld [vmem:[#allocation2] sm:$0xff]  ;;  %v91_v1 = vld [vmem:[#allocation2 + $0x8] sm:$0xff]  ;;  %v5087_v57 = vmov 0.0  }
  0x3f   :  { %v97_v2 = vsel %vm96_vm0, %v90_v0, 0.0  ;;  %v100_v3 = vsel %vm96_vm0, %v91_v1, 0.0  ;;  %v92_v4 = vld [vmem:[#allocation2 + $0x10] sm:$0xff]  ;;  %v93_v15 = vld [vmem:[#allocation2 + $0x18] sm:$0xff]  ;;  %v170_v18 = vld [vmem:[%s5877_s4] sm:$0xff]  ;;  %4510 = vmatprep.subr.mxu1 %v5087_v57  ;;  %vm5088_vm1 = vmmov 0  }
  0x40   :  { %98 = vadd.xlane.f32.xlu0 %v97_v2  ;;  %v103_v5 = vsel %vm96_vm0, %v92_v4, 0.0  ;;  %v106_v17 = vsel %vm96_vm0, %v93_v15, 0.0  ;;  %v171_v19 = vld [vmem:[%s5877_s4 + $0x8] sm:$0xff]  ;;  %v172_v22 = vld [vmem:[%s5877_s4 + $0x10] sm:$0xff]  ;;  %v173_v23 = vld [vmem:[%s5877_s4 + $0x18] sm:$0xff]  ;;  %4512 = vmatprep.mubr.msk.f32.mxu1 %vm5088_vm1, %v5087_v57  ;;  %s5089_s27 = smov 96  }
  0x41   :  { %v4779_v20 = vpack.c.bf16 %v171_v19, %v170_v18  ;;  %v4783_v24 = vpack.c.bf16 %v173_v23, %v172_v22  ;;  %v4225_v40 = vld [vmem:[%s5875_s2] ss:$0 sm:$0xff]  ;;  %v4226_v43 = vld [vmem:[#allocation6] ss:$0 sm:$0xff]  ;;  %s5090_s29 = smov 80   ;;  %s5091_s30 = smov 112  }
  0x42   :  { %vm287_vm2 = vcmask 130048   ;;  %vm363_vm3 = vcmask 64512   ;;  %s5092_s24 = smov 64   ;;  %s5093_s23 = smov 48   ;;  %vm1989_vm4 = vcmask 523264   ;;  %vm4150_vm5 = vcmask 253952  }
  0x43   :  { %4780 = vmatprep.subr.bf16.mxu0 %v4779_v20  ;;  %s5094_s21 = smov 16   ;;  %vm4183_vm10 = vcmask 0  }
  0x44   :  { %101 = vadd.xlane.f32.xlu0 %v100_v3  ;;  %4782 = vmatpush3.bf16.msra.mxu0 %v4779_v20 }
  0x45   :  { %4784 = vmatprep.subr.bf16.mxu0 %v4783_v24 }
  0x48   :  { %104 = vadd.xlane.f32.xlu0 %v103_v5  ;;  %4786 = vmatpush3.bf16.msra.mxu0 %v4783_v24 }
  0x49   :  { %4505 = vmatprep.subr.mxu0 %v5087_v57 }
  0xcd   :  { %v99_v6 = vpop.xlane.xlu0 %98 }
  0xce   :  { %v110_v7 = vmul.f32 0.03125, %v99_v6 }
  0xd0   :  { %v114_v8 = vsub.f32 %v90_v0, %v110_v7 }
  0xd1   :  { %v102_v9 = vpop.xlane.xlu0 %101 }
  0xd2   :  { %v111_v10 = vmul.f32 0.03125, %v102_v9  ;;  %v118_v11 = vmul.f32 %v114_v8, %v114_v8 }
  0xd4   :  { %v115_v12 = vsub.f32 %v91_v1, %v111_v10  ;;  %v122_v13 = vsel %vm96_vm0, %v118_v11, 0.0  ;;  %v4227_v1 = vld [vmem:[%s5878_s5] ss:$0 sm:$0xff] }
  0xd5   :  { %123 = vadd.xlane.f32.xlu1 %v122_v13  ;;  %v105_v21 = vpop.xlane.xlu0 %104 }
  0xd6   :  { %v119_v14 = vmul.f32 %v115_v12, %v115_v12  ;;  %v112_v25 = vmul.f32 0.03125, %v105_v21 }
  0xd8   :  { %v125_v16 = vsel %vm96_vm0, %v119_v14, 0.0  ;;  %v116_v26 = vsub.f32 %v92_v4, %v112_v25  ;;  %v5302_v14 = vld [vmem:[#allocation4] ss:$0 sm:$0xff] }
  0xd9   :  { %126 = vadd.xlane.f32.xlu1 %v125_v16 }
  0xda   :  { %v120_v27 = vmul.f32 %v116_v26, %v116_v26 }
  0xdc   :  { %v128_v28 = vsel %vm96_vm0, %v120_v27, 0.0 }
  0xdd   :  { %107 = vadd.xlane.f32.xlu1 %v106_v17  ;;  %129 = vadd.xlane.f32.xlu0 %v128_v28 }
 0x162   :  { %v124_v29 = vpop.xlane.xlu1 %123 }
 0x163   :  { %v134_v30 = vmul.f32 0.03125, %v124_v29 }
 0x165   :  { %v138_v31 = vadd.f32 1e-12, %v134_v30 }
 0x166   :  { %v127_v32 = vpop.xlane.xlu1 %126 }
 0x167   :  { %4872 = vrsqrt.f32 %v138_v31  ;;  %v135_v33 = vmul.f32 0.03125, %v127_v32 }
 0x169   :  { %v139_v34 = vadd.f32 1e-12, %v135_v33 }
 0x16a   :  { %v108_v35 = vpop.xlane.xlu1 %107  ;;  %v130_v50 = vpop.xlane.xlu0 %129 }
 0x16b   :  { %4874 = vrsqrt.f32 %v139_v34  ;;  %v113_v36 = vmul.f32 0.03125, %v108_v35  ;;  %v136_v51 = vmul.f32 0.03125, %v130_v50 }
 0x16d   :  { %v117_v37 = vsub.f32 %v93_v15, %v113_v36  ;;  %v140_v52 = vadd.f32 1e-12, %v136_v51 }
 0x16f   :  { %v121_v38 = vmul.f32 %v117_v37, %v117_v37  ;;  %4876 = vrsqrt.f32 %v140_v52 }
 0x171   :  { %v4873_v39 = vpop.eup %4872  ;;  %v131_v41 = vsel %vm96_vm0, %v121_v38, 0.0 }
 0x172   :  { %v146_v42 = vmul.f32 %v4873_v39, %v114_v8  ;;  %132 = vadd.xlane.f32.xlu1 %v131_v41 }
 0x174   :  { %v156_v44 = vmul.f32 %v4225_v40, %v146_v42 }
 0x175   :  { %v4875_v45 = vpop.eup %4874 }
 0x176   :  { %v5246_v46 = vadd.f32 %v4226_v43, %v156_v44  ;;  %v147_v47 = vmul.f32 %v4875_v45, %v115_v12  ;;  %v4239_v45 = vld [vmem:[#allocation4 + $0x1] ss:$0 sm:$0xff] }
 0x178   :  { %4499 = vmatprep.mubr.msk.f32.mxu0 %vm96_vm0, %v5246_v46  ;;  %v157_v48 = vmul.f32 %v4225_v40, %v147_v47 }
 0x179   :  { %v4877_v53 = vpop.eup %4876 }
 0x17a   :  { %v5250_v49 = vadd.f32 %v4226_v43, %v157_v48  ;;  %v148_v54 = vmul.f32 %v4877_v53, %v116_v26 }
 0x17c   :  { %4500 = vmatmul.mubr.msk.f32.vlgmr.msra.gmra.mrb[0].mxu0 %vm96_vm0, %v5250_v49  ;;  %v158_v55 = vmul.f32 %v4225_v40, %v148_v54 }
 0x17e   :  { %v5254_v56 = vadd.f32 %v4226_v43, %v158_v55 }
 0x180   :  { %4502 = vmatprep.mubr.msk.f32.mxu0 %vm96_vm0, %v5254_v56 }
 0x1ff   :  { %v133_v58 = vpop.xlane.xlu1 %132 }
 0x200   :  { %v137_v59 = vmul.f32 0.03125, %v133_v58  ;;  %v4246_v58 = vld [vmem:[#allocation4 + $0x2] ss:$0 sm:$0xff] }
 0x202   :  { %v141_v60 = vadd.f32 1e-12, %v137_v59 }
 0x204   :  { %4878 = vrsqrt.f32 %v141_v60 }
 0x20e   :  { %v4879_v61 = vpop.eup %4878 }
 0x20f   :  { %v149_v62 = vmul.f32 %v4879_v61, %v117_v37 }
 0x211   :  { %v159_v63 = vmul.f32 %v4225_v40, %v149_v62 }
 0x213   :  { %v5260_v0 = vadd.f32 %v4226_v43, %v159_v63 }
 0x215   :  { %4503 = vmatmul.mubr.msk.f32.gmra.mrb[2].mxu0 %vm96_vm0, %v5260_v0 }
 0x216   :  { %4507 = vmatprep.mubr.msk.f32.mxu0 %vm5088_vm1, %v5087_v57 }
 0x24f   :  { %v4501_v2 = vpop.f32.mrb[0].mxu0 }
 0x250   :  { %v259_v3 = vpop.f32.mrb[1].mxu0  ;;  %v5277_v5 = vadd.f32 %v4501_v2, %v4227_v1 }
 0x251   :  { %v5271_v4 = vadd.f32 %v4227_v1, %v259_v3 }
 0x252   :  { %v622_v6 = vmul.f32 0.25, %v5277_v5 }
 0x253   :  { %285 = vrot.lane.b32.xlu0 %v5271_v4, %s5089_s27  ;;  %v279_v8 = vmul.f32 0.25, %v5271_v4 }
 0x257   :  { %453 = vrot.lane.b32.xlu0 %v5271_v4, %s5090_s29 }
 0x25b   :  { %628 = vrot.lane.b32.xlu0 %v5277_v5, %s5089_s27 }
 0x25f   :  { %792 = vrot.lane.b32.xlu0 %v622_v6, %s5091_s30 }
 0x2c5   :  { %v286_v7 = vpop.permute.xlu0 %285 }
 0x2c6   :  { %4506 = vmatpush3.xpose.msk.msra.mxu0 %vm287_vm2, %v286_v7 }
 0x2c7   :  { %4520 = vmatprep.subr.mxu0 %v5087_v57 }
 0x2c9   :  { %4508 = vmatmul.mubr.msk.f32.vlgmr.msra.gmra.mrb[4].mxu0 %vm287_vm2, %v279_v8  ;;  %v454_v29 = vpop.permute.xlu0 %453 }
 0x2ca   :  { %4522 = vmatprep.mubr.msk.f32.mxu0 %vm5088_vm1, %v5087_v57 }
 0x2cd   :  { %v629_v31 = vpop.permute.xlu0 %628 }
 0x2d1   :  { %v793_v33 = vpop.permute.xlu0 %792 }
 0x2e8   :  { %v4504_v9 = vpop.f32.mrb[2].mxu0 }
 0x2e9   :  { %v269_v10 = vpop.f32.mrb[3].mxu0  ;;  %v5291_v12 = vadd.f32 %v4504_v9, %v4227_v1 }
 0x2ea   :  { %v5289_v11 = vadd.f32 %v4227_v1, %v269_v10 }
 0x2eb   :  { %v5298_v13 = vmul.f32 0.25, %v5291_v12 }
 0x2ec   :  { %1135 = vrot.lane.b32.xlu0 %v5289_v11, %s5090_s29  ;;  %v963_v25 = vmul.f32 0.25, %v5289_v11 }
 0x2f0   :  { %1310 = vrot.lane.b32.xlu0 %v5291_v12, %s5089_s27 }
 0x2f4   :  { %1474 = vrot.lane.b32.xlu0 %v5298_v13, %s5091_s30 }
 0x35e   :  { %v1136_v35 = vpop.permute.xlu0 %1135 }
 0x362   :  { %v1311_v37 = vpop.permute.xlu0 %1310 }
 0x366   :  { %v1475_v39 = vpop.permute.xlu0 %1474 }
 0x39c   :  { %v359_v15 = vpop.f32.mrb[4].mxu0 }
 0x39d   :  { %v360_v16 = vadd.f32 %v5302_v14, %v359_v15  ;;  %v4509_v17 = vpop.f32.mrb[5].mxu0 }
 0x39f   :  { %v364_v18 = vsel %vm363_vm3, %v360_v16, -inf }
 0x3a0   :  { %365 = vmax.xlane.f32.xlu1 %v364_v18 }
 0x3b1   :  { %375 = vrot.lane.b32.xlu1 %v5271_v4, %s5092_s24 }
 0x3b5   :  { %451 = vrot.lane.b32.xlu1 %v279_v8, %s5091_s30 }
 0x42d   :  { %v366_v19 = vpop.xlane.xlu1 %365 }
 0x42e   :  { %v367_v20 = vsub.f32 %v360_v16, %v366_v19 }
 0x430   :  { %v368_v21 = vmul.f32 1.442695, %v367_v20 }
 0x431   :  { %v376_v22 = vpop.permute.xlu1 %375 }
 0x432   :  { %4880 = vpow2.f32 %v368_v21  ;;  %4511 = vmatpush3.msra.mxu1 %v376_v22 }
 0x433   :  { %4515 = vmatprep.subr.mxu1 %v5087_v57 }
 0x435   :  { %v452_v26 = vpop.permute.xlu1 %451 }
 0x43c   :  { %v4881_v23 = vpop.eup %4880 }
 0x43d   :  { %v370_v24 = vsel %vm363_vm3, %v4881_v23, 0.0 }
 0x43e   :  { %371 = vadd.xlane.f32.xlu1 %v370_v24 }
 0x44f   :  { %794 = vrot.lane.b32.xlu1 %v5277_v5, %s5090_s29 }
 0x453   :  { %969 = vrot.lane.b32.xlu1 %v5289_v11, %s5089_s27 }
 0x457   :  { %1133 = vrot.lane.b32.xlu1 %v963_v25, %s5091_s30 }
 0x45b   :  { %1476 = vrot.lane.b32.xlu1 %v5291_v12, %s5090_s29 }
 0x4cb   :  { %v372_v27 = vpop.xlane.xlu1 %371 }
 0x4cc   :  { %4882 = vrcp.f32 %v372_v27 }
 0x4cf   :  { %v795_v32 = vpop.permute.xlu1 %794 }
 0x4d3   :  { %v970_v34 = vpop.permute.xlu1 %969 }
 0x4d6   :  { %v4883_v28 = vpop.eup %4882 }
 0x4d7   :  { %v374_v30 = vmul.f32 %v4883_v28, %v4881_v23  ;;  %v1134_v36 = vpop.permute.xlu1 %1133 }
 0x4d9   :  { %4513 = vmatmul.mubr.msk.f32.vlgmr.msra.gmra.mrb[0].mxu1 %vm363_vm3, %v374_v30 }
 0x4da   :  { %4516 = vmatpush3.xpose.msk.msra.mxu1 %vm287_vm2, %v454_v29  ;;  %4517 = vmatprep.mubr.msk.f32.mxu1 %vm5088_vm1, %v5087_v57 }
 0x4db   :  { %4525 = vmatprep.subr.mxu1 %v5087_v57  ;;  %v1477_v38 = vpop.permute.xlu1 %1476 }
 0x4dd   :  { %4518 = vmatmul.mubr.msk.f32.vlgmr.msra.gmra.mrb[2].mxu1 %vm287_vm2, %v452_v26 }
 0x4de   :  { %4526 = vmatpush3.xpose.msk.msra.mxu1 %vm287_vm2, %v629_v31  ;;  %4527 = vmatprep.mubr.msk.f32.mxu1 %vm5088_vm1, %v5087_v57 }
 0x4df   :  { %4535 = vmatprep.subr.mxu1 %v5087_v57 }
 0x4e1   :  { %4528 = vmatmul.mubr.msk.f32.vlgmr.msra.gmra.mrb[4].mxu1 %vm287_vm2, %v622_v6  ;;  %v4253_v6 = vld [vmem:[#allocation4 + $0x3] ss:$0 sm:$0xff] }
 0x4e2   :  { %4536 = vmatpush3.xpose.msk.msra.mxu1 %vm287_vm2, %v795_v32  ;;  %4537 = vmatprep.mubr.msk.f32.mxu1 %vm5088_vm1, %v5087_v57 }
 0x4e3   :  { %4545 = vmatprep.subr.mxu1 %v5087_v57 }
 0x4e5   :  { %4538 = vmatmul.mubr.msk.f32.vlgmr.msra.gmra.mrb[6].mxu1 %vm287_vm2, %v793_v33 }
 0x4e6   :  { %4546 = vmatpush3.xpose.msk.msra.mxu1 %vm287_vm2, %v970_v34  ;;  %4547 = vmatprep.mubr.msk.f32.mxu1 %vm5088_vm1, %v5087_v57 }
 0x4e7   :  { %4555 = vmatprep.subr.mxu1 %v5087_v57 }
 0x4e9   :  { %4548 = vmatmul.mubr.msk.f32.vlgmr.msra.gmra.mrb[8].mxu1 %vm287_vm2, %v963_v25 }
 0x4ea   :  { %4556 = vmatpush3.xpose.msk.msra.mxu1 %vm287_vm2, %v1136_v35  ;;  %4557 = vmatprep.mubr.msk.f32.mxu1 %vm5088_vm1, %v5087_v57 }
 0x4eb   :  { %4565 = vmatprep.subr.mxu1 %v5087_v57 }
 0x4ed   :  { %4558 = vmatmul.mubr.msk.f32.vlgmr.msra.gmra.mrb[10].mxu1 %vm287_vm2, %v1134_v36 }
 0x4ee   :  { %4566 = vmatpush3.xpose.msk.msra.mxu1 %vm287_vm2, %v1311_v37  ;;  %4567 = vmatprep.mubr.msk.f32.mxu1 %vm5088_vm1, %v5087_v57 }
 0x4ef   :  { %4575 = vmatprep.subr.mxu1 %v5087_v57 }
 0x4f1   :  { %4568 = vmatmul.mubr.msk.f32.vlgmr.msra.gmra.mrb[12].mxu1 %vm287_vm2, %v5298_v13 }
 0x4f2   :  { %4576 = vmatpush3.xpose.msk.msra.mxu1 %vm287_vm2, %v1477_v38  ;;  %4577 = vmatprep.mubr.msk.f32.mxu1 %vm5088_vm1, %v5087_v57 }
 0x4f5   :  { %4578 = vmatmul.mubr.msk.f32.vlgmr.msra.gmra.mrb[14].mxu1 %vm287_vm2, %v1475_v39 }
 0x5ac   :  { %v5355_v40 = vpop.f32.mrb[0].mxu1 }
 0x5ad   :  { %v4514_v41 = vpop.f32.mrb[1].mxu1 }
 0x5b0   :  { %v525_v42 = vpop.f32.mrb[2].mxu1 }
 0x5b1   :  { %v526_v43 = vadd.f32 %v5302_v14, %v525_v42  ;;  %v4519_v44 = vpop.f32.mrb[3].mxu1 }
 0x5b3   :  { %v529_v47 = vsel %vm363_vm3, %v526_v43, -inf }
 0x5b4   :  { %530 = vmax.xlane.f32.xlu1 %v529_v47  ;;  %v701_v48 = vpop.f32.mrb[4].mxu1 }
 0x5b5   :  { %v702_v50 = vadd.f32 %v4239_v45, %v701_v48  ;;  %v4529_v51 = vpop.f32.mrb[5].mxu1 }
 0x5b7   :  { %v705_v52 = vsel %vm363_vm3, %v702_v50, -inf }
 0x5b8   :  { %706 = vmax.xlane.f32.xlu0 %v705_v52  ;;  %v866_v53 = vpop.f32.mrb[6].mxu1 }
 0x5b9   :  { %v867_v54 = vadd.f32 %v4239_v45, %v866_v53  ;;  %v4539_v55 = vpop.f32.mrb[7].mxu1 }
 0x5bb   :  { %v870_v59 = vsel %vm363_vm3, %v867_v54, -inf }
 0x5bc   :  { %871 = vmax.xlane.f32.xlu0 %v870_v59  ;;  %v1042_v60 = vpop.f32.mrb[8].mxu1 }
 0x5bd   :  { %v1043_v61 = vadd.f32 %v4246_v58, %v1042_v60  ;;  %v4549_v62 = vpop.f32.mrb[9].mxu1 }
 0x5bf   :  { %v1046_v63 = vsel %vm363_vm3, %v1043_v61, -inf }
 0x5c0   :  { %1047 = vmax.xlane.f32.xlu0 %v1046_v63  ;;  %v1207_v1 = vpop.f32.mrb[10].mxu1 }
 0x5c1   :  { %v1208_v2 = vadd.f32 %v4246_v58, %v1207_v1  ;;  %v4559_v3 = vpop.f32.mrb[11].mxu1 }
 0x5c3   :  { %v1211_v7 = vsel %vm363_vm3, %v1208_v2, -inf }
 0x5c4   :  { %1212 = vmax.xlane.f32.xlu1 %v1211_v7  ;;  %v1383_v8 = vpop.f32.mrb[12].mxu1 }
 0x5c5   :  { %v1384_v9 = vadd.f32 %v4253_v6, %v1383_v8  ;;  %v4569_v10 = vpop.f32.mrb[13].mxu1 }
 0x5c7   :  { %v1387_v13 = vsel %vm363_vm3, %v1384_v9, -inf }
 0x5c8   :  { %1388 = vmax.xlane.f32.xlu0 %v1387_v13  ;;  %v1548_v14 = vpop.f32.mrb[14].mxu1 }
 0x5c9   :  { %v4579_v15 = vpop.f32.mrb[15].mxu1  ;;  %v1549_v16 = vadd.f32 %v4253_v6, %v1548_v14 }
 0x5cb   :  { %v1552_v17 = vsel %vm363_vm3, %v1549_v16, -inf }
 0x5d5   :  { %540 = vrot.lane.b32.xlu1 %v5271_v4, %s5093_s23 }
 0x5f9   :  { %1553 = vmax.xlane.f32.xlu1 %v1552_v17 }
 0x60a   :  { %881 = vrot.lane.b32.xlu1 %v5277_v5, %s5093_s23 }
 0x60e   :  { %1057 = vrot.lane.b32.xlu1 %v5289_v11, %s5092_s24 }
 0x641   :  { %v531_v18 = vpop.xlane.xlu1 %530 }
 0x642   :  { %v532_v19 = vsub.f32 %v526_v43, %v531_v18 }
 0x644   :  { %v533_v20 = vmul.f32 1.442695, %v532_v19 }
 0x645   :  { %v707_v21 = vpop.xlane.xlu0 %706 }
 0x646   :  { %4884 = vpow2.f32 %v533_v20  ;;  %v708_v22 = vsub.f32 %v702_v50, %v707_v21 }
 0x648   :  { %v709_v23 = vmul.f32 1.442695, %v708_v22 }
 0x649   :  { %v872_v29 = vpop.xlane.xlu0 %871 }
 0x64a   :  { %4886 = vpow2.f32 %v709_v23  ;;  %v873_v30 = vsub.f32 %v867_v54, %v872_v29  ;;  %v1644_v23 = vld [vmem:[%s5879_s6] sm:$0xff] }
 0x64c   :  { %v874_v33 = vmul.f32 1.442695, %v873_v30 }
 0x64d   :  { %v1048_v31 = vpop.xlane.xlu0 %1047 }
 0x64e   :  { %v1049_v32 = vsub.f32 %v1043_v61, %v1048_v31  ;;  %4888 = vpow2.f32 %v874_v33 }
 0x650   :  { %v4885_v24 = vpop.eup %4884  ;;  %v1050_v36 = vmul.f32 1.442695, %v1049_v32 }
 0x651   :  { %v1213_v4 = vpop.xlane.xlu1 %1212  ;;  %v535_v25 = vsel %vm363_vm3, %v4885_v24, 0.0 }
 0x652   :  { %536 = vadd.xlane.f32.xlu0 %v535_v25  ;;  %v1214_v34 = vsub.f32 %v1208_v2, %v1213_v4  ;;  %4890 = vpow2.f32 %v1050_v36  ;;  %v1646_v4 = vld [vmem:[%s5879_s6 + $0x10] sm:$0xff] }
 0x654   :  { %v4887_v26 = vpop.eup %4886  ;;  %v1215_v37 = vmul.f32 1.442695, %v1214_v34 }
 0x655   :  { %v541_v27 = vpop.permute.xlu1 %540  ;;  %v711_v28 = vsel %vm363_vm3, %v4887_v26, 0.0  ;;  %v1389_v35 = vpop.xlane.xlu0 %1388 }
 0x656   :  { %4521 = vmatpush3.msra.mxu0 %v541_v27  ;;  %712 = vadd.xlane.f32.xlu1 %v711_v28  ;;  %v1390_v38 = vsub.f32 %v1384_v9, %v1389_v35  ;;  %4892 = vpow2.f32 %v1215_v37 }
 0x657   :  { %4530 = vmatprep.subr.mxu0 %v5087_v57 }
 0x658   :  { %v1391_v39 = vmul.f32 1.442695, %v1390_v38  ;;  %v4889_v41 = vpop.eup %4888 }
 0x65a   :  { %4894 = vpow2.f32 %v1391_v39 }
 0x667   :  { %1222 = vrot.lane.b32.xlu1 %v5289_v11, %s5093_s23  ;;  %v4891_v11 = vpop.eup %4890 }
 0x668   :  { %716 = vrot.lane.b32.xlu0 %v5277_v5, %s5092_s24  ;;  %v876_v5 = vsel %vm363_vm3, %v4889_v41, 0.0  ;;  %v4893_v43 = vpop.eup %4892  ;;  %v1052_v48 = vsel %vm363_vm3, %v4891_v11, 0.0 }
 0x669   :  { %v1217_v47 = vsel %vm363_vm3, %v4893_v43, 0.0  ;;  %v4895_v50 = vpop.eup %4894 }
 0x66a   :  { %v1393_v51 = vsel %vm363_vm3, %v4895_v50, 0.0 }
 0x686   :  { %v1554_v42 = vpop.xlane.xlu1 %1553 }
 0x687   :  { %v1555_v44 = vsub.f32 %v1549_v16, %v1554_v42  ;;  %877 = vadd.xlane.f32.xlu0 %v876_v5 }
 0x689   :  { %v1556_v45 = vmul.f32 1.442695, %v1555_v44 }
 0x68a   :  { %v882_v54 = vpop.permute.xlu1 %881 }
 0x68b   :  { %4896 = vpow2.f32 %v1556_v45  ;;  %1218 = vadd.xlane.f32.xlu0 %v1217_v47  ;;  %1053 = vadd.xlane.f32.xlu1 %v1052_v48 }
 0x68e   :  { %v1058_v55 = vpop.permute.xlu1 %1057 }
 0x68f   :  { %1394 = vadd.xlane.f32.xlu1 %v1393_v51 }
 0x695   :  { %v4897_v52 = vpop.eup %4896 }
 0x696   :  { %v1558_v53 = vsel %vm363_vm3, %v4897_v52, 0.0 }
 0x697   :  { %1559 = vadd.xlane.f32.xlu0 %v1558_v53 }
 0x6a0   :  { %1563 = vrot.lane.b32.xlu1 %v5291_v12, %s5093_s23 }
 0x6ad   :  { %1398 = vrot.lane.b32.xlu0 %v5291_v12, %s5092_s24 }
 0x6df   :  { %v537_v58 = vpop.xlane.xlu0 %536 }
 0x6e0   :  { %4898 = vrcp.f32 %v537_v58 }
 0x6e3   :  { %v713_v59 = vpop.xlane.xlu1 %712  ;;  %v717_v62 = vpop.permute.xlu0 %716 }
 0x6e4   :  { %4900 = vrcp.f32 %v713_v59 }
 0x6e7   :  { %v1223_v12 = vpop.permute.xlu1 %1222 }
 0x6ea   :  { %v4899_v60 = vpop.eup %4898 }
 0x6eb   :  { %v539_v61 = vmul.f32 %v4899_v60, %v4885_v24  ;;  %v1645_v24 = vld [vmem:[%s5879_s6 + $0x8] sm:$0xff] }
 0x6ec   :  { %v4787_v25 = vpack.c.bf16 %v1645_v24, %v1644_v23 }
 0x6ed   :  { %4523 = vmatmul.mubr.msk.f32.vlgmr.msra.gmra.mrb[6].mxu0 %vm363_vm3, %v539_v61 }
 0x6ee   :  { %v4901_v63 = vpop.eup %4900  ;;  %4531 = vmatpush3.msra.mxu0 %v717_v62  ;;  %4532 = vmatprep.mubr.msk.f32.mxu0 %vm5088_vm1, %v5087_v57 }
 0x6ef   :  { %v715_v1 = vmul.f32 %v4901_v63, %v4887_v26  ;;  %4540 = vmatprep.subr.mxu0 %v5087_v57  ;;  %v1647_v26 = vld [vmem:[%s5879_s6 + $0x18] sm:$0xff]  ;;  %4788 = vmatprep.subr.bf16.mxu1 %v4787_v25 }
 0x6f0   :  { %v4791_v27 = vpack.c.bf16 %v1647_v26, %v1646_v4  ;;  %4790 = vmatpush3.bf16.msra.mxu1 %v4787_v25  ;;  %v1830_v4 = vld [vmem:[%s5883_s10] sm:$0xff]  ;;  %v1831_v25 = vld [vmem:[%s5883_s10 + $0x8] sm:$0xff] }
 0x6f1   :  { %4533 = vmatmul.mubr.msk.f32.vlgmr.msra.gmra.mrb[8].mxu0 %vm363_vm3, %v715_v1  ;;  %v4795_v26 = vpack.c.bf16 %v1831_v25, %v1830_v4 }
 0x6f2   :  { %4541 = vmatpush3.msra.mxu0 %v882_v54  ;;  %4542 = vmatprep.mubr.msk.f32.mxu0 %vm5088_vm1, %v5087_v57 }
 0x6f3   :  { %4550 = vmatprep.subr.mxu0 %v5087_v57  ;;  %4792 = vmatprep.subr.bf16.mxu1 %v4791_v27 }
 0x6f4   :  { %4794 = vmatpush3.bf16.msra.mxu1 %v4791_v27  ;;  %v1832_v27 = vld [vmem:[%s5883_s10 + $0x10] sm:$0xff] }
 0x714   :  { %v878_v2 = vpop.xlane.xlu0 %877 }
 0x715   :  { %4902 = vrcp.f32 %v878_v2 }
 0x718   :  { %v1054_v3 = vpop.xlane.xlu1 %1053  ;;  %v1219_v6 = vpop.xlane.xlu0 %1218 }
 0x719   :  { %4904 = vrcp.f32 %v1054_v3 }
 0x71a   :  { %4906 = vrcp.f32 %v1219_v6 }
 0x71c   :  { %v1395_v7 = vpop.xlane.xlu1 %1394 }
 0x71d   :  { %4908 = vrcp.f32 %v1395_v7 }
 0x71f   :  { %v4903_v8 = vpop.eup %4902 }
 0x720   :  { %v880_v9 = vmul.f32 %v4903_v8, %v4889_v41  ;;  %v1564_v20 = vpop.permute.xlu1 %1563 }
 0x722   :  { %4543 = vmatmul.mubr.msk.f32.vlgmr.msra.gmra.mrb[10].mxu0 %vm363_vm3, %v880_v9 }
 0x723   :  { %v4905_v10 = vpop.eup %4904  ;;  %4551 = vmatpush3.msra.mxu0 %v1058_v55  ;;  %4552 = vmatprep.mubr.msk.f32.mxu0 %vm5088_vm1, %v5087_v57 }
 0x724   :  { %v1056_v13 = vmul.f32 %v4905_v10, %v4891_v11  ;;  %v1560_v14 = vpop.xlane.xlu0 %1559  ;;  %4560 = vmatprep.subr.mxu0 %v5087_v57  ;;  %v4907_v15 = vpop.eup %4906 }
 0x725   :  { %4910 = vrcp.f32 %v1560_v14  ;;  %v1221_v16 = vmul.f32 %v4907_v15, %v4893_v43 }
 0x726   :  { %4553 = vmatmul.mubr.msk.f32.vlgmr.msra.gmra.mrb[12].mxu0 %vm363_vm3, %v1056_v13 }
 0x727   :  { %4561 = vmatpush3.msra.mxu0 %v1223_v12  ;;  %4562 = vmatprep.mubr.msk.f32.mxu0 %vm5088_vm1, %v5087_v57  ;;  %v4909_v18 = vpop.eup %4908 }
 0x728   :  { %v1399_v17 = vpop.permute.xlu0 %1398  ;;  %4570 = vmatprep.subr.mxu0 %v5087_v57  ;;  %v1397_v19 = vmul.f32 %v4909_v18, %v4895_v50 }
 0x72a   :  { %4563 = vmatmul.mubr.msk.f32.vlgmr.msra.gmra.mrb[14].mxu0 %vm363_vm3, %v1221_v16 }
 0x72b   :  { %4571 = vmatpush3.msra.mxu0 %v1399_v17  ;;  %4572 = vmatprep.mubr.msk.f32.mxu0 %vm5088_vm1, %v5087_v57 }
 0x72c   :  { %4580 = vmatprep.subr.mxu0 %v5087_v57 }
 0x72e   :  { %4573 = vmatmul.mubr.msk.f32.vlgmr.msra.gmra.mrb[16].mxu0 %vm363_vm3, %v1397_v19 }
 0x72f   :  { %v4911_v21 = vpop.eup %4910  ;;  %4581 = vmatpush3.msra.mxu0 %v1564_v20  ;;  %4582 = vmatprep.mubr.msk.f32.mxu0 %vm5088_vm1, %v5087_v57 }
 0x730   :  { %v1562_v22 = vmul.f32 %v4911_v21, %v4897_v52  ;;  %4796 = vmatprep.subr.bf16.mxu0 %v4795_v26 }
 0x732   :  { %4583 = vmatmul.mubr.msk.f32.vlgmr.msra.gmra.mrb[18].mxu0 %vm363_vm3, %v1562_v22 }
 0x733   :  { %4798 = vmatpush3.bf16.msra.mxu0 %v4795_v26 }
 0x7c0   :  { %v612_v28 = vpop.f32.mrb[6].mxu0 }
 0x7c1   :  { %617 = vrot.lane.b32.xlu0 %v612_v28, %s5094_s21  ;;  %v4524_v29 = vpop.f32.mrb[7].mxu0  ;;  %v1833_v28 = vld [vmem:[%s5883_s10 + $0x18] sm:$0xff] }
 0x7c2   :  { %v4799_v29 = vpack.c.bf16 %v1833_v28, %v1832_v27 }
 0x7c4   :  { %v788_v30 = vpop.f32.mrb[8].mxu0  ;;  %4800 = vmatprep.subr.bf16.mxu0 %v4799_v29 }
 0x7c5   :  { %v4534_v31 = vpop.f32.mrb[9].mxu0  ;;  %4802 = vmatpush3.bf16.msra.mxu0 %v4799_v29 }
 0x7f5   :  { %v953_v32 = vpop.f32.mrb[10].mxu0 }
 0x7f6   :  { %958 = vrot.lane.b32.xlu1 %v953_v32, %s5094_s21  ;;  %v4544_v33 = vpop.f32.mrb[11].mxu0 }
 0x7f9   :  { %v1129_v34 = vpop.f32.mrb[12].mxu0 }
 0x7fa   :  { %v4554_v35 = vpop.f32.mrb[13].mxu0 }
 0x7fd   :  { %v1294_v36 = vpop.f32.mrb[14].mxu0 }
 0x7fe   :  { %1299 = vrot.lane.b32.xlu0 %v1294_v36, %s5094_s21  ;;  %v4564_v37 = vpop.f32.mrb[15].mxu0 }
 0x7ff   :  { %v4265_v37 = vld [vmem:[%s5881_s8] ss:$0 sm:$0xff] }
 0x801   :  { %v1470_v38 = vpop.f32.mrb[16].mxu0 }
 0x802   :  { %v4574_v39 = vpop.f32.mrb[17].mxu0 }
 0x805   :  { %v1635_v41 = vpop.f32.mrb[18].mxu0 }
 0x806   :  { %1640 = vrot.lane.b32.xlu1 %v1635_v41, %s5094_s21  ;;  %v4584_v11 = vpop.f32.mrb[19].mxu0 }
 0x833   :  { %v618_v42 = vpop.permute.xlu0 %617 }
 0x834   :  { %v620_v5 = vsel %vm287_vm2, %v5355_v40, %v618_v42  ;;  %v4260_v40 = vld [vmem:[%s5880_s7] ss:$0 sm:$0xff] }
 0x835   :  { %4593 = vmatprep.mubr.msk.f32.mxu1 %vm96_vm0, %v620_v5  ;;  %v4266_v5 = vld [vmem:[%s5882_s9] ss:$0 sm:$0xff] }
 0x868   :  { %v959_v43 = vpop.permute.xlu1 %958 }
 0x869   :  { %v961_v44 = vsel %vm287_vm2, %v788_v30, %v959_v43 }
 0x86a   :  { %4594 = vmatmul.mubr.msk.f32.vlgmr.msra.gmra.mrb[16].mxu1 %vm96_vm0, %v961_v44 }
 0x870   :  { %v1300_v45 = vpop.permute.xlu0 %1299 }
 0x871   :  { %v1302_v47 = vsel %vm287_vm2, %v1129_v34, %v1300_v45 }
 0x872   :  { %4596 = vmatprep.mubr.msk.f32.mxu1 %vm96_vm0, %v1302_v47 }
 0x878   :  { %v1641_v48 = vpop.permute.xlu1 %1640 }
 0x879   :  { %v1643_v50 = vsel %vm287_vm2, %v1470_v38, %v1641_v48 }
 0x87a   :  { %4597 = vmatmul.mubr.msk.f32.gmra.mrb[18].mxu1 %vm96_vm0, %v1643_v50 }
 0x93d   :  { %v4595_v51 = vpop.f32.mrb[16].mxu1 }
 0x93e   :  { %v1739_v52 = vadd.f32 %v4595_v51, %v4260_v40  ;;  %v1733_v53 = vpop.f32.mrb[17].mxu1 }
 0x93f   :  { %v1734_v54 = vadd.f32 %v4260_v40, %v1733_v53 }
 0x940   :  { %v1753_v55 = vadd.f32 %v1739_v52, %v5250_v49 }
 0x941   :  { %v1752_v58 = vadd.f32 %v1734_v54, %v5246_v46 }
 0x942   :  { %v1761_v59 = vsel %vm96_vm0, %v1753_v55, 0.0 }
 0x943   :  { %1762 = vadd.xlane.f32.xlu1 %v1761_v59  ;;  %v1758_v60 = vsel %vm96_vm0, %v1752_v58, 0.0 }
 0x944   :  { %1759 = vadd.xlane.f32.xlu0 %v1758_v60 }
 0x94d   :  { %v4598_v61 = vpop.f32.mrb[18].mxu1 }
 0x94e   :  { %v1743_v62 = vpop.f32.mrb[19].mxu1  ;;  %v1749_v63 = vadd.f32 %v4598_v61, %v4260_v40 }
 0x94f   :  { %v1744_v1 = vadd.f32 %v4260_v40, %v1743_v62  ;;  %v1974_v62 = vld [vmem:[%s5885_s12] sm:$0xff] }
 0x950   :  { %v1755_v3 = vadd.f32 %v1749_v63, %v5260_v0  ;;  %v1975_v63 = vld [vmem:[%s5885_s12 + $0x8] sm:$0xff] }
 0x951   :  { %v1754_v12 = vadd.f32 %v1744_v1, %v5254_v56  ;;  %v4803_v1 = vpack.c.bf16 %v1975_v63, %v1974_v62 }
 0x952   :  { %v1767_v49 = vsel %vm96_vm0, %v1755_v3, 0.0 }
 0x953   :  { %v1764_v2 = vsel %vm96_vm0, %v1754_v12, 0.0  ;;  %4804 = vmatprep.subr.bf16.mxu1 %v4803_v1 }
 0x954   :  { %1765 = vadd.xlane.f32.xlu0 %v1764_v2  ;;  %4806 = vmatpush3.bf16.msra.mxu1 %v4803_v1  ;;  %v1977_v2 = vld [vmem:[%s5885_s12 + $0x18] sm:$0xff] }
 0x958   :  { %1768 = vadd.xlane.f32.xlu0 %v1767_v49  ;;  %v1978_v49 = vld [vmem:[%s5885_s12 + $0x20] sm:$0xff] }
 0x9d0   :  { %v1763_v46 = vpop.xlane.xlu1 %1762 }
 0x9d1   :  { %v1771_v6 = vmul.f32 0.03125, %v1763_v46  ;;  %v1760_v7 = vpop.xlane.xlu0 %1759  ;;  %v1979_v46 = vld [vmem:[%s5885_s12 + $0x28] sm:$0xff] }
 0x9d2   :  { %v1770_v8 = vmul.f32 0.03125, %v1760_v7  ;;  %v1980_v7 = vld [vmem:[%s5885_s12 + $0x30] sm:$0xff] }
 0x9d3   :  { %v1775_v9 = vsub.f32 %v1753_v55, %v1771_v6  ;;  %v4811_v6 = vpack.c.bf16 %v1979_v46, %v1978_v49 }
 0x9d4   :  { %v1774_v10 = vsub.f32 %v1752_v58, %v1770_v8  ;;  %v1981_v8 = vld [vmem:[%s5885_s12 + $0x38] sm:$0xff] }
 0x9d5   :  { %v1779_v13 = vmul.f32 %v1775_v9, %v1775_v9 }
 0x9d6   :  { %v1778_v14 = vmul.f32 %v1774_v10, %v1774_v10 }
 0x9d7   :  { %v1785_v15 = vsel %vm96_vm0, %v1779_v13, 0.0 }
 0x9d8   :  { %1786 = vadd.xlane.f32.xlu1 %v1785_v15  ;;  %v1782_v56 = vsel %vm96_vm0, %v1778_v14, 0.0 }
 0x9d9   :  { %1783 = vadd.xlane.f32.xlu0 %v1782_v56 }
 0x9e1   :  { %v1766_v16 = vpop.xlane.xlu0 %1765 }
 0x9e2   :  { %v1772_v0 = vmul.f32 0.03125, %v1766_v16 }
 0x9e4   :  { %v1776_v17 = vsub.f32 %v1754_v12, %v1772_v0  ;;  %v1976_v12 = vld [vmem:[%s5885_s12 + $0x10] sm:$0xff] }
 0x9e5   :  { %v1769_v18 = vpop.xlane.xlu0 %1768 }
 0x9e6   :  { %v1773_v19 = vmul.f32 0.03125, %v1769_v18  ;;  %v1780_v20 = vmul.f32 %v1776_v17, %v1776_v17 }
 0x9e8   :  { %v1777_v21 = vsub.f32 %v1755_v3, %v1773_v19  ;;  %v1788_v22 = vsel %vm96_vm0, %v1780_v20, 0.0  ;;  %v4807_v3 = vpack.c.bf16 %v1977_v2, %v1976_v12 }
 0x9e9   :  { %1789 = vadd.xlane.f32.xlu0 %v1788_v22 }
 0x9ea   :  { %v1781_v23 = vmul.f32 %v1777_v21, %v1777_v21  ;;  %4808 = vmatprep.subr.bf16.mxu1 %v4807_v3 }
 0x9eb   :  { %4810 = vmatpush3.bf16.msra.mxu1 %v4807_v3 }
 0x9ec   :  { %v1791_v24 = vsel %vm96_vm0, %v1781_v23, 0.0  ;;  %4812 = vmatprep.subr.bf16.mxu1 %v4811_v6 }
 0x9ed   :  { %1792 = vadd.xlane.f32.xlu1 %v1791_v24 }
 0x9ef   :  { %4814 = vmatpush3.bf16.msra.mxu1 %v4811_v6 }
 0xa65   :  { %v1787_v30 = vpop.xlane.xlu1 %1786 }
 0xa66   :  { %v1795_v31 = vmul.f32 0.03125, %v1787_v30  ;;  %v1784_v32 = vpop.xlane.xlu0 %1783 }
 0xa67   :  { %v1794_v33 = vmul.f32 0.03125, %v1784_v32 }
 0xa68   :  { %v1799_v34 = vadd.f32 1e-12, %v1795_v31 }
 0xa69   :  { %v1798_v35 = vadd.f32 1e-12, %v1794_v33 }
 0xa6a   :  { %4912 = vrsqrt.f32 %v1799_v34 }
 0xa6b   :  { %4914 = vrsqrt.f32 %v1798_v35 }
 0xa74   :  { %v4913_v36 = vpop.eup %4912 }
 0xa75   :  { %v4915_v38 = vpop.eup %4914  ;;  %v1807_v39 = vmul.f32 %v4913_v36, %v1775_v9  ;;  %v4815_v9 = vpack.c.bf16 %v1981_v8, %v1980_v7 }
 0xa76   :  { %v1790_v41 = vpop.xlane.xlu0 %1789  ;;  %v1806_v11 = vmul.f32 %v4915_v38, %v1774_v10  ;;  %v4267_v10 = vld [vmem:[%s5884_s11] ss:$0 sm:$0xff] }
 0xa77   :  { %v1796_v42 = vmul.f32 0.03125, %v1790_v41  ;;  %v1817_v43 = vmul.f32 %v4265_v37, %v1807_v39  ;;  %4816 = vmatprep.subr.bf16.mxu1 %v4815_v9 }
 0xa78   :  { %v1816_v44 = vmul.f32 %v4265_v37, %v1806_v11  ;;  %4818 = vmatpush3.bf16.msra.mxu1 %v4815_v9 }
 0xa79   :  { %v1800_v45 = vadd.f32 1e-12, %v1796_v42  ;;  %v5471_v40 = vadd.f32 %v4266_v5, %v1817_v43  ;;  %4659 = vmatprep.subr.mxu1 %v5087_v57 }
 0xa7a   :  { %v1793_v47 = vpop.xlane.xlu1 %1792  ;;  %v5469_v48 = vadd.f32 %v4266_v5, %v1816_v44 }
 0xa7b   :  { %4916 = vrsqrt.f32 %v1800_v45  ;;  %v1797_v50 = vmul.f32 0.03125, %v1793_v47 }
 0xa7c   :  { %4607 = vmatprep.mubr.msk.f32.mxu0 %vm96_vm0, %v5469_v48 }
 0xa7d   :  { %v1801_v51 = vadd.f32 1e-12, %v1797_v50  ;;  %4608 = vmatmul.mubr.msk.f32.vlgmr.msra.gmra.mrb[20].mxu0 %vm96_vm0, %v5471_v40 }
 0xa7f   :  { %4918 = vrsqrt.f32 %v1801_v51 }
 0xa85   :  { %v4917_v52 = vpop.eup %4916 }
 0xa86   :  { %v1808_v53 = vmul.f32 %v4917_v52, %v1776_v17 }
 0xa88   :  { %v1818_v54 = vmul.f32 %v4265_v37, %v1808_v53 }
 0xa89   :  { %v4919_v55 = vpop.eup %4918 }
 0xa8a   :  { %v5477_v58 = vadd.f32 %v4266_v5, %v1818_v54  ;;  %v1809_v59 = vmul.f32 %v4919_v55, %v1777_v21 }
 0xa8c   :  { %4610 = vmatprep.mubr.msk.f32.mxu0 %vm96_vm0, %v5477_v58  ;;  %v1819_v60 = vmul.f32 %v4265_v37, %v1809_v59  ;;  %v4272_v59 = vld [vmem:[%s5886_s13] ss:$0 sm:$0xff] }
 0xa8e   :  { %v5481_v61 = vadd.f32 %v4266_v5, %v1819_v60 }
 0xa90   :  { %4611 = vmatmul.mubr.msk.f32.gmra.mrb[22].mxu0 %vm96_vm0, %v5481_v61 }
 0xb50   :  { %v4609_v13 = vpop.f32.mrb[20].mxu0 }
 0xb51   :  { %v1925_v14 = vadd.f32 %v4609_v13, %v4267_v10  ;;  %v1919_v15 = vpop.f32.mrb[21].mxu0 }
 0xb52   :  { %v1920_v56 = vadd.f32 %v4267_v10, %v1919_v15 }
 0xb53   :  { %v1943_v16 = vmul.f32 0.044715, %v1925_v14  ;;  %v1939_v37 = vmul.f32 0.5, %v1925_v14 }
 0xb54   :  { %v1942_v0 = vmul.f32 0.044715, %v1920_v56  ;;  %v1938_v35 = vmul.f32 0.5, %v1920_v56 }
 0xb55   :  { %v1947_v17 = vmul.f32 %v1943_v16, %v1925_v14 }
 0xb56   :  { %v1946_v18 = vmul.f32 %v1942_v0, %v1920_v56 }
 0xb57   :  { %v1951_v19 = vmul.f32 %v1947_v17, %v1925_v14 }
 0xb58   :  { %v1950_v20 = vmul.f32 %v1946_v18, %v1920_v56 }
 0xb59   :  { %v1955_v21 = vadd.f32 %v1951_v19, %v1925_v14 }
 0xb5a   :  { %v1954_v22 = vadd.f32 %v1950_v20, %v1920_v56 }
 0xb5b   :  { %v1959_v23 = vmul.f32 0.7978846, %v1955_v21 }
 0xb5c   :  { %v1958_v24 = vmul.f32 0.7978846, %v1954_v22 }
 0xb5d   :  { %4920 = vtanh.f32 %v1959_v23 }
 0xb5e   :  { %4922 = vtanh.f32 %v1958_v24 }
 0xb63   :  { %v4612_v4 = vpop.f32.mrb[22].mxu0 }
 0xb64   :  { %v1935_v25 = vadd.f32 %v4612_v4, %v4267_v10  ;;  %v1929_v26 = vpop.f32.mrb[23].mxu0 }
 0xb65   :  { %v1930_v27 = vadd.f32 %v4267_v10, %v1929_v26 }
 0xb66   :  { %v1945_v28 = vmul.f32 0.044715, %v1935_v25  ;;  %v1941_v53 = vmul.f32 0.5, %v1935_v25 }
 0xb67   :  { %v4921_v29 = vpop.eup %4920  ;;  %v1944_v30 = vmul.f32 0.044715, %v1930_v27  ;;  %v1940_v51 = vmul.f32 0.5, %v1930_v27 }
 0xb68   :  { %v4923_v31 = vpop.eup %4922  ;;  %v1967_v32 = vadd.f32 1.0, %v4921_v29  ;;  %v1949_v33 = vmul.f32 %v1945_v28, %v1935_v25  ;;  %v4279_v28 = vld [vmem:[%s5877_s4 + $0x20] sm:$0xff]  ;;  %v4280_v29 = vld [vmem:[%s5877_s4 + $0x28] sm:$0xff] }
 0xb69   :  { %v1948_v34 = vmul.f32 %v1944_v30, %v1930_v27  ;;  %v1966_v36 = vadd.f32 1.0, %v4923_v31  ;;  %v4819_v30 = vpack.c.bf16 %v4280_v29, %v4279_v28  ;;  %v4281_v31 = vld [vmem:[%s5877_s4 + $0x30] sm:$0xff] }
 0xb6a   :  { %v1953_v38 = vmul.f32 %v1949_v33, %v1935_v25  ;;  %v1971_v11 = vmul.f32 %v1967_v32, %v1939_v37  ;;  %v4282_v32 = vld [vmem:[%s5877_s4 + $0x38] sm:$0xff] }
 0xb6b   :  { %v1952_v39 = vmul.f32 %v1948_v34, %v1930_v27  ;;  %v1970_v41 = vmul.f32 %v1966_v36, %v1938_v35  ;;  %4820 = vmatprep.subr.bf16.mxu0 %v4819_v30  ;;  %v4823_v33 = vpack.c.bf16 %v4282_v32, %v4281_v31 }
 0xb6c   :  { %v1957_v42 = vadd.f32 %v1953_v38, %v1935_v25  ;;  %4822 = vmatpush3.bf16.msra.mxu0 %v4819_v30 }
 0xb6d   :  { %v1956_v5 = vadd.f32 %v1952_v39, %v1930_v27  ;;  %4629 = vmatprep.mubr.msk.f32.mxu1 %vm1989_vm4, %v1970_v41  ;;  %4824 = vmatprep.subr.bf16.mxu0 %v4823_v33 }
 0xb6e   :  { %4630 = vmatmul.mubr.msk.f32.vlgmr.msra.gmra.mrb[20].mxu1 %vm1989_vm4, %v1971_v11  ;;  %v1961_v43 = vmul.f32 0.7978846, %v1957_v42  ;;  %v4277_v11 = vld [vmem:[%s5887_s14] ss:$0 sm:$0xff] }
 0xb6f   :  { %v1960_v44 = vmul.f32 0.7978846, %v1956_v5 }
 0xb70   :  { %4924 = vtanh.f32 %v1961_v43  ;;  %4826 = vmatpush3.bf16.msra.mxu0 %v4823_v33 }
 0xb71   :  { %4926 = vtanh.f32 %v1960_v44  ;;  %4649 = vmatprep.subr.mxu0 %v5087_v57  ;;  %v4278_v44 = vld [vmem:[%s5888_s15] ss:$0 sm:$0xff] }
 0xb7a   :  { %v4925_v45 = vpop.eup %4924 }
 0xb7b   :  { %v4927_v47 = vpop.eup %4926  ;;  %v1969_v50 = vadd.f32 1.0, %v4925_v45 }
 0xb7c   :  { %v1968_v52 = vadd.f32 1.0, %v4927_v47 }
 0xb7d   :  { %v1973_v55 = vmul.f32 %v1969_v50, %v1941_v53 }
 0xb7e   :  { %v1972_v54 = vmul.f32 %v1968_v52, %v1940_v51 }
 0xb80   :  { %4632 = vmatprep.mubr.msk.f32.mxu1 %vm1989_vm4, %v1972_v54 }
 0xb81   :  { %4633 = vmatmul.mubr.msk.f32.gmra.mrb[22].mxu1 %vm1989_vm4, %v1973_v55 }
 0xb82   :  { %4661 = vmatprep.mubr.msk.f32.mxu1 %vm5088_vm1, %v5087_v57 }
 0xc41   :  { %v4631_v60 = vpop.f32.mrb[20].mxu1 }
 0xc42   :  { %v2074_v62 = vadd.f32 %v4631_v60, %v4272_v59  ;;  %v2068_v63 = vpop.f32.mrb[21].mxu1 }
 0xc43   :  { %v2069_v1 = vadd.f32 %v4272_v59, %v2068_v63 }
 0xc44   :  { %v2088_v12 = vadd.f32 %v2074_v62, %v5471_v40 }
 0xc45   :  { %v2087_v2 = vadd.f32 %v2069_v1, %v5469_v48 }
 0xc46   :  { %v2096_v3 = vsel %vm96_vm0, %v2088_v12, 0.0 }
 0xc47   :  { %2097 = vadd.xlane.f32.xlu1 %v2096_v3  ;;  %v2093_v49 = vsel %vm96_vm0, %v2087_v2, 0.0 }
 0xc48   :  { %2094 = vadd.xlane.f32.xlu0 %v2093_v49 }
 0xc54   :  { %v4634_v46 = vpop.f32.mrb[22].mxu1 }
 0xc55   :  { %v2084_v6 = vadd.f32 %v4634_v46, %v4272_v59  ;;  %v2078_v7 = vpop.f32.mrb[23].mxu1 }
 0xc56   :  { %v2079_v8 = vadd.f32 %v4272_v59, %v2078_v7 }
 0xc57   :  { %v2090_v9 = vadd.f32 %v2084_v6, %v5481_v61  ;;  %v4284_v6 = vld [vmem:[%s5878_s5 + $0x1] ss:$0 sm:$0xff] }
 0xc58   :  { %v2089_v10 = vadd.f32 %v2079_v8, %v5477_v58 }
 0xc59   :  { %v2102_v13 = vsel %vm96_vm0, %v2090_v9, 0.0 }
 0xc5a   :  { %2103 = vadd.xlane.f32.xlu1 %v2102_v13  ;;  %v2099_v40 = vsel %vm96_vm0, %v2089_v10, 0.0 }
 0xc5b   :  { %2100 = vadd.xlane.f32.xlu0 %v2099_v40 }
 0xcd4   :  { %v2098_v48 = vpop.xlane.xlu1 %2097 }
 0xcd5   :  { %v2106_v14 = vmul.f32 0.03125, %v2098_v48  ;;  %v2095_v15 = vpop.xlane.xlu0 %2094 }
 0xcd6   :  { %v2105_v56 = vmul.f32 0.03125, %v2095_v15 }
 0xcd7   :  { %v2110_v16 = vsub.f32 %v2088_v12, %v2106_v14 }
 0xcd8   :  { %v2109_v0 = vsub.f32 %v2087_v2, %v2105_v56 }
 0xcd9   :  { %v2114_v17 = vmul.f32 %v2110_v16, %v2110_v16 }
 0xcda   :  { %v2113_v18 = vmul.f32 %v2109_v0, %v2109_v0 }
 0xcdb   :  { %v2120_v19 = vsel %vm96_vm0, %v2114_v17, 0.0 }
 0xcdc   :  { %2121 = vadd.xlane.f32.xlu1 %v2120_v19  ;;  %v2117_v61 = vsel %vm96_vm0, %v2113_v18, 0.0 }
 0xcdd   :  { %2118 = vadd.xlane.f32.xlu0 %v2117_v61 }
 0xce7   :  { %v2104_v58 = vpop.xlane.xlu1 %2103 }
 0xce8   :  { %v2108_v20 = vmul.f32 0.03125, %v2104_v58  ;;  %v2101_v21 = vpop.xlane.xlu0 %2100 }
 0xce9   :  { %v2107_v22 = vmul.f32 0.03125, %v2101_v21 }
 0xcea   :  { %v2112_v23 = vsub.f32 %v2090_v9, %v2108_v20 }
 0xceb   :  { %v2111_v24 = vsub.f32 %v2089_v10, %v2107_v22 }
 0xcec   :  { %v2116_v4 = vmul.f32 %v2112_v23, %v2112_v23 }
 0xced   :  { %v2115_v25 = vmul.f32 %v2111_v24, %v2111_v24 }
 0xcee   :  { %v2126_v26 = vsel %vm96_vm0, %v2116_v4, 0.0 }
 0xcef   :  { %2127 = vadd.xlane.f32.xlu1 %v2126_v26  ;;  %v2123_v27 = vsel %vm96_vm0, %v2115_v25, 0.0 }
 0xcf0   :  { %2124 = vadd.xlane.f32.xlu0 %v2123_v27  ;;  %v5008_v27 = vld [vmem:[#allocation4] ss:$0 sm:$0xff] }
 0xd69   :  { %v2122_v34 = vpop.xlane.xlu1 %2121 }
 0xd6a   :  { %v2130_v35 = vmul.f32 0.03125, %v2122_v34  ;;  %v2119_v36 = vpop.xlane.xlu0 %2118 }
 0xd6b   :  { %v2129_v37 = vmul.f32 0.03125, %v2119_v36  ;;  %v5009_v36 = vld [vmem:[#allocation4 + $0x1] ss:$0 sm:$0xff] }
 0xd6c   :  { %v2134_v38 = vadd.f32 1e-12, %v2130_v35 }
 0xd6d   :  { %v2133_v39 = vadd.f32 1e-12, %v2129_v37 }
 0xd6e   :  { %4928 = vrsqrt.f32 %v2134_v38 }
 0xd6f   :  { %4930 = vrsqrt.f32 %v2133_v39 }
 0xd78   :  { %v4929_v41 = vpop.eup %4928 }
 0xd79   :  { %v4931_v42 = vpop.eup %4930  ;;  %v2142_v5 = vmul.f32 %v4929_v41, %v2110_v16 }
 0xd7a   :  { %v2141_v43 = vmul.f32 %v4931_v42, %v2109_v0 }
 0xd7b   :  { %v2152_v45 = vmul.f32 %v4277_v11, %v2142_v5 }
 0xd7c   :  { %v2128_v47 = vpop.xlane.xlu1 %2127  ;;  %v2151_v50 = vmul.f32 %v4277_v11, %v2141_v43 }
 0xd7d   :  { %v2132_v51 = vmul.f32 0.03125, %v2128_v47  ;;  %v2125_v52 = vpop.xlane.xlu0 %2124  ;;  %v5555_v59 = vadd.f32 %v4278_v44, %v2152_v45 }
 0xd7e   :  { %v2131_v53 = vmul.f32 0.03125, %v2125_v52  ;;  %v5553_v54 = vadd.f32 %v4278_v44, %v2151_v50 }
 0xd7f   :  { %v2136_v55 = vadd.f32 1e-12, %v2132_v51 }
 0xd80   :  { %v2135_v60 = vadd.f32 1e-12, %v2131_v53  ;;  %4643 = vmatprep.mubr.msk.f32.mxu0 %vm96_vm0, %v5553_v54 }
 0xd81   :  { %4932 = vrsqrt.f32 %v2136_v55  ;;  %4644 = vmatmul.mubr.msk.f32.vlgmr.msra.gmra.mrb[24].mxu0 %vm96_vm0, %v5555_v59 }
 0xd82   :  { %4934 = vrsqrt.f32 %v2135_v60 }
 0xd8b   :  { %v4933_v62 = vpop.eup %4932 }
 0xd8c   :  { %v4935_v63 = vpop.eup %4934  ;;  %v2144_v1 = vmul.f32 %v4933_v62, %v2112_v23  ;;  %v5011_v62 = vld [vmem:[#allocation4 + $0x3] ss:$0 sm:$0xff] }
 0xd8d   :  { %v2143_v12 = vmul.f32 %v4935_v63, %v2111_v24 }
 0xd8e   :  { %v2154_v2 = vmul.f32 %v4277_v11, %v2144_v1 }
 0xd8f   :  { %v2153_v3 = vmul.f32 %v4277_v11, %v2143_v12 }
 0xd90   :  { %v5563_v46 = vadd.f32 %v4278_v44, %v2154_v2 }
 0xd91   :  { %v5561_v49 = vadd.f32 %v4278_v44, %v2153_v3  ;;  %v5010_v44 = vld [vmem:[#allocation4 + $0x2] ss:$0 sm:$0xff] }
 0xd93   :  { %4646 = vmatprep.mubr.msk.f32.mxu0 %vm96_vm0, %v5561_v49 }
 0xd94   :  { %4647 = vmatmul.mubr.msk.f32.gmra.mrb[26].mxu0 %vm96_vm0, %v5563_v46 }
 0xd95   :  { %4651 = vmatprep.mubr.msk.f32.mxu0 %vm5088_vm1, %v5087_v57 }
 0xe54   :  { %v4645_v7 = vpop.f32.mrb[24].mxu0 }
 0xe55   :  { %v2256_v8 = vpop.f32.mrb[25].mxu0  ;;  %v5580_v10 = vadd.f32 %v4645_v7, %v4284_v6 }
 0xe56   :  { %v5574_v9 = vadd.f32 %v4284_v6, %v2256_v8 }
 0xe57   :  { %v2611_v40 = vmul.f32 0.25, %v5580_v10 }
 0xe58   :  { %2443 = vrot.lane.b32.xlu1 %v5574_v9, %s5090_s29  ;;  %2277 = vrot.lane.b32.xlu0 %v5574_v9, %s5089_s27  ;;  %v2275_v13 = vmul.f32 0.25, %v5574_v9 }
 0xe5c   :  { %2779 = vrot.lane.b32.xlu0 %v5580_v10, %s5090_s29  ;;  %2441 = vrot.lane.b32.xlu1 %v2275_v13, %s5091_s30 }
 0xe60   :  { %2613 = vrot.lane.b32.xlu1 %v5580_v10, %s5089_s27 }
 0xe64   :  { %2777 = vrot.lane.b32.xlu1 %v2611_v40, %s5091_s30 }
 0xe67   :  { %v4648_v48 = vpop.f32.mrb[26].mxu0 }
 0xe68   :  { %v2266_v14 = vpop.f32.mrb[27].mxu0  ;;  %v5596_v56 = vadd.f32 %v4648_v48, %v4284_v6 }
 0xe69   :  { %v5590_v15 = vadd.f32 %v4284_v6, %v2266_v14 }
 0xe6a   :  { %v3283_v0 = vmul.f32 0.25, %v5596_v56 }
 0xe6b   :  { %3115 = vrot.lane.b32.xlu1 %v5590_v15, %s5090_s29  ;;  %2949 = vrot.lane.b32.xlu0 %v5590_v15, %s5089_s27  ;;  %v2947_v16 = vmul.f32 0.25, %v5590_v15 }
 0xe6f   :  { %3285 = vrot.lane.b32.xlu1 %v5596_v56, %s5089_s27  ;;  %3113 = vrot.lane.b32.xlu0 %v2947_v16, %s5091_s30 }
 0xe73   :  { %3449 = vrot.lane.b32.xlu1 %v3283_v0, %s5091_s30  ;;  %3451 = vrot.lane.b32.xlu0 %v5596_v56, %s5090_s29 }
 0xeca   :  { %v2444_v17 = vpop.permute.xlu1 %2443  ;;  %v2278_v18 = vpop.permute.xlu0 %2277 }
 0xecb   :  { %4650 = vmatpush3.xpose.msk.msra.mxu0 %vm287_vm2, %v2278_v18  ;;  %4660 = vmatpush3.xpose.msk.msra.mxu1 %vm287_vm2, %v2444_v17 }
 0xecc   :  { %4669 = vmatprep.subr.mxu1 %v5087_v57  ;;  %4654 = vmatprep.subr.mxu0 %v5087_v57 }
 0xece   :  { %v2442_v19 = vpop.permute.xlu1 %2441  ;;  %4652 = vmatmul.mubr.msk.f32.vlgmr.msra.gmra.mrb[28].mxu0 %vm287_vm2, %v2275_v13  ;;  %v2780_v58 = vpop.permute.xlu0 %2779 }
 0xecf   :  { %4662 = vmatmul.mubr.msk.f32.vlgmr.msra.gmra.mrb[24].mxu1 %vm287_vm2, %v2442_v19  ;;  %4656 = vmatprep.mubr.msk.f32.mxu0 %vm5088_vm1, %v5087_v57 }
 0xed0   :  { %4671 = vmatprep.mubr.msk.f32.mxu1 %vm5088_vm1, %v5087_v57 }
 0xed2   :  { %v2614_v61 = vpop.permute.xlu1 %2613 }
 0xed3   :  { %4670 = vmatpush3.xpose.msk.msra.mxu1 %vm287_vm2, %v2614_v61 }
 0xed4   :  { %4679 = vmatprep.subr.mxu1 %v5087_v57 }
 0xed6   :  { %4672 = vmatmul.mubr.msk.f32.vlgmr.msra.gmra.mrb[26].mxu1 %vm287_vm2, %v2611_v40  ;;  %v2778_v20 = vpop.permute.xlu1 %2777 }
 0xed7   :  { %4680 = vmatpush3.xpose.msk.msra.mxu1 %vm287_vm2, %v2780_v58  ;;  %4681 = vmatprep.mubr.msk.f32.mxu1 %vm5088_vm1, %v5087_v57 }
 0xed8   :  { %4689 = vmatprep.subr.mxu1 %v5087_v57 }
 0xeda   :  { %4682 = vmatmul.mubr.msk.f32.vlgmr.msra.gmra.mrb[28].mxu1 %vm287_vm2, %v2778_v20 }
 0xedb   :  { %4691 = vmatprep.mubr.msk.f32.mxu1 %vm5088_vm1, %v5087_v57 }
 0xedd   :  { %v2950_v21 = vpop.permute.xlu0 %2949  ;;  %v3116_v22 = vpop.permute.xlu1 %3115 }
 0xede   :  { %4690 = vmatpush3.xpose.msk.msra.mxu1 %vm287_vm2, %v2950_v21 }
 0xedf   :  { %4699 = vmatprep.subr.mxu1 %v5087_v57 }
 0xee1   :  { %4692 = vmatmul.mubr.msk.f32.vlgmr.msra.gmra.mrb[30].mxu1 %vm287_vm2, %v2947_v16  ;;  %v3114_v23 = vpop.permute.xlu0 %3113  ;;  %v3286_v24 = vpop.permute.xlu1 %3285 }
 0xee2   :  { %4700 = vmatpush3.xpose.msk.msra.mxu1 %vm287_vm2, %v3116_v22  ;;  %4701 = vmatprep.mubr.msk.f32.mxu1 %vm5088_vm1, %v5087_v57 }
 0xee3   :  { %4709 = vmatprep.subr.mxu1 %v5087_v57 }
 0xee5   :  { %4702 = vmatmul.mubr.msk.f32.vlgmr.msra.gmra.mrb[32].mxu1 %vm287_vm2, %v3114_v23  ;;  %v3452_v4 = vpop.permute.xlu0 %3451  ;;  %v3450_v25 = vpop.permute.xlu1 %3449 }
 0xee6   :  { %4710 = vmatpush3.xpose.msk.msra.mxu1 %vm287_vm2, %v3286_v24  ;;  %4711 = vmatprep.mubr.msk.f32.mxu1 %vm5088_vm1, %v5087_v57 }
 0xee7   :  { %4719 = vmatprep.subr.mxu1 %v5087_v57 }
 0xee9   :  { %4712 = vmatmul.mubr.msk.f32.vlgmr.msra.gmra.mrb[34].mxu1 %vm287_vm2, %v3283_v0 }
 0xeea   :  { %4720 = vmatpush3.xpose.msk.msra.mxu1 %vm287_vm2, %v3452_v4  ;;  %4721 = vmatprep.mubr.msk.f32.mxu1 %vm5088_vm1, %v5087_v57 }
 0xeed   :  { %4722 = vmatmul.mubr.msk.f32.vlgmr.msra.gmra.mrb[36].mxu1 %vm287_vm2, %v3450_v25 }
 0xfa1   :  { %v2350_v26 = vpop.f32.mrb[28].mxu0 }
 0xfa2   :  { %v2351_v28 = vadd.f32 %v5008_v27, %v2350_v26  ;;  %v4653_v29 = vpop.f32.mrb[29].mxu0  ;;  %v2515_v30 = vpop.f32.mrb[24].mxu1 }
 0xfa3   :  { %v2516_v31 = vadd.f32 %v5008_v27, %v2515_v30  ;;  %v4663_v32 = vpop.f32.mrb[25].mxu1 }
 0xfa4   :  { %v2354_v33 = vsel %vm363_vm3, %v2351_v28, -inf }
 0xfa5   :  { %2355 = vmax.xlane.f32.xlu0 %v2354_v33  ;;  %v2519_v34 = vsel %vm363_vm3, %v2516_v31, -inf }
 0xfa6   :  { %2520 = vmax.xlane.f32.xlu1 %v2519_v34 }
 0xfa9   :  { %v2686_v35 = vpop.f32.mrb[26].mxu1 }
 0xfaa   :  { %v5645_v37 = vadd.f32 %v5009_v36, %v2686_v35  ;;  %v4673_v38 = vpop.f32.mrb[27].mxu1 }
 0xfac   :  { %v2690_v39 = vsel %vm363_vm3, %v5645_v37, -inf }
 0xfad   :  { %2691 = vmax.xlane.f32.xlu0 %v2690_v39  ;;  %v2851_v41 = vpop.f32.mrb[28].mxu1 }
 0xfae   :  { %v2852_v11 = vadd.f32 %v5009_v36, %v2851_v41  ;;  %v4683_v42 = vpop.f32.mrb[29].mxu1 }
 0xfb0   :  { %v2855_v5 = vsel %vm363_vm3, %v2852_v11, -inf }
 0xfb1   :  { %2856 = vmax.xlane.f32.xlu0 %v2855_v5 }
 0xfb4   :  { %v3022_v43 = vpop.f32.mrb[30].mxu1 }
 0xfb5   :  { %v3023_v45 = vadd.f32 %v5010_v44, %v3022_v43  ;;  %v4693_v47 = vpop.f32.mrb[31].mxu1 }
 0xfb7   :  { %v3026_v50 = vsel %vm363_vm3, %v3023_v45, -inf }
 0xfb8   :  { %3027 = vmax.xlane.f32.xlu0 %v3026_v50  ;;  %v3187_v51 = vpop.f32.mrb[32].mxu1 }
 0xfb9   :  { %v3188_v52 = vadd.f32 %v5010_v44, %v3187_v51  ;;  %v4703_v53 = vpop.f32.mrb[33].mxu1 }
 0xfbb   :  { %v3191_v55 = vsel %vm363_vm3, %v3188_v52, -inf }
 0xfbc   :  { %3192 = vmax.xlane.f32.xlu1 %v3191_v55  ;;  %v3358_v60 = vpop.f32.mrb[34].mxu1 }
 0xfbd   :  { %v3359_v63 = vadd.f32 %v5011_v62, %v3358_v60  ;;  %v4713_v1 = vpop.f32.mrb[35].mxu1 }
 0xfbf   :  { %v3362_v12 = vsel %vm363_vm3, %v3359_v63, -inf }
 0xfc0   :  { %3363 = vmax.xlane.f32.xlu0 %v3362_v12  ;;  %v3523_v2 = vpop.f32.mrb[36].mxu1 }
 0xfc1   :  { %v4723_v3 = vpop.f32.mrb[37].mxu1  ;;  %v3524_v6 = vadd.f32 %v5011_v62, %v3523_v2 }
 0xfc3   :  { %v3527_v7 = vsel %vm363_vm3, %v3524_v6, -inf }
 0xfcd   :  { %2365 = vrot.lane.b32.xlu1 %v5574_v9, %s5092_s24 }
 0xff1   :  { %3528 = vmax.xlane.f32.xlu1 %v3527_v7 }
0x1002   :  { %2701 = vrot.lane.b32.xlu1 %v5580_v10, %s5092_s24 }
0x1006   :  { %2866 = vrot.lane.b32.xlu1 %v5580_v10, %s5093_s23 }
0x100a   :  { %3037 = vrot.lane.b32.xlu1 %v5590_v15, %s5092_s24 }
0x1032   :  { %v2356_v8 = vpop.xlane.xlu0 %2355 }
0x1033   :  { %v2357_v13 = vsub.f32 %v2351_v28, %v2356_v8  ;;  %v2521_v40 = vpop.xlane.xlu1 %2520 }
0x1034   :  { %v2522_v48 = vsub.f32 %v2516_v31, %v2521_v40 }
0x1035   :  { %v2358_v14 = vmul.f32 1.442695, %v2357_v13 }
0x1036   :  { %v2523_v16 = vmul.f32 1.442695, %v2522_v48 }
0x1037   :  { %4936 = vpow2.f32 %v2358_v14 }
0x1038   :  { %4938 = vpow2.f32 %v2523_v16 }
0x103a   :  { %v2692_v0 = vpop.xlane.xlu0 %2691 }
0x103b   :  { %v2693_v4 = vsub.f32 %v5645_v37, %v2692_v0 }
0x103d   :  { %v2694_v26 = vmul.f32 1.442695, %v2693_v4 }
0x103e   :  { %v2857_v17 = vpop.xlane.xlu0 %2856 }
0x103f   :  { %v2858_v18 = vsub.f32 %v2852_v11, %v2857_v17 }
0x1041   :  { %v4937_v19 = vpop.eup %4936  ;;  %v2859_v61 = vmul.f32 1.442695, %v2858_v18 }
0x1042   :  { %v5662_v58 = vpop.eup %4938  ;;  %v2360_v10 = vsel %vm363_vm3, %v4937_v19, 0.0 }
0x1043   :  { %4940 = vpow2.f32 %v2859_v61  ;;  %2361 = vadd.xlane.f32.xlu0 %v2360_v10  ;;  %v2525_v20 = vsel %vm363_vm3, %v5662_v58, 0.0 }
0x1044   :  { %2526 = vadd.xlane.f32.xlu1 %v2525_v20  ;;  %4942 = vpow2.f32 %v2694_v26  ;;  %v4313_v20 = vld [vmem:[%s5879_s6 + $0x20] sm:$0xff] }
0x1045   :  { %v3028_v25 = vpop.xlane.xlu0 %3027 }
0x1046   :  { %v3029_v27 = vsub.f32 %v3023_v45, %v3028_v25 }
0x1048   :  { %v3030_v29 = vmul.f32 1.442695, %v3029_v27 }
0x1049   :  { %v3193_v21 = vpop.xlane.xlu1 %3192 }
0x104a   :  { %4944 = vpow2.f32 %v3030_v29  ;;  %v3194_v31 = vsub.f32 %v3188_v52, %v3193_v21  ;;  %v4314_v21 = vld [vmem:[%s5879_s6 + $0x28] sm:$0xff] }
0x104c   :  { %v3195_v33 = vmul.f32 1.442695, %v3194_v31 }
0x104d   :  { %v5667_v22 = vpop.eup %4940  ;;  %v2366_v23 = vpop.permute.xlu1 %2365 }
0x104e   :  { %4655 = vmatpush3.msra.mxu0 %v2366_v23  ;;  %v2861_v24 = vsel %vm363_vm3, %v5667_v22, 0.0  ;;  %v3364_v28 = vpop.xlane.xlu0 %3363  ;;  %v4943_v34 = vpop.eup %4942  ;;  %v4827_v23 = vpack.c.bf16 %v4314_v21, %v4313_v20 }
0x104f   :  { %2862 = vadd.xlane.f32.xlu1 %v2861_v24  ;;  %4664 = vmatprep.subr.mxu0 %v5087_v57  ;;  %v3365_v30 = vsub.f32 %v3359_v63, %v3364_v28 }
0x1050   :  { %4828 = vmatprep.subr.bf16.mxu1 %v4827_v23 }
0x1051   :  { %v3366_v32 = vmul.f32 1.442695, %v3365_v30  ;;  %4830 = vmatpush3.bf16.msra.mxu1 %v4827_v23  ;;  %v4327_v23 = vld [vmem:[%s5883_s10 + $0x20] sm:$0xff] }
0x1053   :  { %4946 = vpow2.f32 %v3366_v32 }
0x1054   :  { %4948 = vpow2.f32 %v3195_v33  ;;  %v4945_v35 = vpop.eup %4944 }
0x1059   :  { %2530 = vrot.lane.b32.xlu0 %v5574_v9, %s5093_s23  ;;  %v2696_v9 = vsel %vm363_vm3, %v4943_v34, 0.0 }
0x105d   :  { %v5679_v36 = vpop.eup %4946 }
0x105e   :  { %v3368_v39 = vsel %vm363_vm3, %v5679_v36, 0.0  ;;  %v4949_v41 = vpop.eup %4948 }
0x105f   :  { %v3197_v42 = vsel %vm363_vm3, %v4949_v41, 0.0 }
0x1060   :  { %3202 = vrot.lane.b32.xlu1 %v5590_v15, %s5093_s23  ;;  %v3032_v15 = vsel %vm363_vm3, %v4945_v35, 0.0 }
0x1078   :  { %2697 = vadd.xlane.f32.xlu0 %v2696_v9 }
0x107c   :  { %3033 = vadd.xlane.f32.xlu0 %v3032_v15 }
0x107e   :  { %v3529_v37 = vpop.xlane.xlu1 %3528 }
0x107f   :  { %v3530_v38 = vsub.f32 %v3524_v6, %v3529_v37 }
0x1080   :  { %3369 = vadd.xlane.f32.xlu0 %v3368_v39 }
0x1081   :  { %v3531_v11 = vmul.f32 1.442695, %v3530_v38 }
0x1082   :  { %v2702_v44 = vpop.permute.xlu1 %2701 }
0x1083   :  { %4950 = vpow2.f32 %v3531_v11 }
0x1084   :  { %3198 = vadd.xlane.f32.xlu1 %v3197_v42 }
0x1086   :  { %v2867_v45 = vpop.permute.xlu1 %2866 }
0x108a   :  { %v3038_v47 = vpop.permute.xlu1 %3037 }
0x108d   :  { %v5684_v5 = vpop.eup %4950 }
0x108e   :  { %v3533_v43 = vsel %vm363_vm3, %v5684_v5, 0.0 }
0x108f   :  { %3534 = vadd.xlane.f32.xlu0 %v3533_v43 }
0x1095   :  { %3538 = vrot.lane.b32.xlu1 %v5596_v56, %s5093_s23 }
0x10a5   :  { %3373 = vrot.lane.b32.xlu0 %v5596_v56, %s5092_s24 }
0x10d0   :  { %v2362_v50 = vpop.xlane.xlu0 %2361 }
0x10d1   :  { %4952 = vrcp.f32 %v2362_v50  ;;  %v2527_v51 = vpop.xlane.xlu1 %2526 }
0x10d2   :  { %4954 = vrcp.f32 %v2527_v51 }
0x10d4   :  { %v2531_v60 = vpop.permute.xlu0 %2530 }
0x10db   :  { %v4953_v52 = vpop.eup %4952 }
0x10dc   :  { %v2364_v53 = vmul.f32 %v4953_v52, %v4937_v19  ;;  %v4955_v55 = vpop.eup %4954  ;;  %v2863_v56 = vpop.xlane.xlu1 %2862 }
0x10dd   :  { %v2529_v62 = vmul.f32 %v4955_v55, %v5662_v58 }
0x10de   :  { %4657 = vmatmul.mubr.msk.f32.vlgmr.msra.gmra.mrb[30].mxu0 %vm363_vm3, %v2364_v53 }
0x10df   :  { %4665 = vmatpush3.msra.mxu0 %v2531_v60  ;;  %4666 = vmatprep.mubr.msk.f32.mxu0 %vm5088_vm1, %v5087_v57 }
0x10e0   :  { %4674 = vmatprep.subr.mxu0 %v5087_v57  ;;  %v3203_v12 = vpop.permute.xlu1 %3202 }
0x10e2   :  { %4667 = vmatmul.mubr.msk.f32.vlgmr.msra.gmra.mrb[32].mxu0 %vm363_vm3, %v2529_v62 }
0x10e3   :  { %4675 = vmatpush3.msra.mxu0 %v2702_v44  ;;  %4676 = vmatprep.mubr.msk.f32.mxu0 %vm5088_vm1, %v5087_v57 }
0x10e4   :  { %4684 = vmatprep.subr.mxu0 %v5087_v57 }
0x1105   :  { %v2698_v63 = vpop.xlane.xlu0 %2697 }
0x1106   :  { %4956 = vrcp.f32 %v2698_v63 }
0x1107   :  { %4958 = vrcp.f32 %v2863_v56 }
0x1109   :  { %v3034_v1 = vpop.xlane.xlu0 %3033 }
0x110a   :  { %4960 = vrcp.f32 %v3034_v1 }
0x110d   :  { %v3370_v6 = vpop.xlane.xlu0 %3369 }
0x1110   :  { %v4957_v2 = vpop.eup %4956 }
0x1111   :  { %v2700_v3 = vmul.f32 %v4957_v2, %v4943_v34  ;;  %v3199_v7 = vpop.xlane.xlu1 %3198  ;;  %v4959_v8 = vpop.eup %4958 }
0x1112   :  { %4962 = vrcp.f32 %v3199_v7  ;;  %v2865_v13 = vmul.f32 %v4959_v8, %v5667_v22  ;;  %v4315_v22 = vld [vmem:[%s5879_s6 + $0x30] sm:$0xff] }
0x1113   :  { %4677 = vmatmul.mubr.msk.f32.vlgmr.msra.gmra.mrb[34].mxu0 %vm363_vm3, %v2700_v3  ;;  %4964 = vrcp.f32 %v3370_v6 }
0x1114   :  { %4685 = vmatpush3.msra.mxu0 %v2867_v45  ;;  %4686 = vmatprep.mubr.msk.f32.mxu0 %vm5088_vm1, %v5087_v57  ;;  %v4961_v40 = vpop.eup %4960  ;;  %v4318_v45 = vld [vmem:[%s5880_s7 + $0x1] ss:$0 sm:$0xff] }
0x1115   :  { %4694 = vmatprep.subr.mxu0 %v5087_v57  ;;  %v3036_v48 = vmul.f32 %v4961_v40, %v4945_v35  ;;  %v3539_v61 = vpop.permute.xlu1 %3538 }
0x1117   :  { %4687 = vmatmul.mubr.msk.f32.vlgmr.msra.gmra.mrb[36].mxu0 %vm363_vm3, %v2865_v13 }
0x1118   :  { %4695 = vmatpush3.msra.mxu0 %v3038_v47  ;;  %4696 = vmatprep.mubr.msk.f32.mxu0 %vm5088_vm1, %v5087_v57 }
0x1119   :  { %4704 = vmatprep.subr.mxu0 %v5087_v57 }
0x111b   :  { %4697 = vmatmul.mubr.msk.f32.vlgmr.msra.gmra.mrb[38].mxu0 %vm363_vm3, %v3036_v48 }
0x111c   :  { %v4963_v14 = vpop.eup %4962  ;;  %4705 = vmatpush3.msra.mxu0 %v3203_v12  ;;  %v3535_v16 = vpop.xlane.xlu0 %3534  ;;  %4706 = vmatprep.mubr.msk.f32.mxu0 %vm5088_vm1, %v5087_v57 }
0x111d   :  { %v3201_v0 = vmul.f32 %v4963_v14, %v4949_v41  ;;  %4966 = vrcp.f32 %v3535_v16  ;;  %4714 = vmatprep.subr.mxu0 %v5087_v57  ;;  %v4965_v17 = vpop.eup %4964 }
0x111e   :  { %v3372_v19 = vmul.f32 %v4965_v17, %v5679_v36 }
0x111f   :  { %4707 = vmatmul.mubr.msk.f32.vlgmr.msra.gmra.mrb[40].mxu0 %vm363_vm3, %v3201_v0 }
0x1120   :  { %v3374_v18 = vpop.permute.xlu0 %3373  ;;  %4716 = vmatprep.mubr.msk.f32.mxu0 %vm5088_vm1, %v5087_v57 }
0x1121   :  { %4715 = vmatpush3.msra.mxu0 %v3374_v18 }
0x1122   :  { %4724 = vmatprep.subr.mxu0 %v5087_v57 }
0x1123   :  { %4717 = vmatmul.mubr.msk.f32.vlgmr.msra.gmra.mrb[42].mxu0 %vm363_vm3, %v3372_v19 }
0x1124   :  { %4725 = vmatpush3.msra.mxu0 %v3539_v61  ;;  %4726 = vmatprep.mubr.msk.f32.mxu0 %vm5088_vm1, %v5087_v57  ;;  %v4316_v57 = vld [vmem:[%s5879_s6 + $0x38] sm:$0xff] }
0x1125   :  { %v4831_v24 = vpack.c.bf16 %v4316_v57, %v4315_v22  ;;  %v4328_v57 = vld [vmem:[%s5883_s10 + $0x28] sm:$0xff] }
0x1127   :  { %v4967_v58 = vpop.eup %4966  ;;  %4832 = vmatprep.subr.bf16.mxu1 %v4831_v24 }
0x1128   :  { %v3537_v10 = vmul.f32 %v4967_v58, %v5684_v5  ;;  %4834 = vmatpush3.bf16.msra.mxu1 %v4831_v24  ;;  %v4835_v24 = vpack.c.bf16 %v4328_v57, %v4327_v23 }
0x112a   :  { %4727 = vmatmul.mubr.msk.f32.vlgmr.msra.gmra.mrb[44].mxu0 %vm363_vm3, %v3537_v10  ;;  %4836 = vmatprep.subr.bf16.mxu0 %v4835_v24 }
0x112b   :  { %4838 = vmatpush3.bf16.msra.mxu0 %v4835_v24 }
0x11b1   :  { %v2437_v4 = vpop.f32.mrb[30].mxu0 }
0x11b2   :  { %v4658_v25 = vpop.f32.mrb[31].mxu0 }
0x11b3   :  { %v4330_v25 = vld [vmem:[%s5883_s10 + $0x38] sm:$0xff] }
0x11b5   :  { %v2602_v26 = vpop.f32.mrb[32].mxu0 }
0x11b6   :  { %2607 = vrot.lane.b32.xlu0 %v2602_v26, %s5094_s21  ;;  %v4668_v27 = vpop.f32.mrb[33].mxu0 }
0x11e6   :  { %v2773_v28 = vpop.f32.mrb[34].mxu0 }
0x11e7   :  { %v4678_v29 = vpop.f32.mrb[35].mxu0 }
0x11ea   :  { %v2938_v30 = vpop.f32.mrb[36].mxu0 }
0x11eb   :  { %2943 = vrot.lane.b32.xlu1 %v2938_v30, %s5094_s21  ;;  %v4688_v31 = vpop.f32.mrb[37].mxu0 }
0x11ee   :  { %v3109_v32 = vpop.f32.mrb[38].mxu0 }
0x11ef   :  { %v4698_v33 = vpop.f32.mrb[39].mxu0 }
0x11f2   :  { %v3274_v34 = vpop.f32.mrb[40].mxu0 }
0x11f3   :  { %3279 = vrot.lane.b32.xlu0 %v3274_v34, %s5094_s21  ;;  %v4708_v9 = vpop.f32.mrb[41].mxu0  ;;  %v4325_v34 = vld [vmem:[%s5881_s8 + $0x1] ss:$0 sm:$0xff] }
0x11f6   :  { %v3445_v35 = vpop.f32.mrb[42].mxu0 }
0x11f7   :  { %v4718_v15 = vpop.f32.mrb[43].mxu0 }
0x11fd   :  { %v3610_v36 = vpop.f32.mrb[44].mxu0 }
0x11fe   :  { %3615 = vrot.lane.b32.xlu1 %v3610_v36, %s5094_s21  ;;  %v4728_v37 = vpop.f32.mrb[45].mxu0  ;;  %v4326_v36 = vld [vmem:[%s5882_s9 + $0x1] ss:$0 sm:$0xff] }
0x1228   :  { %v2608_v38 = vpop.permute.xlu0 %2607 }
0x1229   :  { %v2610_v39 = vsel %vm287_vm2, %v2437_v4, %v2608_v38  ;;  %v4329_v4 = vld [vmem:[%s5883_s10 + $0x30] sm:$0xff] }
0x122a   :  { %4737 = vmatprep.mubr.msk.f32.mxu1 %vm96_vm0, %v2610_v39  ;;  %v4839_v26 = vpack.c.bf16 %v4330_v25, %v4329_v4 }
0x122c   :  { %4840 = vmatprep.subr.bf16.mxu0 %v4839_v26 }
0x122d   :  { %4842 = vmatpush3.bf16.msra.mxu0 %v4839_v26 }
0x125d   :  { %v2944_v41 = vpop.permute.xlu1 %2943 }
0x125e   :  { %v2946_v11 = vsel %vm287_vm2, %v2773_v28, %v2944_v41 }
0x125f   :  { %4738 = vmatmul.mubr.msk.f32.vlgmr.msra.gmra.mrb[38].mxu1 %vm96_vm0, %v2946_v11 }
0x1265   :  { %v3280_v42 = vpop.permute.xlu0 %3279 }
0x1266   :  { %v3282_v5 = vsel %vm287_vm2, %v3109_v32, %v3280_v42 }
0x1267   :  { %4740 = vmatprep.mubr.msk.f32.mxu1 %vm96_vm0, %v3282_v5 }
0x1270   :  { %v3616_v43 = vpop.permute.xlu1 %3615 }
0x1271   :  { %v3618_v44 = vsel %vm287_vm2, %v3445_v35, %v3616_v43 }
0x1272   :  { %4741 = vmatmul.mubr.msk.f32.gmra.mrb[40].mxu1 %vm96_vm0, %v3618_v44 }
0x1332   :  { %v4739_v47 = vpop.f32.mrb[38].mxu1 }
0x1333   :  { %v3716_v50 = vadd.f32 %v4739_v47, %v4318_v45  ;;  %v3710_v51 = vpop.f32.mrb[39].mxu1 }
0x1334   :  { %v3711_v52 = vadd.f32 %v4318_v45, %v3710_v51 }
0x1335   :  { %v3730_v53 = vadd.f32 %v3716_v50, %v5555_v59 }
0x1336   :  { %v3729_v55 = vadd.f32 %v3711_v52, %v5553_v54 }
0x1337   :  { %v3740_v60 = vsel %vm96_vm0, %v3730_v53, 0.0 }
0x1338   :  { %3741 = vadd.xlane.f32.xlu1 %v3740_v60  ;;  %v3737_v62 = vsel %vm96_vm0, %v3729_v55, 0.0 }
0x1339   :  { %3738 = vadd.xlane.f32.xlu0 %v3737_v62 }
0x1345   :  { %v4742_v56 = vpop.f32.mrb[40].mxu1 }
0x1346   :  { %v3720_v63 = vpop.f32.mrb[41].mxu1  ;;  %v3726_v1 = vadd.f32 %v4742_v56, %v4318_v45  ;;  %v4337_v56 = vld [vmem:[%s5885_s12 + $0x40] sm:$0xff] }
0x1347   :  { %v3721_v12 = vadd.f32 %v4318_v45, %v3720_v63  ;;  %v4338_v63 = vld [vmem:[%s5885_s12 + $0x48] sm:$0xff] }
0x1348   :  { %v3732_v3 = vadd.f32 %v3726_v1, %v5563_v46  ;;  %v4843_v1 = vpack.c.bf16 %v4338_v63, %v4337_v56 }
0x1349   :  { %v3731_v2 = vadd.f32 %v3721_v12, %v5561_v49  ;;  %v4339_v12 = vld [vmem:[%s5885_s12 + $0x50] sm:$0xff] }
0x134a   :  { %v3746_v59 = vsel %vm96_vm0, %v3732_v3, 0.0  ;;  %4844 = vmatprep.subr.bf16.mxu1 %v4843_v1 }
0x134b   :  { %v3743_v6 = vsel %vm96_vm0, %v3731_v2, 0.0  ;;  %4846 = vmatpush3.bf16.msra.mxu1 %v4843_v1 }
0x134c   :  { %3744 = vadd.xlane.f32.xlu0 %v3743_v6  ;;  %v4341_v6 = vld [vmem:[%s5885_s12 + $0x60] sm:$0xff] }
0x1350   :  { %3747 = vadd.xlane.f32.xlu0 %v3746_v59  ;;  %v4342_v59 = vld [vmem:[%s5885_s12 + $0x68] sm:$0xff] }
0x13c5   :  { %v3742_v54 = vpop.xlane.xlu1 %3741 }
0x13c6   :  { %v3750_v7 = vmul.f32 0.03125, %v3742_v54  ;;  %v3739_v8 = vpop.xlane.xlu0 %3738  ;;  %v4851_v54 = vpack.c.bf16 %v4342_v59, %v4341_v6 }
0x13c7   :  { %v3749_v13 = vmul.f32 0.03125, %v3739_v8  ;;  %v4344_v8 = vld [vmem:[%s5885_s12 + $0x78] sm:$0xff] }
0x13c8   :  { %v3754_v40 = vsub.f32 %v3730_v53, %v3750_v7  ;;  %v4343_v7 = vld [vmem:[%s5885_s12 + $0x70] sm:$0xff] }
0x13c9   :  { %v3753_v48 = vsub.f32 %v3729_v55, %v3749_v13  ;;  %v4855_v13 = vpack.c.bf16 %v4344_v8, %v4343_v7 }
0x13ca   :  { %v3758_v14 = vmul.f32 %v3754_v40, %v3754_v40 }
0x13cb   :  { %v3757_v16 = vmul.f32 %v3753_v48, %v3753_v48 }
0x13cc   :  { %v3764_v0 = vsel %vm96_vm0, %v3758_v14, 0.0 }
0x13cd   :  { %3765 = vadd.xlane.f32.xlu1 %v3764_v0  ;;  %v3761_v49 = vsel %vm96_vm0, %v3757_v16, 0.0 }
0x13ce   :  { %3762 = vadd.xlane.f32.xlu0 %v3761_v49 }
0x13d9   :  { %v3745_v46 = vpop.xlane.xlu0 %3744 }
0x13da   :  { %v3751_v17 = vmul.f32 0.03125, %v3745_v46 }
0x13dc   :  { %v3755_v18 = vsub.f32 %v3731_v2, %v3751_v17  ;;  %v4340_v2 = vld [vmem:[%s5885_s12 + $0x58] sm:$0xff] }
0x13dd   :  { %v3748_v19 = vpop.xlane.xlu0 %3747 }
0x13de   :  { %v3752_v61 = vmul.f32 0.03125, %v3748_v19  ;;  %v3759_v58 = vmul.f32 %v3755_v18, %v3755_v18 }
0x13e0   :  { %v3756_v10 = vsub.f32 %v3732_v3, %v3752_v61  ;;  %v3767_v20 = vsel %vm96_vm0, %v3759_v58, 0.0  ;;  %v4847_v3 = vpack.c.bf16 %v4340_v2, %v4339_v12 }
0x13e1   :  { %3768 = vadd.xlane.f32.xlu0 %v3767_v20 }
0x13e2   :  { %v3760_v21 = vmul.f32 %v3756_v10, %v3756_v10  ;;  %4848 = vmatprep.subr.bf16.mxu1 %v4847_v3 }
0x13e3   :  { %4850 = vmatpush3.bf16.msra.mxu1 %v4847_v3 }
0x13e4   :  { %v3770_v22 = vsel %vm96_vm0, %v3760_v21, 0.0  ;;  %4852 = vmatprep.subr.bf16.mxu1 %v4851_v54 }
0x13e5   :  { %3771 = vadd.xlane.f32.xlu1 %v3770_v22 }
0x13e7   :  { %4854 = vmatpush3.bf16.msra.mxu1 %v4851_v54 }
0x13e8   :  { %4856 = vmatprep.subr.bf16.mxu1 %v4855_v13 }
0x13eb   :  { %4858 = vmatpush3.bf16.msra.mxu1 %v4855_v13 }
0x145a   :  { %v3766_v27 = vpop.xlane.xlu1 %3765 }
0x145b   :  { %v3774_v28 = vmul.f32 0.03125, %v3766_v27  ;;  %v3763_v29 = vpop.xlane.xlu0 %3762 }
0x145c   :  { %v3773_v30 = vmul.f32 0.03125, %v3763_v29 }
0x145d   :  { %v3778_v31 = vadd.f32 1e-12, %v3774_v28 }
0x145e   :  { %v3777_v32 = vadd.f32 1e-12, %v3773_v30 }
0x145f   :  { %4968 = vrsqrt.f32 %v3778_v31 }
0x1460   :  { %4970 = vrsqrt.f32 %v3777_v32 }
0x1469   :  { %v4969_v33 = vpop.eup %4968 }
0x146a   :  { %v4971_v9 = vpop.eup %4970  ;;  %v3786_v35 = vmul.f32 %v4969_v33, %v3754_v40  ;;  %v4332_v40 = vld [vmem:[%s5884_s11 + $0x1] ss:$0 sm:$0xff] }
0x146b   :  { %v3785_v15 = vmul.f32 %v4971_v9, %v3753_v48 }
0x146c   :  { %v3796_v37 = vmul.f32 %v4325_v34, %v3786_v35 }
0x146d   :  { %v3795_v38 = vmul.f32 %v4325_v34, %v3785_v15 }
0x146e   :  { %v3769_v39 = vpop.xlane.xlu0 %3768  ;;  %v5783_v42 = vadd.f32 %v4326_v36, %v3796_v37 }
0x146f   :  { %v3775_v41 = vmul.f32 0.03125, %v3769_v39  ;;  %v5781_v11 = vadd.f32 %v4326_v36, %v3795_v38 }
0x1471   :  { %v3779_v5 = vadd.f32 1e-12, %v3775_v41  ;;  %4751 = vmatprep.mubr.msk.f32.mxu0 %vm96_vm0, %v5781_v11 }
0x1472   :  { %v3772_v43 = vpop.xlane.xlu1 %3771  ;;  %4752 = vmatmul.mubr.msk.f32.vlgmr.msra.gmra.mrb[46].mxu0 %vm96_vm0, %v5783_v42 }
0x1473   :  { %4972 = vrsqrt.f32 %v3779_v5  ;;  %v3776_v44 = vmul.f32 0.03125, %v3772_v43 }
0x1475   :  { %v3780_v45 = vadd.f32 1e-12, %v3776_v44 }
0x1477   :  { %4974 = vrsqrt.f32 %v3780_v45 }
0x147d   :  { %v4973_v47 = vpop.eup %4972 }
0x147e   :  { %v3787_v50 = vmul.f32 %v4973_v47, %v3755_v18 }
0x1480   :  { %v3797_v51 = vmul.f32 %v4325_v34, %v3787_v50 }
0x1481   :  { %v4975_v52 = vpop.eup %4974 }
0x1482   :  { %v5789_v53 = vadd.f32 %v4326_v36, %v3797_v51  ;;  %v3788_v55 = vmul.f32 %v4975_v52, %v3756_v10  ;;  %v4346_v52 = vld [vmem:[%s5886_s13 + $0x1] ss:$0 sm:$0xff] }
0x1484   :  { %4754 = vmatprep.mubr.msk.f32.mxu0 %vm96_vm0, %v5789_v53  ;;  %v3798_v60 = vmul.f32 %v4325_v34, %v3788_v55 }
0x1486   :  { %v5793_v62 = vadd.f32 %v4326_v36, %v3798_v60 }
0x1488   :  { %4755 = vmatmul.mubr.msk.f32.gmra.mrb[48].mxu0 %vm96_vm0, %v5793_v62 }
0x1545   :  { %v4753_v48 = vpop.f32.mrb[46].mxu0 }
0x1546   :  { %v3906_v14 = vadd.f32 %v4753_v48, %v4332_v40  ;;  %v3900_v16 = vpop.f32.mrb[47].mxu0 }
0x1547   :  { %v3901_v0 = vadd.f32 %v4332_v40, %v3900_v16 }
0x1548   :  { %v3924_v49 = vmul.f32 0.044715, %v3906_v14  ;;  %v3920_v30 = vmul.f32 0.5, %v3906_v14 }
0x1549   :  { %v3923_v46 = vmul.f32 0.044715, %v3901_v0  ;;  %v3919_v28 = vmul.f32 0.5, %v3901_v0 }
0x154a   :  { %v3928_v17 = vmul.f32 %v3924_v49, %v3906_v14 }
0x154b   :  { %v3927_v18 = vmul.f32 %v3923_v46, %v3901_v0 }
0x154c   :  { %v3932_v19 = vmul.f32 %v3928_v17, %v3906_v14 }
0x154d   :  { %v3931_v61 = vmul.f32 %v3927_v18, %v3901_v0 }
0x154e   :  { %v3936_v58 = vadd.f32 %v3932_v19, %v3906_v14 }
0x154f   :  { %v3935_v10 = vadd.f32 %v3931_v61, %v3901_v0 }
0x1550   :  { %v3940_v20 = vmul.f32 0.7978846, %v3936_v58 }
0x1551   :  { %v3939_v21 = vmul.f32 0.7978846, %v3935_v10 }
0x1552   :  { %4976 = vtanh.f32 %v3940_v20 }
0x1553   :  { %4978 = vtanh.f32 %v3939_v21 }
0x155b   :  { %v4756_v22 = vpop.f32.mrb[48].mxu0 }
0x155c   :  { %v4977_v23 = vpop.eup %4976  ;;  %v3916_v57 = vadd.f32 %v4756_v22, %v4332_v40  ;;  %v3910_v24 = vpop.f32.mrb[49].mxu0 }
0x155d   :  { %v4979_v4 = vpop.eup %4978  ;;  %v3948_v25 = vadd.f32 1.0, %v4977_v23  ;;  %v3911_v26 = vadd.f32 %v4332_v40, %v3910_v24 }
0x155e   :  { %v3926_v27 = vmul.f32 0.044715, %v3916_v57  ;;  %v3947_v29 = vadd.f32 1.0, %v4979_v4  ;;  %v3922_v47 = vmul.f32 0.5, %v3916_v57 }
0x155f   :  { %v3925_v31 = vmul.f32 0.044715, %v3911_v26  ;;  %v3952_v34 = vmul.f32 %v3948_v25, %v3920_v30  ;;  %v3921_v44 = vmul.f32 0.5, %v3911_v26 }
0x1560   :  { %v3930_v32 = vmul.f32 %v3926_v27, %v3916_v57  ;;  %v3951_v33 = vmul.f32 %v3947_v29, %v3919_v28  ;;  %v4353_v29 = vld [vmem:[%s5887_s14 + $0x1] ss:$0 sm:$0xff] }
0x1561   :  { %v3929_v9 = vmul.f32 %v3925_v31, %v3911_v26 }
0x1562   :  { %v3934_v35 = vmul.f32 %v3930_v32, %v3916_v57  ;;  %4773 = vmatprep.mubr.msk.f32.mxu1 %vm1989_vm4, %v3951_v33  ;;  %v4354_v32 = vld [vmem:[%s5888_s15 + $0x1] ss:$0 sm:$0xff] }
0x1563   :  { %v3933_v15 = vmul.f32 %v3929_v9, %v3911_v26  ;;  %4774 = vmatmul.mubr.msk.f32.vlgmr.msra.gmra.mrb[42].mxu1 %vm1989_vm4, %v3952_v34 }
0x1564   :  { %v3938_v36 = vadd.f32 %v3934_v35, %v3916_v57 }
0x1565   :  { %v3937_v37 = vadd.f32 %v3933_v15, %v3911_v26 }
0x1566   :  { %v3942_v38 = vmul.f32 0.7978846, %v3938_v36 }
0x1567   :  { %v3941_v39 = vmul.f32 0.7978846, %v3937_v37 }
0x1568   :  { %4980 = vtanh.f32 %v3942_v38 }
0x1569   :  { %4982 = vtanh.f32 %v3941_v39 }
0x1572   :  { %v4981_v41 = vpop.eup %4980 }
0x1573   :  { %v4983_v5 = vpop.eup %4982  ;;  %v3950_v43 = vadd.f32 1.0, %v4981_v41 }
0x1574   :  { %v3949_v45 = vadd.f32 1.0, %v4983_v5 }
0x1575   :  { %v3954_v51 = vmul.f32 %v3950_v43, %v3922_v47 }
0x1576   :  { %v3953_v50 = vmul.f32 %v3949_v45, %v3921_v44 }
0x1578   :  { %4776 = vmatprep.mubr.msk.f32.mxu1 %vm1989_vm4, %v3953_v50 }
0x1579   :  { %4777 = vmatmul.mubr.msk.f32.gmra.mrb[44].mxu1 %vm1989_vm4, %v3954_v51 }
0x1636   :  { %v4775_v55 = vpop.f32.mrb[42].mxu1 }
0x1637   :  { %v4056_v60 = vadd.f32 %v4775_v55, %v4346_v52  ;;  %v4050_v56 = vpop.f32.mrb[43].mxu1 }
0x1638   :  { %v4051_v63 = vadd.f32 %v4346_v52, %v4050_v56 }
0x1639   :  { %v4070_v1 = vadd.f32 %v4056_v60, %v5783_v42 }
0x163a   :  { %v4069_v12 = vadd.f32 %v4051_v63, %v5781_v11 }
0x163b   :  { %v4080_v2 = vsel %vm96_vm0, %v4070_v1, 0.0 }
0x163c   :  { %4081 = vadd.xlane.f32.xlu1 %v4080_v2  ;;  %v4077_v3 = vsel %vm96_vm0, %v4069_v12, 0.0 }
0x163d   :  { %4078 = vadd.xlane.f32.xlu0 %v4077_v3 }
0x164c   :  { %v4778_v6 = vpop.f32.mrb[44].mxu1 }
0x164d   :  { %v4066_v59 = vadd.f32 %v4778_v6, %v4346_v52  ;;  %v4060_v54 = vpop.f32.mrb[45].mxu1 }
0x164e   :  { %v4061_v7 = vadd.f32 %v4346_v52, %v4060_v54 }
0x164f   :  { %v4072_v8 = vadd.f32 %v4066_v59, %v5793_v62 }
0x1650   :  { %v4071_v13 = vadd.f32 %v4061_v7, %v5789_v53 }
0x1651   :  { %v4086_v40 = vsel %vm96_vm0, %v4072_v8, 0.0 }
0x1652   :  { %4087 = vadd.xlane.f32.xlu1 %v4086_v40  ;;  %v4083_v42 = vsel %vm96_vm0, %v4071_v13, 0.0 }
0x1653   :  { %4084 = vadd.xlane.f32.xlu0 %v4083_v42 }
0x16c9   :  { %v4082_v11 = vpop.xlane.xlu1 %4081 }
0x16ca   :  { %v4090_v48 = vmul.f32 0.03125, %v4082_v11  ;;  %v4079_v14 = vpop.xlane.xlu0 %4078 }
0x16cb   :  { %v4089_v16 = vmul.f32 0.03125, %v4079_v14 }
0x16cc   :  { %v4094_v0 = vsub.f32 %v4070_v1, %v4090_v48 }
0x16cd   :  { %v4093_v49 = vsub.f32 %v4069_v12, %v4089_v16 }
0x16ce   :  { %v4098_v46 = vmul.f32 %v4094_v0, %v4094_v0 }
0x16cf   :  { %v4097_v17 = vmul.f32 %v4093_v49, %v4093_v49 }
0x16d0   :  { %v4104_v18 = vsel %vm96_vm0, %v4098_v46, 0.0 }
0x16d1   :  { %4105 = vadd.xlane.f32.xlu1 %v4104_v18  ;;  %v4101_v62 = vsel %vm96_vm0, %v4097_v17, 0.0 }
0x16d2   :  { %4102 = vadd.xlane.f32.xlu0 %v4101_v62 }
0x16df   :  { %v4088_v53 = vpop.xlane.xlu1 %4087 }
0x16e0   :  { %v4092_v19 = vmul.f32 0.03125, %v4088_v53  ;;  %v4085_v61 = vpop.xlane.xlu0 %4084 }
0x16e1   :  { %v4091_v58 = vmul.f32 0.03125, %v4085_v61 }
0x16e2   :  { %v4096_v10 = vsub.f32 %v4072_v8, %v4092_v19 }
0x16e3   :  { %v4095_v20 = vsub.f32 %v4071_v13, %v4091_v58 }
0x16e4   :  { %v4100_v21 = vmul.f32 %v4096_v10, %v4096_v10 }
0x16e5   :  { %v4099_v22 = vmul.f32 %v4095_v20, %v4095_v20 }
0x16e6   :  { %v4110_v23 = vsel %vm96_vm0, %v4100_v21, 0.0 }
0x16e7   :  { %4111 = vadd.xlane.f32.xlu1 %v4110_v23  ;;  %v4107_v57 = vsel %vm96_vm0, %v4099_v22, 0.0 }
0x16e8   :  { %4108 = vadd.xlane.f32.xlu0 %v4107_v57 }
0x175e   :  { %v4106_v26 = vpop.xlane.xlu1 %4105 }
0x175f   :  { %v4103_v24 = vpop.xlane.xlu0 %4102  ;;  %v4114_v27 = vmul.f32 0.03125, %v4106_v26 }
0x1760   :  { %v4113_v4 = vmul.f32 0.03125, %v4103_v24 }
0x1761   :  { %v4118_v31 = vadd.f32 1e-12, %v4114_v27 }
0x1762   :  { %v4117_v25 = vadd.f32 1e-12, %v4113_v4 }
0x1764   :  { %4984 = vrsqrt.f32 %v4117_v25 }
0x1765   :  { %4986 = vrsqrt.f32 %v4118_v31 }
0x176e   :  { %v4985_v28 = vpop.eup %4984 }
0x176f   :  { %v4125_v30 = vmul.f32 %v4985_v28, %v4093_v49  ;;  %v4987_v5 = vpop.eup %4986 }
0x1770   :  { %v4126_v43 = vmul.f32 %v4987_v5, %v4094_v0 }
0x1771   :  { %v4135_v33 = vmul.f32 %v4353_v29, %v4125_v30 }
0x1772   :  { %v4136_v51 = vmul.f32 %v4353_v29, %v4126_v43 }
0x1773   :  { %v4145_v34 = vadd.f32 %v4354_v32, %v4135_v33 }
0x1774   :  { %v4112_v9 = vpop.xlane.xlu1 %4111  ;;  %v5852_v63 = vadd.f32 %v4354_v32, %v4136_v51 }
0x1775   :  { %v4116_v35 = vmul.f32 0.03125, %v4112_v9  ;;  %v4109_v15 = vpop.xlane.xlu0 %4108  ;;  %v4149_v36 = vmul.f32 %v4145_v34, %v4145_v34 }
0x1776   :  { %v4115_v37 = vmul.f32 0.03125, %v4109_v15  ;;  %v4185_v2 = vmul.f32 %v5852_v63, %v5852_v63 }
0x1777   :  { %v4120_v38 = vadd.f32 1e-12, %v4116_v35  ;;  %v4151_v39 = vsel %vm4150_vm5, %v4149_v36, 0.0 }
0x1778   :  { %v4119_v41 = vadd.f32 1e-12, %v4115_v37  ;;  %4152 = vadd.xlane.f32.xlu0 %v4151_v39  ;;  %v4186_v3 = vsel %vm4150_vm5, %v4185_v2, 0.0 }
0x1779   :  { %4988 = vrsqrt.f32 %v4120_v38 }
0x177a   :  { %4990 = vrsqrt.f32 %v4119_v41 }
0x1783   :  { %v4989_v44 = vpop.eup %4988 }
0x1784   :  { %v4991_v45 = vpop.eup %4990  ;;  %v4128_v47 = vmul.f32 %v4989_v44, %v4096_v10 }
0x1785   :  { %v4127_v50 = vmul.f32 %v4991_v45, %v4095_v20 }
0x1786   :  { %v4138_v52 = vmul.f32 %v4353_v29, %v4128_v47 }
0x1787   :  { %v4137_v55 = vmul.f32 %v4353_v29, %v4127_v50 }
0x1788   :  { %v5850_v60 = vadd.f32 %v4354_v32, %v4138_v52 }
0x1789   :  { %v4147_v56 = vadd.f32 %v4354_v32, %v4137_v55 }
0x178a   :  { %v4199_v61 = vmul.f32 %v5850_v60, %v5850_v60 }
0x178b   :  { %v4164_v1 = vmul.f32 %v4147_v56, %v4147_v56 }
0x178c   :  { %v4200_v58 = vsel %vm4150_vm5, %v4199_v61, 0.0 }
0x178d   :  { %v4165_v12 = vsel %vm4150_vm5, %v4164_v1, 0.0 }
0x178e   :  { %4166 = vadd.xlane.f32.xlu1 %v4165_v12 }
0x1792   :  { %4187 = vadd.xlane.f32.xlu1 %v4186_v3 }
0x1805   :  { %v4153_v6 = vpop.xlane.xlu0 %4152 }
0x1806   :  { %4992 = vrsqrt.f32 %v4153_v6  ;;  %vm4156_vm6 = vcmp.eq.f32.partialorder %v4153_v6, inf  ;;  %v4159_v13 = vand.u32 2147483648, %v4153_v6  ;;  %vm4158_vm7 = vcmp.eq.f32.partialorder %v4153_v6, 0.0 }
0x1810   :  { %v4993_v59 = vpop.eup %4992 }
0x1811   :  { %v4155_v7 = vmul.f32 %v4993_v59, %v4153_v6 }
0x1813   :  { %v4157_v8 = vsel %vm4156_vm6, %v4153_v6, %v4155_v7 }
0x1814   :  { %v4160_v40 = vsel %vm4158_vm7, %v4159_v13, %v4157_v8 }
0x1815   :  { %v4161_v11 = vmax.f32 %v4160_v40, 1e-12 }
0x181b   :  { %v4167_v54 = vpop.xlane.xlu1 %4166 }
0x181c   :  { %4994 = vrsqrt.f32 %v4167_v54  ;;  %vm4170_vm8 = vcmp.eq.f32.partialorder %v4167_v54, inf  ;;  %v4173_v14 = vand.u32 2147483648, %v4167_v54  ;;  %vm4172_vm9 = vcmp.eq.f32.partialorder %v4167_v54, 0.0 }
0x181d   :  { %4996 = vrcp.f32 %v4161_v11 }
0x181f   :  { %v4188_v10 = vpop.xlane.xlu1 %4187 }
0x1820   :  { %vm4191_vm11 = vcmp.eq.f32.partialorder %v4188_v10, inf  ;;  %v4194_v4 = vand.u32 2147483648, %v4188_v10  ;;  %vm4193_vm12 = vcmp.eq.f32.partialorder %v4188_v10, 0.0 }
0x1826   :  { %v4995_v42 = vpop.eup %4994 }
0x1827   :  { %v4169_v48 = vmul.f32 %v4995_v42, %v4167_v54  ;;  %v4997_v46 = vpop.eup %4996 }
0x1828   :  { %v4163_v18 = vmul.f32 %v4997_v46, %v4145_v34 }
0x1829   :  { %v4171_v16 = vsel %vm4170_vm8, %v4167_v54, %v4169_v48 }
0x182a   :  { %v4174_v0 = vsel %vm4172_vm9, %v4173_v14, %v4171_v16 }
0x182b   :  { %v4175_v49 = vmax.f32 %v4174_v0, 1e-12 }
0x182d   :  { %4998 = vrcp.f32 %v4175_v49 }
0x182e   :  { %5000 = vrsqrt.f32 %v4188_v10 }
0x1837   :  { %v4999_v17 = vpop.eup %4998 }
0x1838   :  { %v4177_v62 = vmul.f32 %v4999_v17, %v4147_v56  ;;  %v5001_v22 = vpop.eup %5000 }
0x1839   :  { %v4190_v57 = vmul.f32 %v5001_v22, %v4188_v10 }
0x183a   :  { %v4178_v53 = vmul.f32 %v4177_v62, %v4163_v18 }
0x183b   :  { %v4192_v24 = vsel %vm4191_vm11, %v4188_v10, %v4190_v57 }
0x183c   :  { %v4179_v19 = vsel %vm4150_vm5, %v4178_v53, 0.0  ;;  %v4195_v25 = vsel %vm4193_vm12, %v4194_v4, %v4192_v24 }
0x183d   :  { %4180 = vadd.xlane.f32.xlu0 %v4179_v19  ;;  %v4196_v27 = vmax.f32 %v4195_v25, 1e-12 }
0x1841   :  { %4201 = vadd.xlane.f32.xlu0 %v4200_v58 }
0x18ca   :  { %v4181_v20 = vpop.xlane.xlu0 %4180 }
0x18cb   :  { %v4182_v21 = vsub.f32 1.0, %v4181_v20 }
0x18cd   :  { %4184 = vst.msk [vmem:[%s5889_s16] sm:$0x1] %vm4183_vm10, %v4182_v21 }
0x18ce   :  { %v4202_v23 = vpop.xlane.xlu0 %4201 }
0x18cf   :  { %5002 = vrsqrt.f32 %v4202_v23  ;;  %vm4205_vm13 = vcmp.eq.f32.partialorder %v4202_v23, inf  ;;  %v4208_v29 = vand.u32 2147483648, %v4202_v23  ;;  %vm4207_vm14 = vcmp.eq.f32.partialorder %v4202_v23, 0.0 }
0x18d0   :  { %5004 = vrcp.f32 %v4196_v27 }
0x18d9   :  { %v5003_v26 = vpop.eup %5002 }
0x18da   :  { %v4204_v28 = vmul.f32 %v5003_v26, %v4202_v23  ;;  %v5005_v33 = vpop.eup %5004 }
0x18db   :  { %v4198_v9 = vmul.f32 %v5005_v33, %v5852_v63 }
0x18dc   :  { %v4206_v30 = vsel %vm4205_vm13, %v4202_v23, %v4204_v28 }
0x18dd   :  { %v4209_v31 = vsel %vm4207_vm14, %v4208_v29, %v4206_v30 }
0x18de   :  { %v4210_v32 = vmax.f32 %v4209_v31, 1e-12 }
0x18e0   :  { %5006 = vrcp.f32 %v4210_v32 }
0x18ea   :  { %v5007_v34 = vpop.eup %5006 }
0x18eb   :  { %v4212_v35 = vmul.f32 %v5007_v34, %v5850_v60 }
0x18ed   :  { %v4213_v15 = vmul.f32 %v4212_v35, %v4198_v9 }
0x18ef   :  { %v4214_v36 = vsel %vm4150_vm5, %v4213_v15, 0.0 }
0x18f0   :  { %4215 = vadd.xlane.f32.xlu1 %v4214_v36 }
0x197d   :  { %v4216_v37 = vpop.xlane.xlu1 %4215 }
0x197e   :  { %v4217_v38 = vsub.f32 1.0, %v4216_v37 }
0x1980   :  { %4218 = vst.msk [vmem:[%s5889_s16 + $0x1] sm:$0x1] %vm4183_vm10, %v4217_v38 }
0x1981   :  { %4223 = vsyncpa [#allocation3], 1 }
0x1982   :  { %4224 = vsyncpa [#allocation5], 1 }

</bundles_post_ra>
